<compile_context>
chip_gen: v6e
topology: v6e:2x2x1
jax: 0.10.0
libtpu: 0.0.40
codegen_flags: <defaults>
</compile_context>

<pallas_src>
import functools

import jax
import jax.numpy as jnp
from jax import lax
from jax.experimental import pallas as pl
from jax.experimental.pallas import tpu as pltpu

EPS = 1e-5  # nn.LayerNorm default


def _gelu_exact(x):
    # HF Whisper activation_fn = "gelu" (erf-based, exact)
    return 0.5 * x * (1.0 + lax.erf(x * 0.7071067811865475))


def decoder_layer_kernel(
    num_heads, head_dim, compute_dtype,
    # inputs
    x_ref, mask_ref,
    ln1g_ref, ln1b_ref, wqkv_s_ref, bqkv_s_ref, wo_s_ref, bo_s_ref,
    ln2g_ref, ln2b_ref, wqkv_c_ref, bqkv_c_ref, wo_c_ref, bo_c_ref,
    ln3g_ref, ln3b_ref, b2_ref,
    w1_ref, b1_ref, w2_ref,
    # outputs
    out_ref, kself_ref, vself_ref,
    # scratch
    h3n_ref,
):
    f_idx = pl.program_id(1)          # FFN F-tile index (inner, "arbitrary")
    D = num_heads * head_dim

    def layernorm(z32, g, b):
        # single-pass: var = E[x^2] - mu^2
        mu = jnp.mean(z32, axis=-1, keepdims=True)
        ms = jnp.mean(z32 * z32, axis=-1, keepdims=True)
        var = ms - mu * mu
        return (z32 - mu) * lax.rsqrt(var + EPS) * g + b

    def split_heads(z):
        # (T, D) -> (H, T, head_dim) via reshape + one transpose (no per-head loop)
        t = z.shape[0]
        return jnp.transpose(z.reshape(t, num_heads, head_dim), (1, 0, 2))

    def attention(xn32, wqkv_ref, bqkv_ref, wo_ref, bo_ref, msk):
        # wq / bq already carry the head_dim**-0.5 scaling (SHAAttention folds it
        # into the per-head conv weights).  wqkv is pre-transposed (D, 3D).
        xc = xn32.astype(compute_dtype)
        qkv = jnp.dot(xc, wqkv_ref[...],
                      preferred_element_type=jnp.float32) + bqkv_ref[0]
        q, k, v = qkv[:, :D], qkv[:, D:2 * D], qkv[:, 2 * D:]

        qh = split_heads(q).astype(compute_dtype)   # (H, T, hd)
        kh = split_heads(k).astype(compute_dtype)   # (H, S, hd)
        vh = split_heads(v).astype(compute_dtype)   # (H, S, hd)

        s = jnp.einsum("htd,hsd->hts", qh, kh, preferred_element_type=jnp.float32)
        if msk is not None:
            s = s + msk[None].astype(jnp.float32)
        s = s - jnp.max(s, axis=-1, keepdims=True)
        e = jnp.exp(s)
        denom = jnp.sum(e, axis=-1, keepdims=True)
        # unnormalized PV, then normalize the small (H,T,hd) context (EUP recip)
        ctx = jnp.einsum("hts,hsd->htd", e.astype(compute_dtype), vh,
                         preferred_element_type=jnp.float32)
        ctx = ctx * pl.reciprocal(denom, approx=True)

        # merge heads: (H,T,hd) -> (T,D), then ONE full-width output projection
        o = jnp.transpose(ctx, (1, 0, 2)).reshape(xn32.shape[0], D)
        attn = jnp.dot(o.astype(compute_dtype), wo_ref[...],
                       preferred_element_type=jnp.float32) + bo_ref[0]
        return attn, k, v

    @pl.when(f_idx == 0)
    def _attention_part():
        x = x_ref[0].astype(jnp.float32)

        # ---- self attention (decoder, causal, with attention_mask) ----
        xn = layernorm(x, ln1g_ref[0], ln1b_ref[0])
        attn_s, k_self, v_self = attention(xn, wqkv_s_ref, bqkv_s_ref,
                                           wo_s_ref, bo_s_ref, mask_ref[0, 0])
        kself_ref[0] = k_self.astype(kself_ref.dtype)
        vself_ref[0] = v_self.astype(vself_ref.dtype)
        h = x + attn_s

        # ---- cross attention (no cached encoder K/V -> K/V from its own input,
        #      mask=None, exactly as in the PyTorch code) ----
        hn = layernorm(h, ln2g_ref[0], ln2b_ref[0])
        attn_c, _, _ = attention(hn, wqkv_c_ref, bqkv_c_ref, wo_c_ref, bo_c_ref, None)
        h2 = h + attn_c

        # output block is the resident accumulator across the F grid axis:
        # init with residual + fc2 bias; FFN tiles below add their partial sums.
        out_ref[0] = h2 + b2_ref[0]
        h3n_ref[...] = layernorm(h2, ln3g_ref[0], ln3b_ref[0]).astype(h3n_ref.dtype)

    # ---- feed forward, tiled over F: fc1 tile -> gelu -> fc2 tile -> accumulate ----
    f1 = jnp.dot(h3n_ref[...], w1_ref[...],
                 preferred_element_type=jnp.float32) + b1_ref[0]
    g = _gelu_exact(f1)
    out_ref[0] = out_ref[0] + jnp.dot(g.astype(compute_dtype), w2_ref[...],
                                      preferred_element_type=jnp.float32)


def _single_buffer_kw():
    """pipeline_mode=pl.Buffered(1) for constant weights, if this jax supports it."""
    if not hasattr(pl, "Buffered"):
        return {}
    try:
        pl.BlockSpec((8, 128), lambda i: (0, 0), pipeline_mode=pl.Buffered(1))
        return {"pipeline_mode": pl.Buffered(1)}
    except Exception:
        return {}


def qc_whisper_decoder_layer(hidden_states, attention_mask, params, num_heads,
                             compute_dtype=jnp.bfloat16):
    """hidden_states: (B, 1, T, D); attention_mask: (1|B, 1, T, T) additive mask."""
    B, one, T, D = hidden_states.shape
    assert one == 1
    head_dim = D // num_heads
    F = params["w1"].shape[0]
    cd = compute_dtype
    cd_bytes = jnp.dtype(cd).itemsize

    # activations / mask travel in compute dtype (LN / softmax upcast to f32 in-kernel)
    x = hidden_states.reshape(B, T, D).astype(cd)
    mask = attention_mask.astype(cd)
    Bm = mask.shape[0]

    def wt(w):   # torch (out, in) -> (in, out), MXU compute dtype (no in-kernel .T)
        return jnp.asarray(w, jnp.float32).T.astype(cd)

    def vec(v):  # biases / LN params stay f32 (added to f32 accumulators)
        return jnp.asarray(v, jnp.float32).reshape(1, -1)

    def fuse_qkv(wq, bq, wk, wv, bv):
        # one (D, 3D) weight + (1, 3D) bias (K bias zero) -> single QKV matmul
        w = jnp.concatenate([wt(wq), wt(wk), wt(wv)], axis=1)
        b = jnp.concatenate([vec(bq), jnp.zeros((1, D), jnp.float32), vec(bv)], axis=1)
        return w, b

    wqkv_s, bqkv_s = fuse_qkv(params["wq_s"], params["bq_s"], params["wk_s"],
                              params["wv_s"], params["bv_s"])
    wqkv_c, bqkv_c = fuse_qkv(params["wq_c"], params["bq_c"], params["wk_c"],
                              params["wv_c"], params["bv_c"])

    const_args = [
        vec(params["ln1_g"]), vec(params["ln1_b"]),
        wqkv_s, bqkv_s, wt(params["wo_s"]), vec(params["bo_s"]),
        vec(params["ln2_g"]), vec(params["ln2_b"]),
        wqkv_c, bqkv_c, wt(params["wo_c"]), vec(params["bo_c"]),
        vec(params["ln3_g"]), vec(params["ln3_b"]),
        vec(params["b2"]),
    ]
    w1t = wt(params["w1"])   # (D, F)
    b1 = vec(params["b1"])   # (1, F)
    w2t = wt(params["w2"])   # (F, D)

    # FFN F-tile size: multiple of 128 (lane granularity) or the full F.
    tf = F
    for cand in (2048, 1024, 512, 256, 128):
        if F > cand and F % cand == 0:
            tf = cand
            break
    n_f = F // tf

    # VMEM budget: constant weights (x1 or x2 buffers), double-buffered FFN tiles
    # and I/O blocks, plus f32 in-kernel intermediates; clamp to device capacity.
    const_bytes = sum(int(a.size) * a.dtype.itemsize for a in const_args)
    ffn_tile_bytes = 2 * (2 * D * tf * cd_bytes + tf * 4)
    io_bytes = 2 * (T * D * cd_bytes + T * T * cd_bytes + T * D * 4
                    + 2 * T * D * cd_bytes)
    interm_bytes = (12 * T * D + 4 * num_heads * T * T + 4 * T * tf) * 4
    try:
        cap = int(getattr(pltpu.get_tpu_info(), "vmem_capacity_bytes", 128 << 20))
    except Exception:
        cap = 64 << 20

    attn_flops = 2 * (2 * T * D * 3 * D + 4 * T * T * D + 2 * T * D * D)
    ffn_flops = 4 * T * D * F
    cost = pl.CostEstimate(
        flops=int(B * (attn_flops + ffn_flops)),
        transcendentals=int(B * (2 * num_heads * T * T + T * F)),
        bytes_accessed=int(const_bytes + (2 * D * F + F) * cd_bytes + B * io_bytes // 2),
    )

    out_shapes = (
        jax.ShapeDtypeStruct((B, T, D), jnp.float32),   # layer output (f32)
        jax.ShapeDtypeStruct((B, T, D), cd),            # self-attn K (compute dtype)
        jax.ShapeDtypeStruct((B, T, D), cd),            # self-attn V (compute dtype)
    )
    out_specs = (
        pl.BlockSpec((1, T, D), lambda b, f: (b, 0, 0)),
        pl.BlockSpec((1, T, D), lambda b, f: (b, 0, 0)),
        pl.BlockSpec((1, T, D), lambda b, f: (b, 0, 0)),
    )
    # shared-across-batch mask ((1,1,T,T)) is DMA'd only once
    mask_index_map = ((lambda b, f: (b, 0, 0, 0)) if Bm > 1
                      else (lambda b, f: (0, 0, 0, 0)))

    def _run(buf_kw):
        def const_spec(arr):
            nd = arr.ndim
            return pl.BlockSpec(arr.shape, lambda b, f, _nd=nd: (0,) * _nd, **buf_kw)

        weight_buffers = 1 if buf_kw else 2
        vmem_limit = int(min(max(weight_buffers * const_bytes + ffn_tile_bytes
                                 + io_bytes + T * D * cd_bytes + interm_bytes
                                 + (4 << 20), 32 << 20), cap))

        in_specs = (
            [pl.BlockSpec((1, T, D), lambda b, f: (b, 0, 0)),
             pl.BlockSpec((1, 1, T, T), mask_index_map)]
            + [const_spec(a) for a in const_args]
            + [pl.BlockSpec((D, tf), lambda b, f: (0, f)),   # w1 tile (streamed)
               pl.BlockSpec((1, tf), lambda b, f: (0, f)),   # b1 tile
               pl.BlockSpec((tf, D), lambda b, f: (f, 0))]   # w2 tile (streamed)
        )

        return pl.pallas_call(
            functools.partial(decoder_layer_kernel, num_heads, head_dim, cd),
            out_shape=out_shapes,
            grid=(B, n_f),
            in_specs=in_specs,
            out_specs=out_specs,
            scratch_shapes=[pltpu.VMEM((T, D), cd)],   # LN3(h2), reused by all F tiles
            compiler_params=pltpu.CompilerParams(
                dimension_semantics=("parallel", "arbitrary"),
                vmem_limit_bytes=vmem_limit),
            cost_estimate=cost,
        )(x, mask, *const_args, w1t, b1, w2t)

    buf_kw = _single_buffer_kw()
    try:
        out, k_self, v_self = _run(buf_kw)
    except Exception:
        if not buf_kw:
            raise
        out, k_self, v_self = _run({})   # fall back to default double-buffering

    # present_key_value, exactly as SHAAttention builds it for the causal self-attn:
    #   keys   -> (num_heads, B, head_dim, T)[..., 1:]
    #   values -> (num_heads, B, T, head_dim)[:, :, 1:, :]
    kh = k_self.reshape(B, T, num_heads, head_dim)
    vh = v_self.reshape(B, T, num_heads, head_dim)
    present_key = jnp.transpose(kh, (2, 0, 3, 1))[:, :, :, 1:]
    present_value = jnp.transpose(vh, (2, 0, 1, 3))[:, :, 1:, :]

    return out.reshape(B, 1, T, D), (present_key, present_value)


# ---------------------------------------------------------------------------
# Pure-JAX reference (mirrors the PyTorch forward) for a correctness check.
# ---------------------------------------------------------------------------
def _reference(hidden_states, attention_mask, p, num_heads):
    B, _, T, D = hidden_states.shape
    hd = D // num_heads
    x = hidden_states.reshape(B, T, D)

    def ln(z, g, b):
        mu = z.mean(-1, keepdims=True)
        var = ((z - mu) ** 2).mean(-1, keepdims=True)
        return (z - mu) / jnp.sqrt(var + EPS) * g + b

    def attn(xn, wq, bq, wk, wv, bv, wo, bo, mask):
        q = xn @ wq.T + bq
        k = xn @ wk.T
        v = xn @ wv.T + bv
        qh = q.reshape(B, T, num_heads, hd).transpose(0, 2, 1, 3)
        kh = k.reshape(B, T, num_heads, hd).transpose(0, 2, 1, 3)
        vh = v.reshape(B, T, num_heads, hd).transpose(0, 2, 1, 3)
        s = jnp.einsum("bhqd,bhkd->bhqk", qh, kh)
        if mask is not None:
            s = s + mask
        w = jax.nn.softmax(s, axis=-1)
        o = jnp.einsum("bhqk,bhkd->bhqd", w, vh).transpose(0, 2, 1, 3).reshape(B, T, D)
        return o @ wo.T + bo

    xn = ln(x, p["ln1_g"], p["ln1_b"])
    h = x + attn(xn, p["wq_s"], p["bq_s"], p["wk_s"], p["wv_s"], p["bv_s"],
                 p["wo_s"], p["bo_s"], attention_mask)
    hn = ln(h, p["ln2_g"], p["ln2_b"])
    h2 = h + attn(hn, p["wq_c"], p["bq_c"], p["wk_c"], p["wv_c"], p["bv_c"],
                  p["wo_c"], p["bo_c"], None)
    h3 = ln(h2, p["ln3_g"], p["ln3_b"])
    f = jax.nn.gelu(h3 @ p["w1"].T + p["b1"], approximate=False)
    f = f @ p["w2"].T + p["b2"]
    return (h2 + f).reshape(B, 1, T, D)


if __name__ == "__main__":
    # small shapes; F=256 so the FFN F-tiling path (tf=128, n_f=2) is exercised
    B, T, D, H, F = 2, 8, 32, 4, 256
    hd = D // H
    scaling = hd ** -0.5

    keys = jax.random.split(jax.random.PRNGKey(0), 25)
    ki = iter(keys[:24])
    key_x = keys[24]

    def rnd(shape, scale=0.05):
        return jax.random.normal(next(ki), shape, dtype=jnp.float32) * scale

    params = {
        "ln1_g": jnp.ones((1, D), jnp.float32) + rnd((1, D)),
        "ln1_b": rnd((1, D)),
        # self-attn: q weight/bias carry the head scaling, as in SHAAttention.__init__
        "wq_s": rnd((D, D)) * scaling, "bq_s": rnd((1, D)) * scaling,
        "wk_s": rnd((D, D)),
        "wv_s": rnd((D, D)), "bv_s": rnd((1, D)),
        "wo_s": rnd((D, D)), "bo_s": rnd((1, D)),
        "ln2_g": jnp.ones((1, D), jnp.float32) + rnd((1, D)),
        "ln2_b": rnd((1, D)),
        # cross-attn
        "wq_c": rnd((D, D)) * scaling, "bq_c": rnd((1, D)) * scaling,
        "wk_c": rnd((D, D)),
        "wv_c": rnd((D, D)), "bv_c": rnd((1, D)),
        "wo_c": rnd((D, D)), "bo_c": rnd((1, D)),
        "ln3_g": jnp.ones((1, D), jnp.float32) + rnd((1, D)),
        "ln3_b": rnd((1, D)),
        # feed-forward (Conv2dLinear == 1x1 conv == matmul)
        "w1": rnd((F, D)), "b1": rnd((1, F)),
        "w2": rnd((D, F)), "b2": rnd((1, D)),
    }

    hidden_states = jax.random.normal(key_x, (B, 1, T, D), dtype=jnp.float32)
    # additive causal mask, shared across batch: (1, 1, T, T)
    causal = jnp.where(jnp.tril(jnp.ones((T, T), jnp.bool_)), 0.0, -1e9).astype(jnp.float32)
    attention_mask = causal[None, None]

    ref = _reference(hidden_states, attention_mask, params, H)

    # f32 compute path: tight check (isolates kernel structure from bf16 rounding).
    out32, (pk32, pv32) = qc_whisper_decoder_layer(
        hidden_states, attention_mask, params, num_heads=H, compute_dtype=jnp.float32)
    jax.block_until_ready((out32, pk32, pv32))
    assert out32.shape == (B, 1, T, D)
    assert pk32.shape == (H, B, hd, T - 1)
    assert pv32.shape == (H, B, T - 1, hd)
    assert jnp.allclose(out32, ref, rtol=5e-3, atol=5e-3), float(jnp.abs(out32 - ref).max())

    # bf16 MXU path (default): looser tolerance.
    out, (present_k, present_v) = qc_whisper_decoder_layer(
        hidden_states, attention_mask, params, num_heads=H)
    jax.block_until_ready((out, present_k, present_v))
    assert out.shape == (B, 1, T, D)
    assert present_k.shape == (H, B, hd, T - 1)
    assert present_v.shape == (H, B, T - 1, hd)
    assert jnp.allclose(out, ref, rtol=2e-2, atol=2e-2), float(jnp.abs(out - ref).max())

    # present_key_value check (self-attn K/V with first timestep dropped).
    xr = hidden_states.reshape(B, T, D)
    mu = xr.mean(-1, keepdims=True)
    var = ((xr - mu) ** 2).mean(-1, keepdims=True)
    xn = (xr - mu) / jnp.sqrt(var + EPS) * params["ln1_g"] + params["ln1_b"]
    k_full = xn @ params["wk_s"].T
    v_full = xn @ params["wv_s"].T + params["bv_s"]
    pk_ref = jnp.transpose(k_full.reshape(B, T, H, hd), (2, 0, 3, 1))[:, :, :, 1:]
    pv_ref = jnp.transpose(v_full.reshape(B, T, H, hd), (2, 0, 1, 3))[:, :, 1:, :]
    assert jnp.allclose(present_k.astype(jnp.float32), pk_ref, rtol=2e-2, atol=2e-2)
    assert jnp.allclose(present_v.astype(jnp.float32), pv_ref, rtol=2e-2, atol=2e-2)

    print("KERNEL_OK")
</pallas_src>

<mosaic_0001>
module attributes {stable_mosaic.version = 11 : i64} {
  func.func @decoder_layer_kernel(%arg0: i32, %arg1: i32, %arg2: memref<1x8x32xf32, #tpu.memory_space<vmem>>, %arg3: memref<1x1x8x8xf32, #tpu.memory_space<vmem>>, %arg4: memref<1x32xf32, #tpu.memory_space<vmem>>, %arg5: memref<1x32xf32, #tpu.memory_space<vmem>>, %arg6: memref<32x96xf32, #tpu.memory_space<vmem>>, %arg7: memref<1x96xf32, #tpu.memory_space<vmem>>, %arg8: memref<32x32xf32, #tpu.memory_space<vmem>>, %arg9: memref<1x32xf32, #tpu.memory_space<vmem>>, %arg10: memref<1x32xf32, #tpu.memory_space<vmem>>, %arg11: memref<1x32xf32, #tpu.memory_space<vmem>>, %arg12: memref<32x96xf32, #tpu.memory_space<vmem>>, %arg13: memref<1x96xf32, #tpu.memory_space<vmem>>, %arg14: memref<32x32xf32, #tpu.memory_space<vmem>>, %arg15: memref<1x32xf32, #tpu.memory_space<vmem>>, %arg16: memref<1x32xf32, #tpu.memory_space<vmem>>, %arg17: memref<1x32xf32, #tpu.memory_space<vmem>>, %arg18: memref<1x32xf32, #tpu.memory_space<vmem>>, %arg19: memref<32x128xf32, #tpu.memory_space<vmem>>, %arg20: memref<1x128xf32, #tpu.memory_space<vmem>>, %arg21: memref<128x32xf32, #tpu.memory_space<vmem>>, %arg22: memref<1x8x32xf32, #tpu.memory_space<vmem>>, %arg23: memref<1x8x32xf32, #tpu.memory_space<vmem>>, %arg24: memref<1x8x32xf32, #tpu.memory_space<vmem>>, %arg25: memref<8x32xf32, #tpu.memory_space<vmem>>) attributes {dimension_semantics = [#tpu.dimension_semantics<parallel>, #tpu.dimension_semantics<arbitrary>], iteration_bounds = array<i64: 2, 2>, scalar_prefetch = 0 : i64, scratch_operands = 1 : i64, tpu.core_type = #tpu.core_type<tc>, window_params = [{transform_indices = @transform_0, window_bounds = array<i64: 1, 8, 32>}, {pipeline_mode = #tpu.pipeline_mode<synchronous>, transform_indices = @transform_1, window_bounds = array<i64: 1, 1, 8, 8>}, {pipeline_mode = #tpu.pipeline_mode<synchronous>, transform_indices = @transform_2, window_bounds = array<i64: 1, 32>}, {pipeline_mode = #tpu.pipeline_mode<synchronous>, transform_indices = @transform_3, window_bounds = array<i64: 1, 32>}, {pipeline_mode = #tpu.pipeline_mode<synchronous>, transform_indices = @transform_4, window_bounds = array<i64: 32, 96>}, {pipeline_mode = #tpu.pipeline_mode<synchronous>, transform_indices = @transform_5, window_bounds = array<i64: 1, 96>}, {pipeline_mode = #tpu.pipeline_mode<synchronous>, transform_indices = @transform_6, window_bounds = array<i64: 32, 32>}, {pipeline_mode = #tpu.pipeline_mode<synchronous>, transform_indices = @transform_7, window_bounds = array<i64: 1, 32>}, {pipeline_mode = #tpu.pipeline_mode<synchronous>, transform_indices = @transform_8, window_bounds = array<i64: 1, 32>}, {pipeline_mode = #tpu.pipeline_mode<synchronous>, transform_indices = @transform_9, window_bounds = array<i64: 1, 32>}, {pipeline_mode = #tpu.pipeline_mode<synchronous>, transform_indices = @transform_10, window_bounds = array<i64: 32, 96>}, {pipeline_mode = #tpu.pipeline_mode<synchronous>, transform_indices = @transform_11, window_bounds = array<i64: 1, 96>}, {pipeline_mode = #tpu.pipeline_mode<synchronous>, transform_indices = @transform_12, window_bounds = array<i64: 32, 32>}, {pipeline_mode = #tpu.pipeline_mode<synchronous>, transform_indices = @transform_13, window_bounds = array<i64: 1, 32>}, {pipeline_mode = #tpu.pipeline_mode<synchronous>, transform_indices = @transform_14, window_bounds = array<i64: 1, 32>}, {pipeline_mode = #tpu.pipeline_mode<synchronous>, transform_indices = @transform_15, window_bounds = array<i64: 1, 32>}, {pipeline_mode = #tpu.pipeline_mode<synchronous>, transform_indices = @transform_16, window_bounds = array<i64: 1, 32>}, {transform_indices = @transform_17, window_bounds = array<i64: 32, 128>}, {transform_indices = @transform_18, window_bounds = array<i64: 1, 128>}, {transform_indices = @transform_19, window_bounds = array<i64: 128, 32>}, {transform_indices = @transform_20, window_bounds = array<i64: 1, 8, 32>}, {transform_indices = @transform_21, window_bounds = array<i64: 1, 8, 32>}, {transform_indices = @transform_22, window_bounds = array<i64: 1, 8, 32>}]} {
    %c0_i32 = arith.constant 0 : i32
    %0 = arith.cmpi eq, %arg1, %c0_i32 : i32
    %1 = arith.extui %0 : i1 to i32
    %c0_i32_0 = arith.constant 0 : i32
    %2 = arith.cmpi ne, %1, %c0_i32_0 : i32
    scf.if %2 {
      %c0_18 = arith.constant 0 : index
      %c0_19 = arith.constant 0 : index
      %c0_20 = arith.constant 0 : index
      %27 = vector.load %arg2[%c0_18, %c0_19, %c0_20] : memref<1x8x32xf32, #tpu.memory_space<vmem>>, vector<1x8x32xf32>
      %28 = vector.shape_cast %27 : vector<1x8x32xf32> to vector<8x32xf32>
      %c0_21 = arith.constant 0 : index
      %c0_22 = arith.constant 0 : index
      %29 = vector.load %arg4[%c0_21, %c0_22] : memref<1x32xf32, #tpu.memory_space<vmem>>, vector<1x32xf32>
      %30 = vector.shape_cast %29 : vector<1x32xf32> to vector<32xf32>
      %c0_23 = arith.constant 0 : index
      %c0_24 = arith.constant 0 : index
      %31 = vector.load %arg5[%c0_23, %c0_24] : memref<1x32xf32, #tpu.memory_space<vmem>>, vector<1x32xf32>
      %32 = vector.shape_cast %31 : vector<1x32xf32> to vector<32xf32>
      %cst_25 = arith.constant dense<0.000000e+00> : vector<8xf32>
      %33 = vector.multi_reduction <add>, %28, %cst_25 [1] : vector<8x32xf32> to vector<8xf32>
      %34 = vector.shape_cast %33 : vector<8xf32> to vector<8x1xf32>
      %cst_26 = arith.constant 3.200000e+01 : f32
      %35 = vector.broadcast %cst_26 : f32 to vector<8x1xf32>
      %36 = arith.divf %34, %35 : vector<8x1xf32>
      %37 = arith.mulf %28, %28 : vector<8x32xf32>
      %cst_27 = arith.constant dense<0.000000e+00> : vector<8xf32>
      %38 = vector.multi_reduction <add>, %37, %cst_27 [1] : vector<8x32xf32> to vector<8xf32>
      %39 = vector.shape_cast %38 : vector<8xf32> to vector<8x1xf32>
      %cst_28 = arith.constant 3.200000e+01 : f32
      %40 = vector.broadcast %cst_28 : f32 to vector<8x1xf32>
      %41 = arith.divf %39, %40 : vector<8x1xf32>
      %42 = arith.mulf %36, %36 : vector<8x1xf32>
      %43 = arith.subf %41, %42 : vector<8x1xf32>
      %44 = vector.broadcast %36 : vector<8x1xf32> to vector<8x32xf32>
      %45 = arith.subf %28, %44 : vector<8x32xf32>
      %cst_29 = arith.constant 9.99999974E-6 : f32
      %46 = vector.broadcast %cst_29 : f32 to vector<8x1xf32>
      %47 = arith.addf %43, %46 : vector<8x1xf32>
      %48 = math.rsqrt %47 : vector<8x1xf32>
      %49 = vector.broadcast %48 : vector<8x1xf32> to vector<8x32xf32>
      %50 = arith.mulf %45, %49 : vector<8x32xf32>
      %51 = vector.shape_cast %30 : vector<32xf32> to vector<1x32xf32>
      %52 = vector.broadcast %51 : vector<1x32xf32> to vector<8x32xf32>
      %53 = arith.mulf %50, %52 : vector<8x32xf32>
      %54 = vector.shape_cast %32 : vector<32xf32> to vector<1x32xf32>
      %55 = vector.broadcast %54 : vector<1x32xf32> to vector<8x32xf32>
      %56 = arith.addf %53, %55 : vector<8x32xf32>
      %c0_30 = arith.constant 0 : index
      %c0_31 = arith.constant 0 : index
      %c0_32 = arith.constant 0 : index
      %c0_33 = arith.constant 0 : index
      %57 = vector.load %arg3[%c0_30, %c0_31, %c0_32, %c0_33] : memref<1x1x8x8xf32, #tpu.memory_space<vmem>>, vector<1x1x8x8xf32>
      %58 = vector.shape_cast %57 : vector<1x1x8x8xf32> to vector<8x8xf32>
      %c0_34 = arith.constant 0 : index
      %c0_35 = arith.constant 0 : index
      %59 = vector.load %arg6[%c0_34, %c0_35] : memref<32x96xf32, #tpu.memory_space<vmem>>, vector<32x96xf32>
      %cst_36 = arith.constant dense<0.000000e+00> : vector<8x96xf32>
      %60 = tpu.matmul %56, %59, %cst_36 {dimension_numbers = #tpu.dot_dimension_numbers<[1], [0], [0], [1], [0, 0, 1, 1], [], []>} : vector<8x32xf32>, vector<32x96xf32>, vector<8x96xf32> -> vector<8x96xf32>
      %c0_37 = arith.constant 0 : index
      %c0_38 = arith.constant 0 : index
      %61 = vector.load %arg7[%c0_37, %c0_38] : memref<1x96xf32, #tpu.memory_space<vmem>>, vector<1x96xf32>
      %62 = vector.shape_cast %61 : vector<1x96xf32> to vector<96xf32>
      %63 = vector.shape_cast %62 : vector<96xf32> to vector<1x96xf32>
      %64 = vector.broadcast %63 : vector<1x96xf32> to vector<8x96xf32>
      %65 = arith.addf %60, %64 : vector<8x96xf32>
      %66 = vector.extract_strided_slice %65 {offsets = [0, 0], sizes = [8, 32], strides = [1, 1]} : vector<8x96xf32> to vector<8x32xf32>
      %67 = vector.extract_strided_slice %65 {offsets = [0, 32], sizes = [8, 32], strides = [1, 1]} : vector<8x96xf32> to vector<8x32xf32>
      %68 = vector.extract_strided_slice %65 {offsets = [0, 64], sizes = [8, 32], strides = [1, 1]} : vector<8x96xf32> to vector<8x32xf32>
      %69 = vector.shape_cast %66 : vector<8x32xf32> to vector<8x4x8xf32>
      %70 = tpu.transpose %69, [1, 0, 2] : vector<8x4x8xf32> -> vector<4x8x8xf32>
      %71 = vector.shape_cast %67 : vector<8x32xf32> to vector<8x4x8xf32>
      %72 = tpu.transpose %71, [1, 0, 2] : vector<8x4x8xf32> -> vector<4x8x8xf32>
      %73 = vector.shape_cast %68 : vector<8x32xf32> to vector<8x4x8xf32>
      %74 = tpu.transpose %73, [1, 0, 2] : vector<8x4x8xf32> -> vector<4x8x8xf32>
      "tpu.trace_start"() <{level = 10 : i32, message = "htd,hsd->hts"}> : () -> ()
      %cst_39 = arith.constant dense<0.000000e+00> : vector<4x8x8xf32>
      %75 = tpu.matmul %70, %72, %cst_39 {dimension_numbers = #tpu.dot_dimension_numbers<[2], [2], [1], [1], [0, 0, 0, 1, 1, 1], [0], [0]>} : vector<4x8x8xf32>, vector<4x8x8xf32>, vector<4x8x8xf32> -> vector<4x8x8xf32>
      "tpu.trace_stop"() : () -> ()
      %76 = vector.shape_cast %58 : vector<8x8xf32> to vector<1x8x8xf32>
      %77 = vector.broadcast %76 : vector<1x8x8xf32> to vector<4x8x8xf32>
      %78 = arith.addf %75, %77 : vector<4x8x8xf32>
      %cst_40 = arith.constant dense<0xFF800000> : vector<4x8xf32>
      %79 = vector.multi_reduction <maximumf>, %78, %cst_40 [2] : vector<4x8x8xf32> to vector<4x8xf32>
      %80 = vector.shape_cast %79 : vector<4x8xf32> to vector<4x8x1xf32>
      %81 = vector.broadcast %80 : vector<4x8x1xf32> to vector<4x8x8xf32>
      %82 = arith.subf %78, %81 : vector<4x8x8xf32>
      %83 = math.exp %82 : vector<4x8x8xf32>
      %cst_41 = arith.constant dense<0.000000e+00> : vector<4x8xf32>
      %84 = vector.multi_reduction <add>, %83, %cst_41 [2] : vector<4x8x8xf32> to vector<4x8xf32>
      %85 = vector.shape_cast %84 : vector<4x8xf32> to vector<4x8x1xf32>
      "tpu.trace_start"() <{level = 10 : i32, message = "hts,hsd->htd"}> : () -> ()
      %cst_42 = arith.constant dense<0.000000e+00> : vector<4x8x8xf32>
      %86 = tpu.matmul %83, %74, %cst_42 {dimension_numbers = #tpu.dot_dimension_numbers<[2], [1], [1], [2], [0, 0, 0, 1, 1, 2], [0], [0]>} : vector<4x8x8xf32>, vector<4x8x8xf32>, vector<4x8x8xf32> -> vector<4x8x8xf32>
      "tpu.trace_stop"() : () -> ()
      %87 = tpu.reciprocal %85 {approx = true} : vector<4x8x1xf32> -> vector<4x8x1xf32>
      %88 = vector.broadcast %87 : vector<4x8x1xf32> to vector<4x8x8xf32>
      %89 = arith.mulf %86, %88 : vector<4x8x8xf32>
      %90 = tpu.transpose %89, [1, 0, 2] : vector<4x8x8xf32> -> vector<8x4x8xf32>
      %91 = vector.shape_cast %90 : vector<8x4x8xf32> to vector<8x32xf32>
      %c0_43 = arith.constant 0 : index
      %c0_44 = arith.constant 0 : index
      %92 = vector.load %arg8[%c0_43, %c0_44] : memref<32x32xf32, #tpu.memory_space<vmem>>, vector<32x32xf32>
      %cst_45 = arith.constant dense<0.000000e+00> : vector<8x32xf32>
      %93 = tpu.matmul %91, %92, %cst_45 {dimension_numbers = #tpu.dot_dimension_numbers<[1], [0], [0], [1], [0, 0, 1, 1], [], []>} : vector<8x32xf32>, vector<32x32xf32>, vector<8x32xf32> -> vector<8x32xf32>
      %c0_46 = arith.constant 0 : index
      %c0_47 = arith.constant 0 : index
      %94 = vector.load %arg9[%c0_46, %c0_47] : memref<1x32xf32, #tpu.memory_space<vmem>>, vector<1x32xf32>
      %95 = vector.shape_cast %94 : vector<1x32xf32> to vector<32xf32>
      %96 = vector.shape_cast %95 : vector<32xf32> to vector<1x32xf32>
      %97 = vector.broadcast %96 : vector<1x32xf32> to vector<8x32xf32>
      %98 = arith.addf %93, %97 : vector<8x32xf32>
      %c0_48 = arith.constant 0 : index
      %c0_49 = arith.constant 0 : index
      %c0_50 = arith.constant 0 : index
      %99 = vector.load %arg23[%c0_48, %c0_49, %c0_50] : memref<1x8x32xf32, #tpu.memory_space<vmem>>, vector<1x8x32xf32>
      %100 = vector.shape_cast %99 : vector<1x8x32xf32> to vector<8x32xf32>
      %101 = vector.shape_cast %67 : vector<8x32xf32> to vector<1x8x32xf32>
      tpu.vector_store %arg23[%c0_48, %c0_49, %c0_50], %101 {strides = array<i32>} : memref<1x8x32xf32, #tpu.memory_space<vmem>>, vector<1x8x32xf32>,
      %c0_51 = arith.constant 0 : index
      %c0_52 = arith.constant 0 : index
      %c0_53 = arith.constant 0 : index
      %102 = vector.load %arg24[%c0_51, %c0_52, %c0_53] : memref<1x8x32xf32, #tpu.memory_space<vmem>>, vector<1x8x32xf32>
      %103 = vector.shape_cast %102 : vector<1x8x32xf32> to vector<8x32xf32>
      %104 = vector.shape_cast %68 : vector<8x32xf32> to vector<1x8x32xf32>
      tpu.vector_store %arg24[%c0_51, %c0_52, %c0_53], %104 {strides = array<i32>} : memref<1x8x32xf32, #tpu.memory_space<vmem>>, vector<1x8x32xf32>,
      %105 = arith.addf %28, %98 : vector<8x32xf32>
      %c0_54 = arith.constant 0 : index
      %c0_55 = arith.constant 0 : index
      %106 = vector.load %arg10[%c0_54, %c0_55] : memref<1x32xf32, #tpu.memory_space<vmem>>, vector<1x32xf32>
      %107 = vector.shape_cast %106 : vector<1x32xf32> to vector<32xf32>
      %c0_56 = arith.constant 0 : index
      %c0_57 = arith.constant 0 : index
      %108 = vector.load %arg11[%c0_56, %c0_57] : memref<1x32xf32, #tpu.memory_space<vmem>>, vector<1x32xf32>
      %109 = vector.shape_cast %108 : vector<1x32xf32> to vector<32xf32>
      %cst_58 = arith.constant dense<0.000000e+00> : vector<8xf32>
      %110 = vector.multi_reduction <add>, %105, %cst_58 [1] : vector<8x32xf32> to vector<8xf32>
      %111 = vector.shape_cast %110 : vector<8xf32> to vector<8x1xf32>
      %cst_59 = arith.constant 3.200000e+01 : f32
      %112 = vector.broadcast %cst_59 : f32 to vector<8x1xf32>
      %113 = arith.divf %111, %112 : vector<8x1xf32>
      %114 = arith.mulf %105, %105 : vector<8x32xf32>
      %cst_60 = arith.constant dense<0.000000e+00> : vector<8xf32>
      %115 = vector.multi_reduction <add>, %114, %cst_60 [1] : vector<8x32xf32> to vector<8xf32>
      %116 = vector.shape_cast %115 : vector<8xf32> to vector<8x1xf32>
      %cst_61 = arith.constant 3.200000e+01 : f32
      %117 = vector.broadcast %cst_61 : f32 to vector<8x1xf32>
      %118 = arith.divf %116, %117 : vector<8x1xf32>
      %119 = arith.mulf %113, %113 : vector<8x1xf32>
      %120 = arith.subf %118, %119 : vector<8x1xf32>
      %121 = vector.broadcast %113 : vector<8x1xf32> to vector<8x32xf32>
      %122 = arith.subf %105, %121 : vector<8x32xf32>
      %cst_62 = arith.constant 9.99999974E-6 : f32
      %123 = vector.broadcast %cst_62 : f32 to vector<8x1xf32>
      %124 = arith.addf %120, %123 : vector<8x1xf32>
      %125 = math.rsqrt %124 : vector<8x1xf32>
      %126 = vector.broadcast %125 : vector<8x1xf32> to vector<8x32xf32>
      %127 = arith.mulf %122, %126 : vector<8x32xf32>
      %128 = vector.shape_cast %107 : vector<32xf32> to vector<1x32xf32>
      %129 = vector.broadcast %128 : vector<1x32xf32> to vector<8x32xf32>
      %130 = arith.mulf %127, %129 : vector<8x32xf32>
      %131 = vector.shape_cast %109 : vector<32xf32> to vector<1x32xf32>
      %132 = vector.broadcast %131 : vector<1x32xf32> to vector<8x32xf32>
      %133 = arith.addf %130, %132 : vector<8x32xf32>
      %c0_63 = arith.constant 0 : index
      %c0_64 = arith.constant 0 : index
      %134 = vector.load %arg12[%c0_63, %c0_64] : memref<32x96xf32, #tpu.memory_space<vmem>>, vector<32x96xf32>
      %cst_65 = arith.constant dense<0.000000e+00> : vector<8x96xf32>
      %135 = tpu.matmul %133, %134, %cst_65 {dimension_numbers = #tpu.dot_dimension_numbers<[1], [0], [0], [1], [0, 0, 1, 1], [], []>} : vector<8x32xf32>, vector<32x96xf32>, vector<8x96xf32> -> vector<8x96xf32>
      %c0_66 = arith.constant 0 : index
      %c0_67 = arith.constant 0 : index
      %136 = vector.load %arg13[%c0_66, %c0_67] : memref<1x96xf32, #tpu.memory_space<vmem>>, vector<1x96xf32>
      %137 = vector.shape_cast %136 : vector<1x96xf32> to vector<96xf32>
      %138 = vector.shape_cast %137 : vector<96xf32> to vector<1x96xf32>
      %139 = vector.broadcast %138 : vector<1x96xf32> to vector<8x96xf32>
      %140 = arith.addf %135, %139 : vector<8x96xf32>
      %141 = vector.extract_strided_slice %140 {offsets = [0, 0], sizes = [8, 32], strides = [1, 1]} : vector<8x96xf32> to vector<8x32xf32>
      %142 = vector.extract_strided_slice %140 {offsets = [0, 32], sizes = [8, 32], strides = [1, 1]} : vector<8x96xf32> to vector<8x32xf32>
      %143 = vector.extract_strided_slice %140 {offsets = [0, 64], sizes = [8, 32], strides = [1, 1]} : vector<8x96xf32> to vector<8x32xf32>
      %144 = vector.shape_cast %141 : vector<8x32xf32> to vector<8x4x8xf32>
      %145 = tpu.transpose %144, [1, 0, 2] : vector<8x4x8xf32> -> vector<4x8x8xf32>
      %146 = vector.shape_cast %142 : vector<8x32xf32> to vector<8x4x8xf32>
      %147 = tpu.transpose %146, [1, 0, 2] : vector<8x4x8xf32> -> vector<4x8x8xf32>
      %148 = vector.shape_cast %143 : vector<8x32xf32> to vector<8x4x8xf32>
      %149 = tpu.transpose %148, [1, 0, 2] : vector<8x4x8xf32> -> vector<4x8x8xf32>
      "tpu.trace_start"() <{level = 10 : i32, message = "htd,hsd->hts"}> : () -> ()
      %cst_68 = arith.constant dense<0.000000e+00> : vector<4x8x8xf32>
      %150 = tpu.matmul %145, %147, %cst_68 {dimension_numbers = #tpu.dot_dimension_numbers<[2], [2], [1], [1], [0, 0, 0, 1, 1, 1], [0], [0]>} : vector<4x8x8xf32>, vector<4x8x8xf32>, vector<4x8x8xf32> -> vector<4x8x8xf32>
      "tpu.trace_stop"() : () -> ()
      %cst_69 = arith.constant dense<0xFF800000> : vector<4x8xf32>
      %151 = vector.multi_reduction <maximumf>, %150, %cst_69 [2] : vector<4x8x8xf32> to vector<4x8xf32>
      %152 = vector.shape_cast %151 : vector<4x8xf32> to vector<4x8x1xf32>
      %153 = vector.broadcast %152 : vector<4x8x1xf32> to vector<4x8x8xf32>
      %154 = arith.subf %150, %153 : vector<4x8x8xf32>
      %155 = math.exp %154 : vector<4x8x8xf32>
      %cst_70 = arith.constant dense<0.000000e+00> : vector<4x8xf32>
      %156 = vector.multi_reduction <add>, %155, %cst_70 [2] : vector<4x8x8xf32> to vector<4x8xf32>
      %157 = vector.shape_cast %156 : vector<4x8xf32> to vector<4x8x1xf32>
      "tpu.trace_start"() <{level = 10 : i32, message = "hts,hsd->htd"}> : () -> ()
      %cst_71 = arith.constant dense<0.000000e+00> : vector<4x8x8xf32>
      %158 = tpu.matmul %155, %149, %cst_71 {dimension_numbers = #tpu.dot_dimension_numbers<[2], [1], [1], [2], [0, 0, 0, 1, 1, 2], [0], [0]>} : vector<4x8x8xf32>, vector<4x8x8xf32>, vector<4x8x8xf32> -> vector<4x8x8xf32>
      "tpu.trace_stop"() : () -> ()
      %159 = tpu.reciprocal %157 {approx = true} : vector<4x8x1xf32> -> vector<4x8x1xf32>
      %160 = vector.broadcast %159 : vector<4x8x1xf32> to vector<4x8x8xf32>
      %161 = arith.mulf %158, %160 : vector<4x8x8xf32>
      %162 = tpu.transpose %161, [1, 0, 2] : vector<4x8x8xf32> -> vector<8x4x8xf32>
      %163 = vector.shape_cast %162 : vector<8x4x8xf32> to vector<8x32xf32>
      %c0_72 = arith.constant 0 : index
      %c0_73 = arith.constant 0 : index
      %164 = vector.load %arg14[%c0_72, %c0_73] : memref<32x32xf32, #tpu.memory_space<vmem>>, vector<32x32xf32>
      %cst_74 = arith.constant dense<0.000000e+00> : vector<8x32xf32>
      %165 = tpu.matmul %163, %164, %cst_74 {dimension_numbers = #tpu.dot_dimension_numbers<[1], [0], [0], [1], [0, 0, 1, 1], [], []>} : vector<8x32xf32>, vector<32x32xf32>, vector<8x32xf32> -> vector<8x32xf32>
      %c0_75 = arith.constant 0 : index
      %c0_76 = arith.constant 0 : index
      %166 = vector.load %arg15[%c0_75, %c0_76] : memref<1x32xf32, #tpu.memory_space<vmem>>, vector<1x32xf32>
      %167 = vector.shape_cast %166 : vector<1x32xf32> to vector<32xf32>
      %168 = vector.shape_cast %167 : vector<32xf32> to vector<1x32xf32>
      %169 = vector.broadcast %168 : vector<1x32xf32> to vector<8x32xf32>
      %170 = arith.addf %165, %169 : vector<8x32xf32>
      %171 = arith.addf %105, %170 : vector<8x32xf32>
      %c0_77 = arith.constant 0 : index
      %c0_78 = arith.constant 0 : index
      %172 = vector.load %arg18[%c0_77, %c0_78] : memref<1x32xf32, #tpu.memory_space<vmem>>, vector<1x32xf32>
      %173 = vector.shape_cast %172 : vector<1x32xf32> to vector<32xf32>
      %174 = vector.shape_cast %173 : vector<32xf32> to vector<1x32xf32>
      %175 = vector.broadcast %174 : vector<1x32xf32> to vector<8x32xf32>
      %176 = arith.addf %171, %175 : vector<8x32xf32>
      %c0_79 = arith.constant 0 : index
      %c0_80 = arith.constant 0 : index
      %c0_81 = arith.constant 0 : index
      %177 = vector.load %arg22[%c0_79, %c0_80, %c0_81] : memref<1x8x32xf32, #tpu.memory_space<vmem>>, vector<1x8x32xf32>
      %178 = vector.shape_cast %177 : vector<1x8x32xf32> to vector<8x32xf32>
      %179 = vector.shape_cast %176 : vector<8x32xf32> to vector<1x8x32xf32>
      tpu.vector_store %arg22[%c0_79, %c0_80, %c0_81], %179 {strides = array<i32>} : memref<1x8x32xf32, #tpu.memory_space<vmem>>, vector<1x8x32xf32>,
      %c0_82 = arith.constant 0 : index
      %c0_83 = arith.constant 0 : index
      %180 = vector.load %arg16[%c0_82, %c0_83] : memref<1x32xf32, #tpu.memory_space<vmem>>, vector<1x32xf32>
      %181 = vector.shape_cast %180 : vector<1x32xf32> to vector<32xf32>
      %c0_84 = arith.constant 0 : index
      %c0_85 = arith.constant 0 : index
      %182 = vector.load %arg17[%c0_84, %c0_85] : memref<1x32xf32, #tpu.memory_space<vmem>>, vector<1x32xf32>
      %183 = vector.shape_cast %182 : vector<1x32xf32> to vector<32xf32>
      %cst_86 = arith.constant dense<0.000000e+00> : vector<8xf32>
      %184 = vector.multi_reduction <add>, %171, %cst_86 [1] : vector<8x32xf32> to vector<8xf32>
      %185 = vector.shape_cast %184 : vector<8xf32> to vector<8x1xf32>
      %cst_87 = arith.constant 3.200000e+01 : f32
      %186 = vector.broadcast %cst_87 : f32 to vector<8x1xf32>
      %187 = arith.divf %185, %186 : vector<8x1xf32>
      %188 = arith.mulf %171, %171 : vector<8x32xf32>
      %cst_88 = arith.constant dense<0.000000e+00> : vector<8xf32>
      %189 = vector.multi_reduction <add>, %188, %cst_88 [1] : vector<8x32xf32> to vector<8xf32>
      %190 = vector.shape_cast %189 : vector<8xf32> to vector<8x1xf32>
      %cst_89 = arith.constant 3.200000e+01 : f32
      %191 = vector.broadcast %cst_89 : f32 to vector<8x1xf32>
      %192 = arith.divf %190, %191 : vector<8x1xf32>
      %193 = arith.mulf %187, %187 : vector<8x1xf32>
      %194 = arith.subf %192, %193 : vector<8x1xf32>
      %195 = vector.broadcast %187 : vector<8x1xf32> to vector<8x32xf32>
      %196 = arith.subf %171, %195 : vector<8x32xf32>
      %cst_90 = arith.constant 9.99999974E-6 : f32
      %197 = vector.broadcast %cst_90 : f32 to vector<8x1xf32>
      %198 = arith.addf %194, %197 : vector<8x1xf32>
      %199 = math.rsqrt %198 : vector<8x1xf32>
      %200 = vector.broadcast %199 : vector<8x1xf32> to vector<8x32xf32>
      %201 = arith.mulf %196, %200 : vector<8x32xf32>
      %202 = vector.shape_cast %181 : vector<32xf32> to vector<1x32xf32>
      %203 = vector.broadcast %202 : vector<1x32xf32> to vector<8x32xf32>
      %204 = arith.mulf %201, %203 : vector<8x32xf32>
      %205 = vector.shape_cast %183 : vector<32xf32> to vector<1x32xf32>
      %206 = vector.broadcast %205 : vector<1x32xf32> to vector<8x32xf32>
      %207 = arith.addf %204, %206 : vector<8x32xf32>
      %c0_91 = arith.constant 0 : index
      %c0_92 = arith.constant 0 : index
      %208 = vector.load %arg25[%c0_91, %c0_92] : memref<8x32xf32, #tpu.memory_space<vmem>>, vector<8x32xf32>
      tpu.vector_store %arg25[%c0_91, %c0_92], %207 {strides = array<i32>} : memref<8x32xf32, #tpu.memory_space<vmem>>, vector<8x32xf32>,
    } else {
    }
    %c0 = arith.constant 0 : index
    %c0_1 = arith.constant 0 : index
    %3 = vector.load %arg25[%c0, %c0_1] : memref<8x32xf32, #tpu.memory_space<vmem>>, vector<8x32xf32>
    %c0_2 = arith.constant 0 : index
    %c0_3 = arith.constant 0 : index
    %4 = vector.load %arg19[%c0_2, %c0_3] : memref<32x128xf32, #tpu.memory_space<vmem>>, vector<32x128xf32>
    %cst = arith.constant dense<0.000000e+00> : vector<8x128xf32>
    %5 = tpu.matmul %3, %4, %cst {dimension_numbers = #tpu.dot_dimension_numbers<[1], [0], [0], [1], [0, 0, 1, 1], [], []>} : vector<8x32xf32>, vector<32x128xf32>, vector<8x128xf32> -> vector<8x128xf32>
    %c0_4 = arith.constant 0 : index
    %c0_5 = arith.constant 0 : index
    %6 = vector.load %arg20[%c0_4, %c0_5] : memref<1x128xf32, #tpu.memory_space<vmem>>, vector<1x128xf32>
    %7 = vector.shape_cast %6 : vector<1x128xf32> to vector<128xf32>
    %8 = vector.shape_cast %7 : vector<128xf32> to vector<1x128xf32>
    %9 = vector.broadcast %8 : vector<1x128xf32> to vector<8x128xf32>
    %10 = arith.addf %5, %9 : vector<8x128xf32>
    %cst_6 = arith.constant 5.000000e-01 : f32
    %11 = vector.broadcast %cst_6 : f32 to vector<8x128xf32>
    %12 = arith.mulf %11, %10 : vector<8x128xf32>
    %cst_7 = arith.constant 0.707106769 : f32
    %13 = vector.broadcast %cst_7 : f32 to vector<8x128xf32>
    %14 = arith.mulf %10, %13 : vector<8x128xf32>
    %15 = math.erf %14 : vector<8x128xf32>
    %cst_8 = arith.constant 1.000000e+00 : f32
    %16 = vector.broadcast %cst_8 : f32 to vector<8x128xf32>
    %17 = arith.addf %16, %15 : vector<8x128xf32>
    %18 = arith.mulf %12, %17 : vector<8x128xf32>
    %c0_9 = arith.constant 0 : index
    %c0_10 = arith.constant 0 : index
    %c0_11 = arith.constant 0 : index
    %19 = vector.load %arg22[%c0_9, %c0_10, %c0_11] : memref<1x8x32xf32, #tpu.memory_space<vmem>>, vector<1x8x32xf32>
    %20 = vector.shape_cast %19 : vector<1x8x32xf32> to vector<8x32xf32>
    %c0_12 = arith.constant 0 : index
    %c0_13 = arith.constant 0 : index
    %21 = vector.load %arg21[%c0_12, %c0_13] : memref<128x32xf32, #tpu.memory_space<vmem>>, vector<128x32xf32>
    %cst_14 = arith.constant dense<0.000000e+00> : vector<8x32xf32>
    %22 = tpu.matmul %18, %21, %cst_14 {dimension_numbers = #tpu.dot_dimension_numbers<[1], [0], [0], [1], [0, 0, 1, 1], [], []>} : vector<8x128xf32>, vector<128x32xf32>, vector<8x32xf32> -> vector<8x32xf32>
    %23 = arith.addf %20, %22 : vector<8x32xf32>
    %c0_15 = arith.constant 0 : index
    %c0_16 = arith.constant 0 : index
    %c0_17 = arith.constant 0 : index
    %24 = vector.load %arg22[%c0_15, %c0_16, %c0_17] : memref<1x8x32xf32, #tpu.memory_space<vmem>>, vector<1x8x32xf32>
    %25 = vector.shape_cast %24 : vector<1x8x32xf32> to vector<8x32xf32>
    %26 = vector.shape_cast %23 : vector<8x32xf32> to vector<1x8x32xf32>
    tpu.vector_store %arg22[%c0_15, %c0_16, %c0_17], %26 {strides = array<i32>} : memref<1x8x32xf32, #tpu.memory_space<vmem>>, vector<1x8x32xf32>,
    return
  }
  func.func @transform_0(%arg0: i32, %arg1: i32) -> (i32, i32, i32) {
    %c0_i32 = arith.constant 0 : i32
    %c0_i32_0 = arith.constant 0 : i32
    %c0_i32_1 = arith.constant 0 : i32
    return %arg0, %c0_i32, %c0_i32_0 : i32, i32, i32
  }
  func.func @transform_1(%arg0: i32, %arg1: i32) -> (i32, i32, i32, i32) {
    %c0_i32 = arith.constant 0 : i32
    %c0_i32_0 = arith.constant 0 : i32
    %c0_i32_1 = arith.constant 0 : i32
    %c0_i32_2 = arith.constant 0 : i32
    %c0_i32_3 = arith.constant 0 : i32
    return %c0_i32, %c0_i32_0, %c0_i32_1, %c0_i32_2 : i32, i32, i32, i32
  }
  func.func @transform_2(%arg0: i32, %arg1: i32) -> (i32, i32) {
    %c0_i32 = arith.constant 0 : i32
    %c0_i32_0 = arith.constant 0 : i32
    %c0_i32_1 = arith.constant 0 : i32
    return %c0_i32, %c0_i32_0 : i32, i32
  }
  func.func @transform_3(%arg0: i32, %arg1: i32) -> (i32, i32) {
    %c0_i32 = arith.constant 0 : i32
    %c0_i32_0 = arith.constant 0 : i32
    %c0_i32_1 = arith.constant 0 : i32
    return %c0_i32, %c0_i32_0 : i32, i32
  }
  func.func @transform_4(%arg0: i32, %arg1: i32) -> (i32, i32) {
    %c0_i32 = arith.constant 0 : i32
    %c0_i32_0 = arith.constant 0 : i32
    %c0_i32_1 = arith.constant 0 : i32
    return %c0_i32, %c0_i32_0 : i32, i32
  }
  func.func @transform_5(%arg0: i32, %arg1: i32) -> (i32, i32) {
    %c0_i32 = arith.constant 0 : i32
    %c0_i32_0 = arith.constant 0 : i32
    %c0_i32_1 = arith.constant 0 : i32
    return %c0_i32, %c0_i32_0 : i32, i32
  }
  func.func @transform_6(%arg0: i32, %arg1: i32) -> (i32, i32) {
    %c0_i32 = arith.constant 0 : i32
    %c0_i32_0 = arith.constant 0 : i32
    %c0_i32_1 = arith.constant 0 : i32
    return %c0_i32, %c0_i32_0 : i32, i32
  }
  func.func @transform_7(%arg0: i32, %arg1: i32) -> (i32, i32) {
    %c0_i32 = arith.constant 0 : i32
    %c0_i32_0 = arith.constant 0 : i32
    %c0_i32_1 = arith.constant 0 : i32
    return %c0_i32, %c0_i32_0 : i32, i32
  }
  func.func @transform_8(%arg0: i32, %arg1: i32) -> (i32, i32) {
    %c0_i32 = arith.constant 0 : i32
    %c0_i32_0 = arith.constant 0 : i32
    %c0_i32_1 = arith.constant 0 : i32
    return %c0_i32, %c0_i32_0 : i32, i32
  }
  func.func @transform_9(%arg0: i32, %arg1: i32) -> (i32, i32) {
    %c0_i32 = arith.constant 0 : i32
    %c0_i32_0 = arith.constant 0 : i32
    %c0_i32_1 = arith.constant 0 : i32
    return %c0_i32, %c0_i32_0 : i32, i32
  }
  func.func @transform_10(%arg0: i32, %arg1: i32) -> (i32, i32) {
    %c0_i32 = arith.constant 0 : i32
    %c0_i32_0 = arith.constant 0 : i32
    %c0_i32_1 = arith.constant 0 : i32
    return %c0_i32, %c0_i32_0 : i32, i32
  }
  func.func @transform_11(%arg0: i32, %arg1: i32) -> (i32, i32) {
    %c0_i32 = arith.constant 0 : i32
    %c0_i32_0 = arith.constant 0 : i32
    %c0_i32_1 = arith.constant 0 : i32
    return %c0_i32, %c0_i32_0 : i32, i32
  }
  func.func @transform_12(%arg0: i32, %arg1: i32) -> (i32, i32) {
    %c0_i32 = arith.constant 0 : i32
    %c0_i32_0 = arith.constant 0 : i32
    %c0_i32_1 = arith.constant 0 : i32
    return %c0_i32, %c0_i32_0 : i32, i32
  }
  func.func @transform_13(%arg0: i32, %arg1: i32) -> (i32, i32) {
    %c0_i32 = arith.constant 0 : i32
    %c0_i32_0 = arith.constant 0 : i32
    %c0_i32_1 = arith.constant 0 : i32
    return %c0_i32, %c0_i32_0 : i32, i32
  }
  func.func @transform_14(%arg0: i32, %arg1: i32) -> (i32, i32) {
    %c0_i32 = arith.constant 0 : i32
    %c0_i32_0 = arith.constant 0 : i32
    %c0_i32_1 = arith.constant 0 : i32
    return %c0_i32, %c0_i32_0 : i32, i32
  }
  func.func @transform_15(%arg0: i32, %arg1: i32) -> (i32, i32) {
    %c0_i32 = arith.constant 0 : i32
    %c0_i32_0 = arith.constant 0 : i32
    %c0_i32_1 = arith.constant 0 : i32
    return %c0_i32, %c0_i32_0 : i32, i32
  }
  func.func @transform_16(%arg0: i32, %arg1: i32) -> (i32, i32) {
    %c0_i32 = arith.constant 0 : i32
    %c0_i32_0 = arith.constant 0 : i32
    %c0_i32_1 = arith.constant 0 : i32
    return %c0_i32, %c0_i32_0 : i32, i32
  }
  func.func @transform_17(%arg0: i32, %arg1: i32) -> (i32, i32) {
    %c0_i32 = arith.constant 0 : i32
    %c0_i32_0 = arith.constant 0 : i32
    return %c0_i32, %arg1 : i32, i32
  }
  func.func @transform_18(%arg0: i32, %arg1: i32) -> (i32, i32) {
    %c0_i32 = arith.constant 0 : i32
    %c0_i32_0 = arith.constant 0 : i32
    return %c0_i32, %arg1 : i32, i32
  }
  func.func @transform_19(%arg0: i32, %arg1: i32) -> (i32, i32) {
    %c0_i32 = arith.constant 0 : i32
    %c0_i32_0 = arith.constant 0 : i32
    return %arg1, %c0_i32 : i32, i32
  }
  func.func @transform_20(%arg0: i32, %arg1: i32) -> (i32, i32, i32) {
    %c0_i32 = arith.constant 0 : i32
    %c0_i32_0 = arith.constant 0 : i32
    %c0_i32_1 = arith.constant 0 : i32
    return %arg0, %c0_i32, %c0_i32_0 : i32, i32, i32
  }
  func.func @transform_21(%arg0: i32, %arg1: i32) -> (i32, i32, i32) {
    %c0_i32 = arith.constant 0 : i32
    %c0_i32_0 = arith.constant 0 : i32
    %c0_i32_1 = arith.constant 0 : i32
    return %arg0, %c0_i32, %c0_i32_0 : i32, i32, i32
  }
  func.func @transform_22(%arg0: i32, %arg1: i32) -> (i32, i32, i32) {
    %c0_i32 = arith.constant 0 : i32
    %c0_i32_0 = arith.constant 0 : i32
    %c0_i32_1 = arith.constant 0 : i32
    return %arg0, %c0_i32, %c0_i32_0 : i32, i32, i32
  }
}

module attributes {stable_mosaic.version = 11 : i64} {
  func.func @decoder_layer_kernel(%arg0: i32, %arg1: i32, %arg2: memref<1x8x32xf32, #tpu.memory_space<vmem>>, %arg3: memref<1x1x8x8xf32, #tpu.memory_space<vmem>>, %arg4: memref<1x32xf32, #tpu.memory_space<vmem>>, %arg5: memref<1x32xf32, #tpu.memory_space<vmem>>, %arg6: memref<32x96xf32, #tpu.memory_space<vmem>>, %arg7: memref<1x96xf32, #tpu.memory_space<vmem>>, %arg8: memref<32x32xf32, #tpu.memory_space<vmem>>, %arg9: memref<1x32xf32, #tpu.memory_space<vmem>>, %arg10: memref<1x32xf32, #tpu.memory_space<vmem>>, %arg11: memref<1x32xf32, #tpu.memory_space<vmem>>, %arg12: memref<32x96xf32, #tpu.memory_space<vmem>>, %arg13: memref<1x96xf32, #tpu.memory_space<vmem>>, %arg14: memref<32x32xf32, #tpu.memory_space<vmem>>, %arg15: memref<1x32xf32, #tpu.memory_space<vmem>>, %arg16: memref<1x32xf32, #tpu.memory_space<vmem>>, %arg17: memref<1x32xf32, #tpu.memory_space<vmem>>, %arg18: memref<1x32xf32, #tpu.memory_space<vmem>>, %arg19: memref<32x128xf32, #tpu.memory_space<vmem>>, %arg20: memref<1x128xf32, #tpu.memory_space<vmem>>, %arg21: memref<128x32xf32, #tpu.memory_space<vmem>>, %arg22: memref<1x8x32xf32, #tpu.memory_space<vmem>>, %arg23: memref<1x8x32xf32, #tpu.memory_space<vmem>>, %arg24: memref<1x8x32xf32, #tpu.memory_space<vmem>>, %arg25: memref<8x32xf32, #tpu.memory_space<vmem>>) attributes {dimension_semantics = [#tpu.dimension_semantics<parallel>, #tpu.dimension_semantics<arbitrary>], iteration_bounds = array<i64: 2, 2>, scalar_prefetch = 0 : i64, scratch_operands = 1 : i64, tpu.core_type = #tpu.core_type<tc>, window_params = [{transform_indices = @transform_0, window_bounds = array<i64: 1, 8, 32>}, {pipeline_mode = #tpu.pipeline_mode<synchronous>, transform_indices = @transform_1, window_bounds = array<i64: 1, 1, 8, 8>}, {pipeline_mode = #tpu.pipeline_mode<synchronous>, transform_indices = @transform_2, window_bounds = array<i64: 1, 32>}, {pipeline_mode = #tpu.pipeline_mode<synchronous>, transform_indices = @transform_3, window_bounds = array<i64: 1, 32>}, {pipeline_mode = #tpu.pipeline_mode<synchronous>, transform_indices = @transform_4, window_bounds = array<i64: 32, 96>}, {pipeline_mode = #tpu.pipeline_mode<synchronous>, transform_indices = @transform_5, window_bounds = array<i64: 1, 96>}, {pipeline_mode = #tpu.pipeline_mode<synchronous>, transform_indices = @transform_6, window_bounds = array<i64: 32, 32>}, {pipeline_mode = #tpu.pipeline_mode<synchronous>, transform_indices = @transform_7, window_bounds = array<i64: 1, 32>}, {pipeline_mode = #tpu.pipeline_mode<synchronous>, transform_indices = @transform_8, window_bounds = array<i64: 1, 32>}, {pipeline_mode = #tpu.pipeline_mode<synchronous>, transform_indices = @transform_9, window_bounds = array<i64: 1, 32>}, {pipeline_mode = #tpu.pipeline_mode<synchronous>, transform_indices = @transform_10, window_bounds = array<i64: 32, 96>}, {pipeline_mode = #tpu.pipeline_mode<synchronous>, transform_indices = @transform_11, window_bounds = array<i64: 1, 96>}, {pipeline_mode = #tpu.pipeline_mode<synchronous>, transform_indices = @transform_12, window_bounds = array<i64: 32, 32>}, {pipeline_mode = #tpu.pipeline_mode<synchronous>, transform_indices = @transform_13, window_bounds = array<i64: 1, 32>}, {pipeline_mode = #tpu.pipeline_mode<synchronous>, transform_indices = @transform_14, window_bounds = array<i64: 1, 32>}, {pipeline_mode = #tpu.pipeline_mode<synchronous>, transform_indices = @transform_15, window_bounds = array<i64: 1, 32>}, {pipeline_mode = #tpu.pipeline_mode<synchronous>, transform_indices = @transform_16, window_bounds = array<i64: 1, 32>}, {transform_indices = @transform_17, window_bounds = array<i64: 32, 128>}, {transform_indices = @transform_18, window_bounds = array<i64: 1, 128>}, {transform_indices = @transform_19, window_bounds = array<i64: 128, 32>}, {transform_indices = @transform_20, window_bounds = array<i64: 1, 8, 32>}, {transform_indices = @transform_21, window_bounds = array<i64: 1, 8, 32>}, {transform_indices = @transform_22, window_bounds = array<i64: 1, 8, 32>}]} {
    %c0_i32 = arith.constant 0 : i32
    %0 = arith.cmpi eq, %arg1, %c0_i32 : i32
    %1 = arith.extui %0 : i1 to i32
    %c0_i32_0 = arith.constant 0 : i32
    %2 = arith.cmpi ne, %1, %c0_i32_0 : i32
    scf.if %2 {
      %c0_18 = arith.constant 0 : index
      %c0_19 = arith.constant 0 : index
      %c0_20 = arith.constant 0 : index
      %27 = vector.load %arg2[%c0_18, %c0_19, %c0_20] : memref<1x8x32xf32, #tpu.memory_space<vmem>>, vector<1x8x32xf32>
      %28 = vector.shape_cast %27 : vector<1x8x32xf32> to vector<8x32xf32>
      %c0_21 = arith.constant 0 : index
      %c0_22 = arith.constant 0 : index
      %29 = vector.load %arg4[%c0_21, %c0_22] : memref<1x32xf32, #tpu.memory_space<vmem>>, vector<1x32xf32>
      %30 = vector.shape_cast %29 : vector<1x32xf32> to vector<32xf32>
      %c0_23 = arith.constant 0 : index
      %c0_24 = arith.constant 0 : index
      %31 = vector.load %arg5[%c0_23, %c0_24] : memref<1x32xf32, #tpu.memory_space<vmem>>, vector<1x32xf32>
      %32 = vector.shape_cast %31 : vector<1x32xf32> to vector<32xf32>
      %cst_25 = arith.constant dense<0.000000e+00> : vector<8xf32>
      %33 = vector.multi_reduction <add>, %28, %cst_25 [1] : vector<8x32xf32> to vector<8xf32>
      %34 = vector.shape_cast %33 : vector<8xf32> to vector<8x1xf32>
      %cst_26 = arith.constant 3.200000e+01 : f32
      %35 = vector.broadcast %cst_26 : f32 to vector<8x1xf32>
      %36 = arith.divf %34, %35 : vector<8x1xf32>
      %37 = arith.mulf %28, %28 : vector<8x32xf32>
      %cst_27 = arith.constant dense<0.000000e+00> : vector<8xf32>
      %38 = vector.multi_reduction <add>, %37, %cst_27 [1] : vector<8x32xf32> to vector<8xf32>
      %39 = vector.shape_cast %38 : vector<8xf32> to vector<8x1xf32>
      %cst_28 = arith.constant 3.200000e+01 : f32
      %40 = vector.broadcast %cst_28 : f32 to vector<8x1xf32>
      %41 = arith.divf %39, %40 : vector<8x1xf32>
      %42 = arith.mulf %36, %36 : vector<8x1xf32>
      %43 = arith.subf %41, %42 : vector<8x1xf32>
      %44 = vector.broadcast %36 : vector<8x1xf32> to vector<8x32xf32>
      %45 = arith.subf %28, %44 : vector<8x32xf32>
      %cst_29 = arith.constant 9.99999974E-6 : f32
      %46 = vector.broadcast %cst_29 : f32 to vector<8x1xf32>
      %47 = arith.addf %43, %46 : vector<8x1xf32>
      %48 = math.rsqrt %47 : vector<8x1xf32>
      %49 = vector.broadcast %48 : vector<8x1xf32> to vector<8x32xf32>
      %50 = arith.mulf %45, %49 : vector<8x32xf32>
      %51 = vector.shape_cast %30 : vector<32xf32> to vector<1x32xf32>
      %52 = vector.broadcast %51 : vector<1x32xf32> to vector<8x32xf32>
      %53 = arith.mulf %50, %52 : vector<8x32xf32>
      %54 = vector.shape_cast %32 : vector<32xf32> to vector<1x32xf32>
      %55 = vector.broadcast %54 : vector<1x32xf32> to vector<8x32xf32>
      %56 = arith.addf %53, %55 : vector<8x32xf32>
      %c0_30 = arith.constant 0 : index
      %c0_31 = arith.constant 0 : index
      %c0_32 = arith.constant 0 : index
      %c0_33 = arith.constant 0 : index
      %57 = vector.load %arg3[%c0_30, %c0_31, %c0_32, %c0_33] : memref<1x1x8x8xf32, #tpu.memory_space<vmem>>, vector<1x1x8x8xf32>
      %58 = vector.shape_cast %57 : vector<1x1x8x8xf32> to vector<8x8xf32>
      %c0_34 = arith.constant 0 : index
      %c0_35 = arith.constant 0 : index
      %59 = vector.load %arg6[%c0_34, %c0_35] : memref<32x96xf32, #tpu.memory_space<vmem>>, vector<32x96xf32>
      %cst_36 = arith.constant dense<0.000000e+00> : vector<8x96xf32>
      %60 = tpu.matmul %56, %59, %cst_36 {dimension_numbers = #tpu.dot_dimension_numbers<[1], [0], [0], [1], [0, 0, 1, 1], [], []>} : vector<8x32xf32>, vector<32x96xf32>, vector<8x96xf32> -> vector<8x96xf32>
      %c0_37 = arith.constant 0 : index
      %c0_38 = arith.constant 0 : index
      %61 = vector.load %arg7[%c0_37, %c0_38] : memref<1x96xf32, #tpu.memory_space<vmem>>, vector<1x96xf32>
      %62 = vector.shape_cast %61 : vector<1x96xf32> to vector<96xf32>
      %63 = vector.shape_cast %62 : vector<96xf32> to vector<1x96xf32>
      %64 = vector.broadcast %63 : vector<1x96xf32> to vector<8x96xf32>
      %65 = arith.addf %60, %64 : vector<8x96xf32>
      %66 = vector.extract_strided_slice %65 {offsets = [0, 0], sizes = [8, 32], strides = [1, 1]} : vector<8x96xf32> to vector<8x32xf32>
      %67 = vector.extract_strided_slice %65 {offsets = [0, 32], sizes = [8, 32], strides = [1, 1]} : vector<8x96xf32> to vector<8x32xf32>
      %68 = vector.extract_strided_slice %65 {offsets = [0, 64], sizes = [8, 32], strides = [1, 1]} : vector<8x96xf32> to vector<8x32xf32>
      %69 = vector.shape_cast %66 : vector<8x32xf32> to vector<8x4x8xf32>
      %70 = tpu.transpose %69, [1, 0, 2] : vector<8x4x8xf32> -> vector<4x8x8xf32>
      %71 = vector.shape_cast %67 : vector<8x32xf32> to vector<8x4x8xf32>
      %72 = tpu.transpose %71, [1, 0, 2] : vector<8x4x8xf32> -> vector<4x8x8xf32>
      %73 = vector.shape_cast %68 : vector<8x32xf32> to vector<8x4x8xf32>
      %74 = tpu.transpose %73, [1, 0, 2] : vector<8x4x8xf32> -> vector<4x8x8xf32>
      "tpu.trace_start"() <{level = 10 : i32, message = "htd,hsd->hts"}> : () -> ()
      %cst_39 = arith.constant dense<0.000000e+00> : vector<4x8x8xf32>
      %75 = tpu.matmul %70, %72, %cst_39 {dimension_numbers = #tpu.dot_dimension_numbers<[2], [2], [1], [1], [0, 0, 0, 1, 1, 1], [0], [0]>} : vector<4x8x8xf32>, vector<4x8x8xf32>, vector<4x8x8xf32> -> vector<4x8x8xf32>
      "tpu.trace_stop"() : () -> ()
      %76 = vector.shape_cast %58 : vector<8x8xf32> to vector<1x8x8xf32>
      %77 = vector.broadcast %76 : vector<1x8x8xf32> to vector<4x8x8xf32>
      %78 = arith.addf %75, %77 : vector<4x8x8xf32>
      %cst_40 = arith.constant dense<0xFF800000> : vector<4x8xf32>
      %79 = vector.multi_reduction <maximumf>, %78, %cst_40 [2] : vector<4x8x8xf32> to vector<4x8xf32>
      %80 = vector.shape_cast %79 : vector<4x8xf32> to vector<4x8x1xf32>
      %81 = vector.broadcast %80 : vector<4x8x1xf32> to vector<4x8x8xf32>
      %82 = arith.subf %78, %81 : vector<4x8x8xf32>
      %83 = math.exp %82 : vector<4x8x8xf32>
      %cst_41 = arith.constant dense<0.000000e+00> : vector<4x8xf32>
      %84 = vector.multi_reduction <add>, %83, %cst_41 [2] : vector<4x8x8xf32> to vector<4x8xf32>
      %85 = vector.shape_cast %84 : vector<4x8xf32> to vector<4x8x1xf32>
      "tpu.trace_start"() <{level = 10 : i32, message = "hts,hsd->htd"}> : () -> ()
      %cst_42 = arith.constant dense<0.000000e+00> : vector<4x8x8xf32>
      %86 = tpu.matmul %83, %74, %cst_42 {dimension_numbers = #tpu.dot_dimension_numbers<[2], [1], [1], [2], [0, 0, 0, 1, 1, 2], [0], [0]>} : vector<4x8x8xf32>, vector<4x8x8xf32>, vector<4x8x8xf32> -> vector<4x8x8xf32>
      "tpu.trace_stop"() : () -> ()
      %87 = tpu.reciprocal %85 {approx = true} : vector<4x8x1xf32> -> vector<4x8x1xf32>
      %88 = vector.broadcast %87 : vector<4x8x1xf32> to vector<4x8x8xf32>
      %89 = arith.mulf %86, %88 : vector<4x8x8xf32>
      %90 = tpu.transpose %89, [1, 0, 2] : vector<4x8x8xf32> -> vector<8x4x8xf32>
      %91 = vector.shape_cast %90 : vector<8x4x8xf32> to vector<8x32xf32>
      %c0_43 = arith.constant 0 : index
      %c0_44 = arith.constant 0 : index
      %92 = vector.load %arg8[%c0_43, %c0_44] : memref<32x32xf32, #tpu.memory_space<vmem>>, vector<32x32xf32>
      %cst_45 = arith.constant dense<0.000000e+00> : vector<8x32xf32>
      %93 = tpu.matmul %91, %92, %cst_45 {dimension_numbers = #tpu.dot_dimension_numbers<[1], [0], [0], [1], [0, 0, 1, 1], [], []>} : vector<8x32xf32>, vector<32x32xf32>, vector<8x32xf32> -> vector<8x32xf32>
      %c0_46 = arith.constant 0 : index
      %c0_47 = arith.constant 0 : index
      %94 = vector.load %arg9[%c0_46, %c0_47] : memref<1x32xf32, #tpu.memory_space<vmem>>, vector<1x32xf32>
      %95 = vector.shape_cast %94 : vector<1x32xf32> to vector<32xf32>
      %96 = vector.shape_cast %95 : vector<32xf32> to vector<1x32xf32>
      %97 = vector.broadcast %96 : vector<1x32xf32> to vector<8x32xf32>
      %98 = arith.addf %93, %97 : vector<8x32xf32>
      %c0_48 = arith.constant 0 : index
      %c0_49 = arith.constant 0 : index
      %c0_50 = arith.constant 0 : index
      %99 = vector.load %arg23[%c0_48, %c0_49, %c0_50] : memref<1x8x32xf32, #tpu.memory_space<vmem>>, vector<1x8x32xf32>
      %100 = vector.shape_cast %99 : vector<1x8x32xf32> to vector<8x32xf32>
      %101 = vector.shape_cast %67 : vector<8x32xf32> to vector<1x8x32xf32>
      tpu.vector_store %arg23[%c0_48, %c0_49, %c0_50], %101 {strides = array<i32>} : memref<1x8x32xf32, #tpu.memory_space<vmem>>, vector<1x8x32xf32>,
      %c0_51 = arith.constant 0 : index
      %c0_52 = arith.constant 0 : index
      %c0_53 = arith.constant 0 : index
      %102 = vector.load %arg24[%c0_51, %c0_52, %c0_53] : memref<1x8x32xf32, #tpu.memory_space<vmem>>, vector<1x8x32xf32>
      %103 = vector.shape_cast %102 : vector<1x8x32xf32> to vector<8x32xf32>
      %104 = vector.shape_cast %68 : vector<8x32xf32> to vector<1x8x32xf32>
      tpu.vector_store %arg24[%c0_51, %c0_52, %c0_53], %104 {strides = array<i32>} : memref<1x8x32xf32, #tpu.memory_space<vmem>>, vector<1x8x32xf32>,
      %105 = arith.addf %28, %98 : vector<8x32xf32>
      %c0_54 = arith.constant 0 : index
      %c0_55 = arith.constant 0 : index
      %106 = vector.load %arg10[%c0_54, %c0_55] : memref<1x32xf32, #tpu.memory_space<vmem>>, vector<1x32xf32>
      %107 = vector.shape_cast %106 : vector<1x32xf32> to vector<32xf32>
      %c0_56 = arith.constant 0 : index
      %c0_57 = arith.constant 0 : index
      %108 = vector.load %arg11[%c0_56, %c0_57] : memref<1x32xf32, #tpu.memory_space<vmem>>, vector<1x32xf32>
      %109 = vector.shape_cast %108 : vector<1x32xf32> to vector<32xf32>
      %cst_58 = arith.constant dense<0.000000e+00> : vector<8xf32>
      %110 = vector.multi_reduction <add>, %105, %cst_58 [1] : vector<8x32xf32> to vector<8xf32>
      %111 = vector.shape_cast %110 : vector<8xf32> to vector<8x1xf32>
      %cst_59 = arith.constant 3.200000e+01 : f32
      %112 = vector.broadcast %cst_59 : f32 to vector<8x1xf32>
      %113 = arith.divf %111, %112 : vector<8x1xf32>
      %114 = arith.mulf %105, %105 : vector<8x32xf32>
      %cst_60 = arith.constant dense<0.000000e+00> : vector<8xf32>
      %115 = vector.multi_reduction <add>, %114, %cst_60 [1] : vector<8x32xf32> to vector<8xf32>
      %116 = vector.shape_cast %115 : vector<8xf32> to vector<8x1xf32>
      %cst_61 = arith.constant 3.200000e+01 : f32
      %117 = vector.broadcast %cst_61 : f32 to vector<8x1xf32>
      %118 = arith.divf %116, %117 : vector<8x1xf32>
      %119 = arith.mulf %113, %113 : vector<8x1xf32>
      %120 = arith.subf %118, %119 : vector<8x1xf32>
      %121 = vector.broadcast %113 : vector<8x1xf32> to vector<8x32xf32>
      %122 = arith.subf %105, %121 : vector<8x32xf32>
      %cst_62 = arith.constant 9.99999974E-6 : f32
      %123 = vector.broadcast %cst_62 : f32 to vector<8x1xf32>
      %124 = arith.addf %120, %123 : vector<8x1xf32>
      %125 = math.rsqrt %124 : vector<8x1xf32>
      %126 = vector.broadcast %125 : vector<8x1xf32> to vector<8x32xf32>
      %127 = arith.mulf %122, %126 : vector<8x32xf32>
      %128 = vector.shape_cast %107 : vector<32xf32> to vector<1x32xf32>
      %129 = vector.broadcast %128 : vector<1x32xf32> to vector<8x32xf32>
      %130 = arith.mulf %127, %129 : vector<8x32xf32>
      %131 = vector.shape_cast %109 : vector<32xf32> to vector<1x32xf32>
      %132 = vector.broadcast %131 : vector<1x32xf32> to vector<8x32xf32>
      %133 = arith.addf %130, %132 : vector<8x32xf32>
      %c0_63 = arith.constant 0 : index
      %c0_64 = arith.constant 0 : index
      %134 = vector.load %arg12[%c0_63, %c0_64] : memref<32x96xf32, #tpu.memory_space<vmem>>, vector<32x96xf32>
      %cst_65 = arith.constant dense<0.000000e+00> : vector<8x96xf32>
      %135 = tpu.matmul %133, %134, %cst_65 {dimension_numbers = #tpu.dot_dimension_numbers<[1], [0], [0], [1], [0, 0, 1, 1], [], []>} : vector<8x32xf32>, vector<32x96xf32>, vector<8x96xf32> -> vector<8x96xf32>
      %c0_66 = arith.constant 0 : index
      %c0_67 = arith.constant 0 : index
      %136 = vector.load %arg13[%c0_66, %c0_67] : memref<1x96xf32, #tpu.memory_space<vmem>>, vector<1x96xf32>
      %137 = vector.shape_cast %136 : vector<1x96xf32> to vector<96xf32>
      %138 = vector.shape_cast %137 : vector<96xf32> to vector<1x96xf32>
      %139 = vector.broadcast %138 : vector<1x96xf32> to vector<8x96xf32>
      %140 = arith.addf %135, %139 : vector<8x96xf32>
      %141 = vector.extract_strided_slice %140 {offsets = [0, 0], sizes = [8, 32], strides = [1, 1]} : vector<8x96xf32> to vector<8x32xf32>
      %142 = vector.extract_strided_slice %140 {offsets = [0, 32], sizes = [8, 32], strides = [1, 1]} : vector<8x96xf32> to vector<8x32xf32>
      %143 = vector.extract_strided_slice %140 {offsets = [0, 64], sizes = [8, 32], strides = [1, 1]} : vector<8x96xf32> to vector<8x32xf32>
      %144 = vector.shape_cast %141 : vector<8x32xf32> to vector<8x4x8xf32>
      %145 = tpu.transpose %144, [1, 0, 2] : vector<8x4x8xf32> -> vector<4x8x8xf32>
      %146 = vector.shape_cast %142 : vector<8x32xf32> to vector<8x4x8xf32>
      %147 = tpu.transpose %146, [1, 0, 2] : vector<8x4x8xf32> -> vector<4x8x8xf32>
      %148 = vector.shape_cast %143 : vector<8x32xf32> to vector<8x4x8xf32>
      %149 = tpu.transpose %148, [1, 0, 2] : vector<8x4x8xf32> -> vector<4x8x8xf32>
      "tpu.trace_start"() <{level = 10 : i32, message = "htd,hsd->hts"}> : () -> ()
      %cst_68 = arith.constant dense<0.000000e+00> : vector<4x8x8xf32>
      %150 = tpu.matmul %145, %147, %cst_68 {dimension_numbers = #tpu.dot_dimension_numbers<[2], [2], [1], [1], [0, 0, 0, 1, 1, 1], [0], [0]>} : vector<4x8x8xf32>, vector<4x8x8xf32>, vector<4x8x8xf32> -> vector<4x8x8xf32>
      "tpu.trace_stop"() : () -> ()
      %cst_69 = arith.constant dense<0xFF800000> : vector<4x8xf32>
      %151 = vector.multi_reduction <maximumf>, %150, %cst_69 [2] : vector<4x8x8xf32> to vector<4x8xf32>
      %152 = vector.shape_cast %151 : vector<4x8xf32> to vector<4x8x1xf32>
      %153 = vector.broadcast %152 : vector<4x8x1xf32> to vector<4x8x8xf32>
      %154 = arith.subf %150, %153 : vector<4x8x8xf32>
      %155 = math.exp %154 : vector<4x8x8xf32>
      %cst_70 = arith.constant dense<0.000000e+00> : vector<4x8xf32>
      %156 = vector.multi_reduction <add>, %155, %cst_70 [2] : vector<4x8x8xf32> to vector<4x8xf32>
      %157 = vector.shape_cast %156 : vector<4x8xf32> to vector<4x8x1xf32>
      "tpu.trace_start"() <{level = 10 : i32, message = "hts,hsd->htd"}> : () -> ()
      %cst_71 = arith.constant dense<0.000000e+00> : vector<4x8x8xf32>
      %158 = tpu.matmul %155, %149, %cst_71 {dimension_numbers = #tpu.dot_dimension_numbers<[2], [1], [1], [2], [0, 0, 0, 1, 1, 2], [0], [0]>} : vector<4x8x8xf32>, vector<4x8x8xf32>, vector<4x8x8xf32> -> vector<4x8x8xf32>
      "tpu.trace_stop"() : () -> ()
      %159 = tpu.reciprocal %157 {approx = true} : vector<4x8x1xf32> -> vector<4x8x1xf32>
      %160 = vector.broadcast %159 : vector<4x8x1xf32> to vector<4x8x8xf32>
      %161 = arith.mulf %158, %160 : vector<4x8x8xf32>
      %162 = tpu.transpose %161, [1, 0, 2] : vector<4x8x8xf32> -> vector<8x4x8xf32>
      %163 = vector.shape_cast %162 : vector<8x4x8xf32> to vector<8x32xf32>
      %c0_72 = arith.constant 0 : index
      %c0_73 = arith.constant 0 : index
      %164 = vector.load %arg14[%c0_72, %c0_73] : memref<32x32xf32, #tpu.memory_space<vmem>>, vector<32x32xf32>
      %cst_74 = arith.constant dense<0.000000e+00> : vector<8x32xf32>
      %165 = tpu.matmul %163, %164, %cst_74 {dimension_numbers = #tpu.dot_dimension_numbers<[1], [0], [0], [1], [0, 0, 1, 1], [], []>} : vector<8x32xf32>, vector<32x32xf32>, vector<8x32xf32> -> vector<8x32xf32>
      %c0_75 = arith.constant 0 : index
      %c0_76 = arith.constant 0 : index
      %166 = vector.load %arg15[%c0_75, %c0_76] : memref<1x32xf32, #tpu.memory_space<vmem>>, vector<1x32xf32>
      %167 = vector.shape_cast %166 : vector<1x32xf32> to vector<32xf32>
      %168 = vector.shape_cast %167 : vector<32xf32> to vector<1x32xf32>
      %169 = vector.broadcast %168 : vector<1x32xf32> to vector<8x32xf32>
      %170 = arith.addf %165, %169 : vector<8x32xf32>
      %171 = arith.addf %105, %170 : vector<8x32xf32>
      %c0_77 = arith.constant 0 : index
      %c0_78 = arith.constant 0 : index
      %172 = vector.load %arg18[%c0_77, %c0_78] : memref<1x32xf32, #tpu.memory_space<vmem>>, vector<1x32xf32>
      %173 = vector.shape_cast %172 : vector<1x32xf32> to vector<32xf32>
      %174 = vector.shape_cast %173 : vector<32xf32> to vector<1x32xf32>
      %175 = vector.broadcast %174 : vector<1x32xf32> to vector<8x32xf32>
      %176 = arith.addf %171, %175 : vector<8x32xf32>
      %c0_79 = arith.constant 0 : index
      %c0_80 = arith.constant 0 : index
      %c0_81 = arith.constant 0 : index
      %177 = vector.load %arg22[%c0_79, %c0_80, %c0_81] : memref<1x8x32xf32, #tpu.memory_space<vmem>>, vector<1x8x32xf32>
      %178 = vector.shape_cast %177 : vector<1x8x32xf32> to vector<8x32xf32>
      %179 = vector.shape_cast %176 : vector<8x32xf32> to vector<1x8x32xf32>
      tpu.vector_store %arg22[%c0_79, %c0_80, %c0_81], %179 {strides = array<i32>} : memref<1x8x32xf32, #tpu.memory_space<vmem>>, vector<1x8x32xf32>,
      %c0_82 = arith.constant 0 : index
      %c0_83 = arith.constant 0 : index
      %180 = vector.load %arg16[%c0_82, %c0_83] : memref<1x32xf32, #tpu.memory_space<vmem>>, vector<1x32xf32>
      %181 = vector.shape_cast %180 : vector<1x32xf32> to vector<32xf32>
      %c0_84 = arith.constant 0 : index
      %c0_85 = arith.constant 0 : index
      %182 = vector.load %arg17[%c0_84, %c0_85] : memref<1x32xf32, #tpu.memory_space<vmem>>, vector<1x32xf32>
      %183 = vector.shape_cast %182 : vector<1x32xf32> to vector<32xf32>
      %cst_86 = arith.constant dense<0.000000e+00> : vector<8xf32>
      %184 = vector.multi_reduction <add>, %171, %cst_86 [1] : vector<8x32xf32> to vector<8xf32>
      %185 = vector.shape_cast %184 : vector<8xf32> to vector<8x1xf32>
      %cst_87 = arith.constant 3.200000e+01 : f32
      %186 = vector.broadcast %cst_87 : f32 to vector<8x1xf32>
      %187 = arith.divf %185, %186 : vector<8x1xf32>
      %188 = arith.mulf %171, %171 : vector<8x32xf32>
      %cst_88 = arith.constant dense<0.000000e+00> : vector<8xf32>
      %189 = vector.multi_reduction <add>, %188, %cst_88 [1] : vector<8x32xf32> to vector<8xf32>
      %190 = vector.shape_cast %189 : vector<8xf32> to vector<8x1xf32>
      %cst_89 = arith.constant 3.200000e+01 : f32
      %191 = vector.broadcast %cst_89 : f32 to vector<8x1xf32>
      %192 = arith.divf %190, %191 : vector<8x1xf32>
      %193 = arith.mulf %187, %187 : vector<8x1xf32>
      %194 = arith.subf %192, %193 : vector<8x1xf32>
      %195 = vector.broadcast %187 : vector<8x1xf32> to vector<8x32xf32>
      %196 = arith.subf %171, %195 : vector<8x32xf32>
      %cst_90 = arith.constant 9.99999974E-6 : f32
      %197 = vector.broadcast %cst_90 : f32 to vector<8x1xf32>
      %198 = arith.addf %194, %197 : vector<8x1xf32>
      %199 = math.rsqrt %198 : vector<8x1xf32>
      %200 = vector.broadcast %199 : vector<8x1xf32> to vector<8x32xf32>
      %201 = arith.mulf %196, %200 : vector<8x32xf32>
      %202 = vector.shape_cast %181 : vector<32xf32> to vector<1x32xf32>
      %203 = vector.broadcast %202 : vector<1x32xf32> to vector<8x32xf32>
      %204 = arith.mulf %201, %203 : vector<8x32xf32>
      %205 = vector.shape_cast %183 : vector<32xf32> to vector<1x32xf32>
      %206 = vector.broadcast %205 : vector<1x32xf32> to vector<8x32xf32>
      %207 = arith.addf %204, %206 : vector<8x32xf32>
      %c0_91 = arith.constant 0 : index
      %c0_92 = arith.constant 0 : index
      %208 = vector.load %arg25[%c0_91, %c0_92] : memref<8x32xf32, #tpu.memory_space<vmem>>, vector<8x32xf32>
      tpu.vector_store %arg25[%c0_91, %c0_92], %207 {strides = array<i32>} : memref<8x32xf32, #tpu.memory_space<vmem>>, vector<8x32xf32>,
    } else {
    }
    %c0 = arith.constant 0 : index
    %c0_1 = arith.constant 0 : index
    %3 = vector.load %arg25[%c0, %c0_1] : memref<8x32xf32, #tpu.memory_space<vmem>>, vector<8x32xf32>
    %c0_2 = arith.constant 0 : index
    %c0_3 = arith.constant 0 : index
    %4 = vector.load %arg19[%c0_2, %c0_3] : memref<32x128xf32, #tpu.memory_space<vmem>>, vector<32x128xf32>
    %cst = arith.constant dense<0.000000e+00> : vector<8x128xf32>
    %5 = tpu.matmul %3, %4, %cst {dimension_numbers = #tpu.dot_dimension_numbers<[1], [0], [0], [1], [0, 0, 1, 1], [], []>} : vector<8x32xf32>, vector<32x128xf32>, vector<8x128xf32> -> vector<8x128xf32>
    %c0_4 = arith.constant 0 : index
    %c0_5 = arith.constant 0 : index
    %6 = vector.load %arg20[%c0_4, %c0_5] : memref<1x128xf32, #tpu.memory_space<vmem>>, vector<1x128xf32>
    %7 = vector.shape_cast %6 : vector<1x128xf32> to vector<128xf32>
    %8 = vector.shape_cast %7 : vector<128xf32> to vector<1x128xf32>
    %9 = vector.broadcast %8 : vector<1x128xf32> to vector<8x128xf32>
    %10 = arith.addf %5, %9 : vector<8x128xf32>
    %cst_6 = arith.constant 5.000000e-01 : f32
    %11 = vector.broadcast %cst_6 : f32 to vector<8x128xf32>
    %12 = arith.mulf %11, %10 : vector<8x128xf32>
    %cst_7 = arith.constant 0.707106769 : f32
    %13 = vector.broadcast %cst_7 : f32 to vector<8x128xf32>
    %14 = arith.mulf %10, %13 : vector<8x128xf32>
    %15 = math.erf %14 : vector<8x128xf32>
    %cst_8 = arith.constant 1.000000e+00 : f32
    %16 = vector.broadcast %cst_8 : f32 to vector<8x128xf32>
    %17 = arith.addf %16, %15 : vector<8x128xf32>
    %18 = arith.mulf %12, %17 : vector<8x128xf32>
    %c0_9 = arith.constant 0 : index
    %c0_10 = arith.constant 0 : index
    %c0_11 = arith.constant 0 : index
    %19 = vector.load %arg22[%c0_9, %c0_10, %c0_11] : memref<1x8x32xf32, #tpu.memory_space<vmem>>, vector<1x8x32xf32>
    %20 = vector.shape_cast %19 : vector<1x8x32xf32> to vector<8x32xf32>
    %c0_12 = arith.constant 0 : index
    %c0_13 = arith.constant 0 : index
    %21 = vector.load %arg21[%c0_12, %c0_13] : memref<128x32xf32, #tpu.memory_space<vmem>>, vector<128x32xf32>
    %cst_14 = arith.constant dense<0.000000e+00> : vector<8x32xf32>
    %22 = tpu.matmul %18, %21, %cst_14 {dimension_numbers = #tpu.dot_dimension_numbers<[1], [0], [0], [1], [0, 0, 1, 1], [], []>} : vector<8x128xf32>, vector<128x32xf32>, vector<8x32xf32> -> vector<8x32xf32>
    %23 = arith.addf %20, %22 : vector<8x32xf32>
    %c0_15 = arith.constant 0 : index
    %c0_16 = arith.constant 0 : index
    %c0_17 = arith.constant 0 : index
    %24 = vector.load %arg22[%c0_15, %c0_16, %c0_17] : memref<1x8x32xf32, #tpu.memory_space<vmem>>, vector<1x8x32xf32>
    %25 = vector.shape_cast %24 : vector<1x8x32xf32> to vector<8x32xf32>
    %26 = vector.shape_cast %23 : vector<8x32xf32> to vector<1x8x32xf32>
    tpu.vector_store %arg22[%c0_15, %c0_16, %c0_17], %26 {strides = array<i32>} : memref<1x8x32xf32, #tpu.memory_space<vmem>>, vector<1x8x32xf32>,
    return
  }
  func.func @transform_0(%arg0: i32, %arg1: i32) -> (i32, i32, i32) {
    %c0_i32 = arith.constant 0 : i32
    %c0_i32_0 = arith.constant 0 : i32
    %c0_i32_1 = arith.constant 0 : i32
    return %arg0, %c0_i32, %c0_i32_0 : i32, i32, i32
  }
  func.func @transform_1(%arg0: i32, %arg1: i32) -> (i32, i32, i32, i32) {
    %c0_i32 = arith.constant 0 : i32
    %c0_i32_0 = arith.constant 0 : i32
    %c0_i32_1 = arith.constant 0 : i32
    %c0_i32_2 = arith.constant 0 : i32
    %c0_i32_3 = arith.constant 0 : i32
    return %c0_i32, %c0_i32_0, %c0_i32_1, %c0_i32_2 : i32, i32, i32, i32
  }
  func.func @transform_2(%arg0: i32, %arg1: i32) -> (i32, i32) {
    %c0_i32 = arith.constant 0 : i32
    %c0_i32_0 = arith.constant 0 : i32
    %c0_i32_1 = arith.constant 0 : i32
    return %c0_i32, %c0_i32_0 : i32, i32
  }
  func.func @transform_3(%arg0: i32, %arg1: i32) -> (i32, i32) {
    %c0_i32 = arith.constant 0 : i32
    %c0_i32_0 = arith.constant 0 : i32
    %c0_i32_1 = arith.constant 0 : i32
    return %c0_i32, %c0_i32_0 : i32, i32
  }
  func.func @transform_4(%arg0: i32, %arg1: i32) -> (i32, i32) {
    %c0_i32 = arith.constant 0 : i32
    %c0_i32_0 = arith.constant 0 : i32
    %c0_i32_1 = arith.constant 0 : i32
    return %c0_i32, %c0_i32_0 : i32, i32
  }
  func.func @transform_5(%arg0: i32, %arg1: i32) -> (i32, i32) {
    %c0_i32 = arith.constant 0 : i32
    %c0_i32_0 = arith.constant 0 : i32
    %c0_i32_1 = arith.constant 0 : i32
    return %c0_i32, %c0_i32_0 : i32, i32
  }
  func.func @transform_6(%arg0: i32, %arg1: i32) -> (i32, i32) {
    %c0_i32 = arith.constant 0 : i32
    %c0_i32_0 = arith.constant 0 : i32
    %c0_i32_1 = arith.constant 0 : i32
    return %c0_i32, %c0_i32_0 : i32, i32
  }
  func.func @transform_7(%arg0: i32, %arg1: i32) -> (i32, i32) {
    %c0_i32 = arith.constant 0 : i32
    %c0_i32_0 = arith.constant 0 : i32
    %c0_i32_1 = arith.constant 0 : i32
    return %c0_i32, %c0_i32_0 : i32, i32
  }
  func.func @transform_8(%arg0: i32, %arg1: i32) -> (i32, i32) {
    %c0_i32 = arith.constant 0 : i32
    %c0_i32_0 = arith.constant 0 : i32
    %c0_i32_1 = arith.constant 0 : i32
    return %c0_i32, %c0_i32_0 : i32, i32
  }
  func.func @transform_9(%arg0: i32, %arg1: i32) -> (i32, i32) {
    %c0_i32 = arith.constant 0 : i32
    %c0_i32_0 = arith.constant 0 : i32
    %c0_i32_1 = arith.constant 0 : i32
    return %c0_i32, %c0_i32_0 : i32, i32
  }
  func.func @transform_10(%arg0: i32, %arg1: i32) -> (i32, i32) {
    %c0_i32 = arith.constant 0 : i32
    %c0_i32_0 = arith.constant 0 : i32
    %c0_i32_1 = arith.constant 0 : i32
    return %c0_i32, %c0_i32_0 : i32, i32
  }
  func.func @transform_11(%arg0: i32, %arg1: i32) -> (i32, i32) {
    %c0_i32 = arith.constant 0 : i32
    %c0_i32_0 = arith.constant 0 : i32
    %c0_i32_1 = arith.constant 0 : i32
    return %c0_i32, %c0_i32_0 : i32, i32
  }
  func.func @transform_12(%arg0: i32, %arg1: i32) -> (i32, i32) {
    %c0_i32 = arith.constant 0 : i32
    %c0_i32_0 = arith.constant 0 : i32
    %c0_i32_1 = arith.constant 0 : i32
    return %c0_i32, %c0_i32_0 : i32, i32
  }
  func.func @transform_13(%arg0: i32, %arg1: i32) -> (i32, i32) {
    %c0_i32 = arith.constant 0 : i32
    %c0_i32_0 = arith.constant 0 : i32
    %c0_i32_1 = arith.constant 0 : i32
    return %c0_i32, %c0_i32_0 : i32, i32
  }
  func.func @transform_14(%arg0: i32, %arg1: i32) -> (i32, i32) {
    %c0_i32 = arith.constant 0 : i32
    %c0_i32_0 = arith.constant 0 : i32
    %c0_i32_1 = arith.constant 0 : i32
    return %c0_i32, %c0_i32_0 : i32, i32
  }
  func.func @transform_15(%arg0: i32, %arg1: i32) -> (i32, i32) {
    %c0_i32 = arith.constant 0 : i32
    %c0_i32_0 = arith.constant 0 : i32
    %c0_i32_1 = arith.constant 0 : i32
    return %c0_i32, %c0_i32_0 : i32, i32
  }
  func.func @transform_16(%arg0: i32, %arg1: i32) -> (i32, i32) {
    %c0_i32 = arith.constant 0 : i32
    %c0_i32_0 = arith.constant 0 : i32
    %c0_i32_1 = arith.constant 0 : i32
    return %c0_i32, %c0_i32_0 : i32, i32
  }
  func.func @transform_17(%arg0: i32, %arg1: i32) -> (i32, i32) {
    %c0_i32 = arith.constant 0 : i32
    %c0_i32_0 = arith.constant 0 : i32
    return %c0_i32, %arg1 : i32, i32
  }
  func.func @transform_18(%arg0: i32, %arg1: i32) -> (i32, i32) {
    %c0_i32 = arith.constant 0 : i32
    %c0_i32_0 = arith.constant 0 : i32
    return %c0_i32, %arg1 : i32, i32
  }
  func.func @transform_19(%arg0: i32, %arg1: i32) -> (i32, i32) {
    %c0_i32 = arith.constant 0 : i32
    %c0_i32_0 = arith.constant 0 : i32
    return %arg1, %c0_i32 : i32, i32
  }
  func.func @transform_20(%arg0: i32, %arg1: i32) -> (i32, i32, i32) {
    %c0_i32 = arith.constant 0 : i32
    %c0_i32_0 = arith.constant 0 : i32
    %c0_i32_1 = arith.constant 0 : i32
    return %arg0, %c0_i32, %c0_i32_0 : i32, i32, i32
  }
  func.func @transform_21(%arg0: i32, %arg1: i32) -> (i32, i32, i32) {
    %c0_i32 = arith.constant 0 : i32
    %c0_i32_0 = arith.constant 0 : i32
    %c0_i32_1 = arith.constant 0 : i32
    return %arg0, %c0_i32, %c0_i32_0 : i32, i32, i32
  }
  func.func @transform_22(%arg0: i32, %arg1: i32) -> (i32, i32, i32) {
    %c0_i32 = arith.constant 0 : i32
    %c0_i32_0 = arith.constant 0 : i32
    %c0_i32_1 = arith.constant 0 : i32
    return %arg0, %c0_i32, %c0_i32_0 : i32, i32, i32
  }
}

</mosaic_0001>

<bundles_post_ra>
// kernel: tpu_custom_call.1
= control target key start
LH: loop header
LB: loop body
LE: loop exit
PB: predicated region body
PF: predicated region fallthrough
CT: control target
= control target key end

     0   :  { %s5640_s0 = inlined_call_operand.vmem [shape: f32[2,8,32], index: 0, kind: input, shape index: {}]   ;;  %s5641_s1 = inlined_call_operand.vmem [shape: f32[1,1,8,8], index: 1, kind: input, shape index: {}]   ;;  %s5642_s2 = inlined_call_operand.vmem [shape: f32[1,32], index: 2, kind: input, shape index: {}]   ;;  %s5643_s3 = inlined_call_operand.vmem [shape: f32[1,32], index: 3, kind: input, shape index: {}]   ;;  %s5644_s4 = inlined_call_operand.vmem [shape: f32[32,96], index: 4, kind: input, shape index: {}]   ;;  %s5645_s5 = inlined_call_operand.vmem [shape: f32[1,96], index: 5, kind: input, shape index: {}]   ;;  %s5646_s6 = inlined_call_operand.vmem [shape: f32[32,32], index: 6, kind: input, shape index: {}]   ;;  %s5647_s7 = inlined_call_operand.vmem [shape: f32[1,32], index: 7, kind: input, shape index: {}]   ;;  %s5648_s8 = inlined_call_operand.vmem [shape: f32[1,32], index: 8, kind: input, shape index: {}]   ;;  %s5649_s9 = inlined_call_operand.vmem [shape: f32[1,32], index: 9, kind: input, shape index: {}]   ;;  %s5650_s10 = inlined_call_operand.vmem [shape: f32[32,96], index: 10, kind: input, shape index: {}]   ;;  %s5651_s11 = inlined_call_operand.vmem [shape: f32[1,96], index: 11, kind: input, shape index: {}]   ;;  %s5652_s12 = inlined_call_operand.vmem [shape: f32[32,32], index: 12, kind: input, shape index: {}]   ;;  %s5653_s13 = inlined_call_operand.vmem [shape: f32[1,32], index: 13, kind: input, shape index: {}]   ;;  %s5654_s14 = inlined_call_operand.vmem [shape: f32[1,32], index: 14, kind: input, shape index: {}]   ;;  %s5655_s15 = inlined_call_operand.vmem [shape: f32[1,32], index: 15, kind: input, shape index: {}]   ;;  %s5656_s16 = inlined_call_operand.vmem [shape: f32[1,32], index: 16, kind: input, shape index: {}]   ;;  %s5657_s17 = inlined_call_operand.vmem [shape: f32[32,256], index: 17, kind: input, shape index: {}]   ;;  %s5658_s18 = inlined_call_operand.vmem [shape: f32[1,256], index: 18, kind: input, shape index: {}]   ;;  %s5659_s19 = inlined_call_operand.vmem [shape: f32[256,32], index: 19, kind: input, shape index: {}]   ;;  %s5660_s20 = inlined_call_operand.hbm [shape: f32[2,8,32], index: 20, kind: output, shape index: {0}]   ;;  %s5661_s21 = inlined_call_operand.hbm [shape: f32[2,8,32], index: 21, kind: output, shape index: {1}]   ;;  %s5662_s22 = inlined_call_operand.hbm [shape: f32[2,8,32], index: 22, kind: output, shape index: {2}]  }
   0x1   :  { %5685 = sst [smem:[#allocation24_spill]] %s5640_s0 }
   0x2   :  { %5686 = sst [smem:[#allocation25_spill]] %s5641_s1 }
   0x3   :  { %5687 = sst [smem:[#allocation26_spill]] %s5642_s2 }
   0x4   :  { %5688 = sst [smem:[#allocation27_spill]] %s5643_s3 }
   0x5   :  { %5689 = sst [smem:[#allocation28_spill]] %s5644_s4 }
   0x6   :  { %5690 = sst [smem:[#allocation29_spill]] %s5645_s5 }
   0x7   :  { %5691 = sst [smem:[#allocation30_spill]] %s5646_s6 }
   0x8   :  { %5692 = sst [smem:[#allocation31_spill]] %s5654_s14 }
   0x9   :  { %5693 = sst [smem:[#allocation32_spill]] %s5655_s15 }
   0xa   :  { %5694 = sst [smem:[#allocation33_spill]] %s5656_s16 }
   0xb   :  { %5695 = sst [smem:[#allocation34_spill]] %s5657_s17 }
   0xc   :  { %5696 = sst [smem:[#allocation35_spill]] %s5660_s20 }
   0xd   :  { %5697 = sst [smem:[#allocation36_spill]] %s5661_s21 }
   0xe   :  { %5698 = sst [smem:[#allocation37_spill]] %s5662_s22 }
   0xf   :  { %28 = vsyncpa [#allocation5], 0 }
  0x10   :  { %30 = vsyncpa [#allocation5 + $0x1], 0 }
  0x11   :  { %31 = vsyncpa [#allocation7], 0 }
  0x12   :  { %33 = vsyncpa [#allocation7 + $0x1], 0  ;;  %s4905_s3 = smov 0   ;;  %s4907_s28 = smov 0  }
  0x13   :  { %s4909_s29 = smov 0   ;;  %s4911_s30 = smov 0  }
  0x14   :  { %s4913_s4 = smov 0   ;;  %s4915_s0 = smov 0  }
  0x15   :  { %s4917_s23 = smov 0   ;;  %s4919_s1 = smov 0  }
  0x16   :  { %s4921_s5 = smov 0   ;;  %s4923_s24 = smov 0  }
  0x17 LB: > { %5699 = sst [smem:[#allocation11_spill]] %s4735_s3  ;;  %s48_s26 = sadd.s32 1, %s4763_s1  ;;  %s4771_s24 = sphi %s4923_s24, %s39_s24   ;;  %s4767_s5 = sphi %s4921_s5, %s5755_s5   ;;  %s4763_s1 = sphi %s4919_s1, %s5754_s1   ;;  %s4759_s23 = sphi %s4917_s23, %s5753_s23   ;;  %s4755_s0 = sphi %s4915_s0, %s5752_s0   ;;  %s4751_s4 = sphi %s4913_s4, %s5751_s4   ;;  %s4747_s30 = sphi %s4911_s30, %s5750_s30   ;;  %s4743_s29 = sphi %s4909_s29, %s5749_s29   ;;  %s4739_s28 = sphi %s4907_s28, %s5748_s28   ;;  %s4735_s3 = sphi %s4905_s3, %s5747_s3  }
  0x18   : > { %5700 = sst [smem:[#allocation12_spill]] %s4739_s28  ;;  %s51_s2 = sadd.s32 1, %s4767_s5 }
  0x19   : > { %5701 = sst [smem:[#allocation13_spill]] %s4743_s29  ;;  %p49_p0 = scmp.ge.s32.totalorder %s48_s26, 2 }
  0x1a   : > { %5702 = sst [smem:[#allocation14_spill]] %s4751_s4  ;;  %s420_s27 = sadd.s32 1, %s4751_s4 }
  0x1b   : > { %5703 = sst [smem:[#allocation15_spill]] %s4759_s23  ;;  %p427_p1 = scmp.ne.s32.totalorder %s4751_s4, %s4747_s30 }
  0x1c   : > { %5704 = sst [smem:[#allocation16_spill]] %s4763_s1  ;;  %p428_p2 = scmp.eq.s32.totalorder %s4771_s24, 0 }
  0x1d   : > { %5705 = sst [smem:[#allocation17_spill]] %s4767_s5  ;;  %s5757_s26 = smov (%p49_p0, %s48_s26), 0 }
  0x1e   : > { %5706 = sst [smem:[#allocation18_spill]] %s5757_s26  ;;  %s5759_s2 = smov (!%p49_p0, %s51_s2), %s4767_s5 }
  0x1f   : > { %s417_s20 = ssub.s32 %s4763_s1, %s5757_s26  ;;  %p4968_p3 = por %p428_p2, %p427_p1 }
  0x20   : > { %p53_p4 = scmp.ge.s32.totalorder %s5759_s2, 2  ;;  %p418_p5 = scmp.eq.s32.totalorder %s417_s20, 0 }
  0x21   : > { %s498_s6 = sadd.s32 1, %s4743_s29  ;;  %p508_p6 = scmp.ne.s32.totalorder %s4743_s29, %s4739_s28 }
  0x22   : > { %s5761_s2 = smov (%p53_p4, %s5759_s2), 0  ;;  %s5710_s15 = sadd.s32 4294967295, %s4771_s24  }
  0x23   : > { %5708 = sst [smem:[#allocation19_spill]] %s5761_s2  ;;  %s495_s21 = ssub.s32 %s4767_s5, %s5761_s2 }
  0x24   : > { %s4978_s22 = scalar_select %p418_p5, %s4751_s4, %s420_s27  }
  0x25   : > { %p509_p7 = scmp.eq.s32.totalorder %s5710_s15, 3  ;;  %p496_p8 = scmp.eq.s32.totalorder %s495_s21, 0 }
  0x26   : > { %5709 = sst [smem:[#allocation20_spill]] %s4978_s22  ;;  %p514_p9 = scmp.ne.s32.totalorder %s4739_s28, %s4735_s3 }
  0x27   : > { %p4986_p10 = por %p509_p7, %p508_p6  ;;  %s5713_s14 = sadd.s32 4294967294, %s4771_s24  }
  0x28   : > { %p515_p11 = scmp.eq.s32.totalorder %s5713_s14, 3  ;;  %p4135_p13 = scmp.ge.s32.totalorder %s4771_s24, 4 }
  0x29   : > { %s5711_s26 = scalar_select %p4986_p10, 1, 0 }
  0x2a   : > { %s4993_s16 = scalar_select %p496_p8, %s4743_s29, %s498_s6  }
  0x2b   : > { %5712 = sst [smem:[#allocation21_spill]] %s5711_s26  ;;  %p4995_p12 = por %p515_p11, %p514_p9 }
  0x2c   : > { %5714 = sst [smem:[#allocation22_spill]] %s4993_s16  ;;  %631 = sbr.rel (%p4135_p13) target bundleno = 61 (0x3d), region = 80 }
  0x2d   : > { %s5715_s20 = scalar_select %p4995_p12, 1, 0 }
  0x2f   : > { %5716 = sst [smem:[#allocation23_spill]] %s5715_s20 }
  0x31   : > { %641 = sbr.rel (!%p4968_p3) target bundleno = 61 (0x3d), region = 88  ;;  %s643_s15 = sand.u32 (%p4968_p3), 1, %s4751_s4  }
  0x32   : > { %s4137_s21 = sshll.u32 (%p4968_p3), %s4763_s1, 3  ;;  %s4136_s27 = sshll.u32 (%p4968_p3), %s643_s15, 5 }
  0x33   : > { %s5717_s17 = sld [smem:[#allocation34_spill]] (%p4968_p3)  ;;  %s645_s6 = scalar_lea.vmem (%p4968_p3), [#allocation3], %s4136_s27 }
  0x39   : > { %s647_s14 = scalar_lea.vmem %s5717_s17, %s4137_s21 }
  0x3a   : > { %v682_v0 = vld [vmem:[%s647_s14] sm:$0xff]  ;;  %v684_v1 = vld [vmem:[%s647_s14 + $0x10] sm:$0xff] }
  0x3b   : > { %v686_v2 = vld [vmem:[%s647_s14 + $0x20] sm:$0xff]  ;;  %683 = vst [vmem:[%s645_s6] sm:$0xff] %v682_v0  ;;  %685 = vst [vmem:[%s645_s6 + $0x8] sm:$0xff] %v684_v1  ;;  %v688_v3 = vld [vmem:[%s647_s14 + $0x30] sm:$0xff] }
  0x3c   : > { %687 = vst [vmem:[%s645_s6 + $0x10] sm:$0xff] %v686_v2  ;;  %689 = vst [vmem:[%s645_s6 + $0x18] sm:$0xff] %v688_v3 }
  0x3d PF: > { %p4138_p0 = scmp.ge.s32.totalorder %s4771_s24, 1  ;;  %p709_p1 = scmp.lt.s32.totalorder %s4771_s24, 5 }
  0x3f   : > { %p710_p2 = pnand %p4138_p0, %p709_p1 }
  0x40   : > { %s716_s5 = sand.u32 (!%p710_p2), 1, %s4747_s30   ;;  %s5673_s25 = sand.u32 (!%p710_p2), 1, %s4739_s28  }
  0x41   : > { %713 = sbr.rel (%p710_p2) target bundleno = 3723 (0xe8b), region = 134  ;;  %s4139_s2 = sshll.u32 (!%p710_p2), %s716_s5, 5 }
  0x42   : > { %s5013_s15 = sshll.u32 (!%p710_p2), %s5673_s25, 3  ;;  %p799_p3 = scmp.lt.s32.totalorder (!%p710_p2), %s4759_s23, 1 }
  0x43   : > { %p803_p4 = scmp.lt.s32.totalorder (!%p710_p2), %s4755_s0, 1  ;;  %s4144_s21 = sshll.u32 (!%p710_p2), %s4755_s0, 4 }
  0x44   : > { %p807_p5 = scmp.lt.s32.totalorder (!%p710_p2), %s4144_s21, 31  ;;  %s5718_s30 = sld [smem:[#allocation24_spill]] (!%p710_p2) }
  0x45   : > { %s5034_s28 = scalar_lea.vmem (!%p710_p2), [#allocation3], %s4139_s2  ;;  %s5037_s26 = scalar_lea.vmem (!%p710_p2), [#allocation4], %s5013_s15 }
  0x46   : > { %s800_s27 = scalar_select %p799_p3, %s4759_s23, 1 }
  0x47   : > { %s5020_s14 = scalar_select %p803_p4, %s4755_s0, 1 }
  0x48   : > { %s4143_s6 = sshll.u32 %s800_s27, 3  ;;  %s5763_s21 = smov (!%p807_p5, %s4144_s21), 31 }
  0x49   : > { %s4145_s16 = sshll.u32 %s5763_s21, 3  ;;  %s5682_s27 = scalar_lea.vmem [#allocation6], %s5013_s15 }
  0x4a   : > { %s802_s22 = scalar_lea.vmem %s5718_s30, %s4143_s6  ;;  %s5032_s3 = scalar_lea.vmem %s5659_s19, %s4145_s16 }
  0x4b   : > { %s5681_s23 = scalar_lea.vmem [#allocation8], %s5013_s15  ;;  %p4146_p6 = scmp.ne.s32.totalorder %s4755_s0, 0 }
  0x4c   : > { %s5719_s29 = sld [smem:[#allocation28_spill]] (!%p4146_p6)  ;;  %s4775_s1 = smov (!%p4146_p6), 104  }
  0x4d   : > { %815 = sbr.rel (%p4146_p6) target bundleno = 3291 (0xcdb), region = 142  ;;  %s5721_s5 = sld [smem:[#allocation26_spill]] (!%p4146_p6) }
  0x4e   : > { %s5723_s0 = sld [smem:[#allocation29_spill]] (!%p4146_p6)  ;;  %s4776_s2 = smov (!%p4146_p6), 120  }
  0x4f   : > { %s4777_s21 = smov (!%p4146_p6), 112   ;;  %s4778_s6 = smov (!%p4146_p6), 96  }
  0x50   : > { %s4779_s30 = smov (!%p4146_p6), 64   ;;  %s5724_s17 = sld [smem:[#allocation25_spill]] (!%p4146_p6) }
  0x51   : > { %s5725_s4 = sld [smem:[#allocation30_spill]] (!%p4146_p6)  ;;  %s5727_s25 = smov (!%p4146_p6), 8  }
  0x52   : > { %v5042_v4 = vld [vmem:[%s802_s22] sm:$0xff]  ;;  %vm819_vm0 = vcmask 261120   ;;  %s5720_s20 = smov %s5719_s29  ;;  %v854_v8 = vld [vmem:[%s5719_s29 + $0x18] sm:$0xff]  ;;  %v4773_v9 = vmov 0.0   ;;  %vm4774_vm1 = vmmov 0   ;;  %s5722_s29 = sld [smem:[#allocation27_spill]]  ;;  %v950_v37 = vlaneseq }
  0x53   : > { %v820_v5 = vsel %vm819_vm0, %v5042_v4, 0.0  ;;  %v825_v6 = vmul.f32 %v5042_v4, %v5042_v4  ;;  %4286 = vmatprep.subr.mxu0 %v4773_v9  ;;  %v853_v10 = vld [vmem:[%s5720_s20 + $0x10] sm:$0xff]  ;;  %4294 = vmatprep.mubr.msk.f32.mxu0 %vm4774_vm1, %v4773_v9  ;;  %v852_v11 = vld [vmem:[%s5720_s20 + $0x8] sm:$0xff]  ;;  %v851_v12 = vld [vmem:[%s5720_s20] sm:$0xff]  ;;  %v4780_v35 = vmov 1983009808  }
  0x54   : > { %821 = vadd.xlane.f32.xlu0 %v820_v5  ;;  %4287 = vmatpush3.msra.mxu0 %v854_v8  ;;  %v4147_v22 = vld [vmem:[%s5721_s5] ss:$0 sm:$0xff]  ;;  %v948_v36 = vunpack.c.l.s4 %v4780_v35  ;;  %v951_v39 = vshrl.u32 %v950_v37, 7  ;;  %v4781_v40 = vmov 1934713408   ;;  %vm1377_vm2 = vcmask 64512  }
  0x55   : > { %v826_v7 = vsel %vm819_vm0, %v825_v6, 0.0  ;;  %4297 = vmatprep.subr.mxu1 %v4773_v9  ;;  %4288 = vmatprep.subr.mxu0 %v4773_v9  ;;  %v4149_v27 = vld [vmem:[%s5723_s0] ss:$0 sm:$0xff]  ;;  %v980_v41 = vunpack.c.l.s4 %v4781_v40  ;;  %s4782_s0 = smov 16   ;;  %s5684_s5 = smov 8   ;;  %vm2167_vm3 = vcmask 130048  }
  0x56   : > { %4299 = vmatprep.mubr.msk.f32.mxu1 %vm4774_vm1, %v4773_v9  ;;  %4289 = vmatpush3.msra.mxu0 %v853_v10  ;;  %v949_v38 = vunpack.c.0.s8 %v948_v36  ;;  %vm2169_vm4 = vcmask 195584   ;;  %s5731_s22 = sld [smem:[#allocation32_spill]] }
  0x57   : > { %4290 = vmatprep.subr.mxu0 %v4773_v9  ;;  %v981_v47 = vunpack.c.0.s8 %v980_v41  ;;  %s5726_s16 = smov %s5725_s4 }
  0x58   : > { %827 = vadd.xlane.f32.xlu0 %v826_v7  ;;  %4291 = vmatpush3.msra.mxu0 %v852_v11  ;;  %v4148_v24 = vld [vmem:[%s5722_s29] ss:$0 sm:$0xff]  ;;  %v5106_v44 = vsub.s32 %v949_v38, %v951_v39 }
  0x59   : > { %4292 = vmatprep.subr.mxu0 %v4773_v9  ;;  %v5116_v53 = vsub.s32 %v981_v47, %v951_v39 }
  0x5a   : > { %4293 = vmatpush3.msra.mxu0 %v851_v12 }
  0x5b   : > { %4317 = vmatprep.subr.mxu0 %v4773_v9 }
  0xdd   : > { %v822_v13 = vpop.xlane.xlu0 %821 }
  0xde   : > { %v824_v14 = vmul.f32 0.03125, %v822_v13 }
  0xe0   : > { %v830_v16 = vmul.f32 %v824_v14, %v824_v14  ;;  %v832_v20 = vsub.f32 %v5042_v4, %v824_v14 }
  0xe1   : > { %v828_v15 = vpop.xlane.xlu0 %827 }
  0xe2   : > { %v829_v17 = vmul.f32 0.03125, %v828_v15 }
  0xe4   : > { %v831_v18 = vsub.f32 %v829_v17, %v830_v16 }
  0xe6   : > { %v833_v19 = vadd.f32 1e-05, %v831_v18 }
  0xe8   : > { %4567 = vrsqrt.f32 %v833_v19 }
  0xf5   : > { %v4568_v21 = vpop.eup %4567 }
  0xf6   : > { %v835_v23 = vmul.f32 %v4568_v21, %v832_v20 }
  0xf8   : > { %v842_v25 = vmul.f32 %v4147_v22, %v835_v23 }
  0xfa   : > { %v849_v26 = vadd.f32 %v4148_v24, %v842_v25 }
  0xfc   : > { %4295 = vmatmul.mubr.msk.f32.vlgmr.msra.gmra.mxu0 %vm819_vm0, %v849_v26 }
  0xfd   : > { %4319 = vmatprep.mubr.msk.f32.mxu0 %vm4774_vm1, %v4773_v9 }
 0x1bc   : > { %v931_v28 = vpop.f32.mrf.mxu0 }
 0x1bd   : > { %v932_v29 = vadd.f32 %v4149_v27, %v931_v28 }
 0x1be   : > { %v4296_v30 = vpop.f32.mrf.mxu0 }
 0x1bf   : > { %942 = vrot.lane.b32.xlu0 %v932_v29, %s4775_s1  ;;  %936 = vrot.lane.b32.xlu1 %v932_v29, %s4776_s2 }
 0x1c3   : > { %939 = vrot.lane.b32.xlu1 %v932_v29, %s4777_s21 }
 0x1c7   : > { %1081 = vrot.lane.b32.xlu1 %v932_v29, %s4778_s6 }
 0x231   : > { %v5088_v31 = vpop.permute.xlu1 %936  ;;  %v5096_v33 = vpop.permute.xlu0 %942 }
 0x232   : > { %1083 = vrot.lane.b32.xlu1 %v5088_v31, %s4778_s6  ;;  %v961_v45 = vcombine.low %v5088_v31, %v5096_v33  ;;  %v962_v46 = vcombine.high %v5088_v31, %v5096_v33 }
 0x234   : > { %v969_v51 = vrot.slane %v961_v45, %v5106_v44  ;;  %v976_v52 = vrot.slane %v962_v46, %v5106_v44 }
 0x235   : > { %v5092_v32 = vpop.permute.xlu1 %939 }
 0x236   : > { %1085 = vrot.lane.b32.xlu1 %v5092_v32, %s4778_s6  ;;  %v945_v42 = vcombine.low %v932_v29, %v5092_v32  ;;  %v946_v43 = vcombine.high %v932_v29, %v5092_v32 }
 0x238   : > { %v953_v48 = vrot.slane %v945_v42, %v5106_v44  ;;  %v960_v49 = vrot.slane %v946_v43, %v5106_v44 }
 0x239   : > { %v1082_v34 = vpop.permute.xlu1 %1081 }
 0x23a   : > { %2255 = vst.msk [vmem:[%s5682_s27] sm:$0xff] %vm819_vm0, %v1082_v34  ;;  %1087 = vrot.lane.b32.xlu1 %v5096_v33, %s4778_s6  ;;  %v977_v54 = vcombine.low %v953_v48, %v969_v51  ;;  %v978_v55 = vcombine.high %v953_v48, %v969_v51  ;;  %v993_v56 = vcombine.low %v960_v49, %v976_v52  ;;  %s5728_s27 = smov 24  }
 0x23b   : > { %v994_v57 = vcombine.high %v960_v49, %v976_v52 }
 0x23c   : > { %v985_v61 = vrot.slane %v977_v54, %v5116_v53  ;;  %v992_v62 = vrot.slane %v978_v55, %v5116_v53  ;;  %v1001_v63 = vrot.slane %v993_v56, %v5116_v53 }
 0x23d   : > { %v1008_v0 = vrot.slane %v994_v57, %v5116_v53 }
 0x23e   : > { %1229 = vrot.lane.b32.xlu1 %v932_v29, %s4779_s30  ;;  %v1013_v10 = vcombine.low %v985_v61, %v992_v62  ;;  %v4151_v11 = vcombine.high %v985_v61, %v992_v62 }
 0x23f   : > { %v1029_v12 = vcombine.low %v1001_v63, %v1008_v0  ;;  %v4152_v13 = vcombine.high %v1001_v63, %v1008_v0  ;;  %v850_v0 = vld [vmem:[%s5724_s17] sm:$0xff]  ;;  %s5683_s17 = smov 24  }
 0x240   : > { %v1020_v23 = vrot.slane %v1013_v10, %v5106_v44  ;;  %v1028_v24 = vrot.slane %v4151_v11, %v5106_v44 }
 0x241   : > { %v1036_v25 = vrot.slane %v1029_v12, %v5106_v44  ;;  %v1044_v26 = vrot.slane %v4152_v13, %v5106_v44 }
 0x242   : > { %v1045_v38 = vcombine.low %v1020_v23, %v1028_v24 }
 0x243   : > { %v1061_v39 = vcombine.low %v1036_v25, %v1044_v26  ;;  %v1062_v51 = vcombine.high %v1036_v25, %v1044_v26 }
 0x244   : > { %v1053_v45 = vrot.slane %v1045_v38, %v5116_v53 }
 0x245   : > { %v1069_v46 = vrot.slane %v1061_v39, %v5116_v53 }
 0x247   : > { %v1077_v52 = vcombine.low %v1053_v45, %v1069_v46  ;;  %v1078_v57 = vcombine.high %v1053_v45, %v1069_v46 }
 0x2a4   : > { %v1084_v50 = vpop.permute.xlu1 %1083 }
 0x2a8   : > { %v1086_v58 = vpop.permute.xlu1 %1085 }
 0x2a9   : > { %v1093_v59 = vcombine.low %v1082_v34, %v1086_v58  ;;  %v1094_v60 = vcombine.high %v1082_v34, %v1086_v58 }
 0x2ab   : > { %v1101_v5 = vrot.slane %v1093_v59, %v5106_v44  ;;  %v1108_v6 = vrot.slane %v1094_v60, %v5106_v44  ;;  %v1076_v59 = vrot.slane %v1062_v51, %v5116_v53 }
 0x2ac   : > { %v1088_v1 = vpop.permute.xlu1 %1087 }
 0x2ad   : > { %v1109_v2 = vcombine.low %v1084_v50, %v1088_v1  ;;  %v1110_v3 = vcombine.high %v1084_v50, %v1088_v1  ;;  %v1046_v50 = vcombine.high %v1020_v23, %v1028_v24 }
 0x2af   : > { %v1117_v7 = vrot.slane %v1109_v2, %v5106_v44  ;;  %v1124_v8 = vrot.slane %v1110_v3, %v5106_v44  ;;  %v1060_v58 = vrot.slane %v1046_v50, %v5116_v53 }
 0x2b0   : > { %v5126_v14 = vpop.permute.xlu1 %1229 }
 0x2b1   : > { %v1125_v15 = vcombine.low %v1101_v5, %v1117_v7  ;;  %v1126_v16 = vcombine.high %v1101_v5, %v1117_v7  ;;  %v1141_v17 = vcombine.low %v1108_v6, %v1124_v8  ;;  %v1142_v18 = vcombine.high %v1108_v6, %v1124_v8  ;;  %2256 = vst.msk [vmem:[%s5681_s23] sm:$0xff] %vm819_vm0, %v5126_v14 }
 0x2b2   : > { %v1079_v61 = vcombine.low %v1060_v58, %v1076_v59  ;;  %v1080_v63 = vcombine.high %v1060_v58, %v1076_v59 }
 0x2b3   : > { %v1133_v19 = vrot.slane %v1125_v15, %v5116_v53  ;;  %v1140_v20 = vrot.slane %v1126_v16, %v5116_v53  ;;  %v1149_v21 = vrot.slane %v1141_v17, %v5116_v53  ;;  %v1156_v22 = vrot.slane %v1142_v18, %v5116_v53 }
 0x2b5   : > { %v1161_v27 = vcombine.low %v1133_v19, %v1140_v20  ;;  %v4153_v28 = vcombine.high %v1133_v19, %v1140_v20  ;;  %v1177_v29 = vcombine.low %v1149_v21, %v1156_v22  ;;  %v4154_v30 = vcombine.high %v1149_v21, %v1156_v22 }
 0x2b7   : > { %v1168_v34 = vrot.slane %v1161_v27, %v5106_v44  ;;  %v1176_v35 = vrot.slane %v4153_v28, %v5106_v44  ;;  %v1184_v36 = vrot.slane %v1177_v29, %v5106_v44  ;;  %v1192_v37 = vrot.slane %v4154_v30, %v5106_v44 }
 0x2b9   : > { %v1193_v40 = vcombine.low %v1168_v34, %v1176_v35  ;;  %v1209_v41 = vcombine.low %v1184_v36, %v1192_v37  ;;  %v1194_v47 = vcombine.high %v1168_v34, %v1176_v35  ;;  %v1210_v48 = vcombine.high %v1184_v36, %v1192_v37 }
 0x2bb   : > { %v1201_v42 = vrot.slane %v1193_v40, %v5116_v53  ;;  %v1217_v43 = vrot.slane %v1209_v41, %v5116_v53  ;;  %v1208_v55 = vrot.slane %v1194_v47, %v5116_v53  ;;  %v1224_v56 = vrot.slane %v1210_v48, %v5116_v53 }
 0x2bd   : > { %v1225_v49 = vcombine.low %v1201_v42, %v1217_v43  ;;  %v1226_v54 = vcombine.high %v1201_v42, %v1217_v43  ;;  %v1227_v60 = vcombine.low %v1208_v55, %v1224_v56  ;;  %v1228_v62 = vcombine.high %v1208_v55, %v1224_v56 }
 0x2bf   : > { %4298 = vmatpush3.xpose.msk.msra.mxu1 %vm1377_vm2, %v1225_v49 }
 0x2c0   : > { %4302 = vmatprep.subr.mxu1 %v4773_v9 }
 0x2c2   : > { %4300 = vmatmul.mubr.msk.f32.vlgmr.msra.gmra.mxu1 %vm1377_vm2, %v1077_v52 }
 0x2c3   : > { %4303 = vmatpush3.xpose.msk.msra.mxu1 %vm1377_vm2, %v1226_v54  ;;  %4304 = vmatprep.mubr.msk.f32.mxu1 %vm4774_vm1, %v4773_v9 }
 0x2c4   : > { %4307 = vmatprep.subr.mxu1 %v4773_v9 }
 0x2c6   : > { %4305 = vmatmul.mubr.msk.f32.vlgmr.msra.gmra.mxu1 %vm1377_vm2, %v1078_v57 }
 0x2c7   : > { %4308 = vmatpush3.xpose.msk.msra.mxu1 %vm1377_vm2, %v1227_v60  ;;  %4309 = vmatprep.mubr.msk.f32.mxu1 %vm4774_vm1, %v4773_v9 }
 0x2c8   : > { %4312 = vmatprep.subr.mxu1 %v4773_v9 }
 0x2ca   : > { %4310 = vmatmul.mubr.msk.f32.vlgmr.msra.gmra.mxu1 %vm1377_vm2, %v1079_v61 }
 0x2cb   : > { %4313 = vmatpush3.xpose.msk.msra.mxu1 %vm1377_vm2, %v1228_v62  ;;  %4314 = vmatprep.mubr.msk.f32.mxu1 %vm4774_vm1, %v4773_v9 }
 0x2cc   : > { %4322 = vmatprep.subr.mxu1 %v4773_v9 }
 0x2ce   : > { %4315 = vmatmul.mubr.msk.f32.vlgmr.msra.gmra.mxu1 %vm1377_vm2, %v1080_v63 }
 0x2cf   : > { %4324 = vmatprep.mubr.msk.f32.mxu1 %vm4774_vm1, %v4773_v9 }
 0x382   : > { %v1450_v1 = vpop.f32.mrf.mxu1 }
 0x383   : > { %v1451_v2 = vadd.f32 %v1450_v1, %v850_v0 }
 0x384   : > { %v4301_v3 = vpop.f32.mrf.mxu1 }
 0x385   : > { %v1682_v5 = vsel %vm1377_vm2, %v1451_v2, -inf }
 0x386   : > { %1683 = vmax.xlane.f32.xlu1 %v1682_v5  ;;  %v1526_v6 = vpop.f32.mrf.mxu1 }
 0x387   : > { %v1527_v7 = vadd.f32 %v1526_v6, %v850_v0 }
 0x388   : > { %v4306_v8 = vpop.f32.mrf.mxu1 }
 0x389   : > { %v1685_v10 = vsel %vm1377_vm2, %v1527_v7, -inf }
 0x38a   : > { %1686 = vmax.xlane.f32.xlu0 %v1685_v10  ;;  %v1602_v11 = vpop.f32.mrf.mxu1 }
 0x38b   : > { %v1603_v12 = vadd.f32 %v1602_v11, %v850_v0 }
 0x38c   : > { %v4311_v13 = vpop.f32.mrf.mxu1 }
 0x38d   : > { %v1688_v15 = vsel %vm1377_vm2, %v1603_v12, -inf }
 0x38e   : > { %1689 = vmax.xlane.f32.xlu1 %v1688_v15  ;;  %v1678_v16 = vpop.f32.mrf.mxu1 }
 0x38f   : > { %v1679_v17 = vadd.f32 %v1678_v16, %v850_v0 }
 0x390   : > { %v4316_v18 = vpop.f32.mrf.mxu1 }
 0x391   : > { %v1691_v19 = vsel %vm1377_vm2, %v1679_v17, -inf }
 0x392   : > { %1692 = vmax.xlane.f32.xlu0 %v1691_v19  ;;  %v2174_v19 = vld [vmem:[%s5725_s4 + $0x18] sm:$0xff] }
 0x39f   : > { %1233 = vrot.lane.b32.xlu1 %v5092_v32, %s4779_s30 }
 0x3a3   : > { %1235 = vrot.lane.b32.xlu1 %v5096_v33, %s4779_s30 }
 0x3a8   : > { %1231 = vrot.lane.b32.xlu0 %v5088_v31, %s4779_s30 }
 0x40f   : > { %v1684_v20 = vpop.xlane.xlu1 %1683 }
 0x410   : > { %v1694_v21 = vsub.f32 %v1451_v2, %v1684_v20 }
 0x412   : > { %v1698_v22 = vmul.f32 1.442695, %v1694_v21 }
 0x413   : > { %v1687_v23 = vpop.xlane.xlu0 %1686 }
 0x414   : > { %4569 = vpow2.f32 %v1698_v22  ;;  %v1695_v24 = vsub.f32 %v1527_v7, %v1687_v23 }
 0x416   : > { %v1700_v25 = vmul.f32 1.442695, %v1695_v24 }
 0x417   : > { %v1690_v26 = vpop.xlane.xlu1 %1689 }
 0x418   : > { %4571 = vpow2.f32 %v1700_v25  ;;  %v1696_v27 = vsub.f32 %v1603_v12, %v1690_v26 }
 0x41a   : > { %v1702_v28 = vmul.f32 1.442695, %v1696_v27 }
 0x41b   : > { %v1693_v29 = vpop.xlane.xlu0 %1692  ;;  %v1234_v30 = vpop.permute.xlu1 %1233 }
 0x41c   : > { %4573 = vpow2.f32 %v1702_v28  ;;  %v1697_v32 = vsub.f32 %v1679_v17, %v1693_v29  ;;  %v1241_v33 = vcombine.low %v5126_v14, %v1234_v30  ;;  %v1242_v31 = vcombine.high %v5126_v14, %v1234_v30 }
 0x41e   : > { %v1704_v34 = vmul.f32 1.442695, %v1697_v32  ;;  %v1249_v40 = vrot.slane %v1241_v33, %v5106_v44  ;;  %v1256_v41 = vrot.slane %v1242_v31, %v5106_v44 }
 0x41f   : > { %v1232_v35 = vpop.permute.xlu0 %1231  ;;  %v1236_v36 = vpop.permute.xlu1 %1235 }
 0x420   : > { %4575 = vpow2.f32 %v1704_v34  ;;  %v1257_v37 = vcombine.low %v1232_v35, %v1236_v36  ;;  %v1258_v38 = vcombine.high %v1232_v35, %v1236_v36 }
 0x421   : > { %v4570_v39 = vpop.eup %4569 }
 0x422   : > { %v1265_v42 = vrot.slane %v1257_v37, %v5106_v44  ;;  %v1272_v43 = vrot.slane %v1258_v38, %v5106_v44  ;;  %v1706_v45 = vsel %vm1377_vm2, %v4570_v39, 0.0 }
 0x423   : > { %1707 = vadd.xlane.f32.xlu0 %v1706_v45 }
 0x424   : > { %v1273_v46 = vcombine.low %v1249_v40, %v1265_v42  ;;  %v1274_v47 = vcombine.high %v1249_v40, %v1265_v42  ;;  %v1289_v14 = vcombine.low %v1256_v41, %v1272_v43  ;;  %v1290_v48 = vcombine.high %v1256_v41, %v1272_v43 }
 0x425   : > { %v4572_v49 = vpop.eup %4571 }
 0x426   : > { %v1281_v50 = vrot.slane %v1273_v46, %v5116_v53  ;;  %v1288_v51 = vrot.slane %v1274_v47, %v5116_v53  ;;  %v1297_v52 = vrot.slane %v1289_v14, %v5116_v53  ;;  %v1304_v54 = vrot.slane %v1290_v48, %v5116_v53 }
 0x427   : > { %v1709_v55 = vsel %vm1377_vm2, %v4572_v49, 0.0 }
 0x428   : > { %v1309_v56 = vcombine.low %v1281_v50, %v1288_v51  ;;  %v4155_v57 = vcombine.high %v1281_v50, %v1288_v51  ;;  %v1325_v58 = vcombine.low %v1297_v52, %v1304_v54  ;;  %v4156_v59 = vcombine.high %v1297_v52, %v1304_v54  ;;  %1710 = vadd.xlane.f32.xlu1 %v1709_v55  ;;  %v2173_v52 = vld [vmem:[%s5726_s16 + $0x10] sm:$0xff]  ;;  %v2172_v54 = vld [vmem:[%s5726_s16 + $0x8] sm:$0xff] }
 0x429   : > { %v4574_v60 = vpop.eup %4573 }
 0x42a   : > { %v1316_v61 = vrot.slane %v1309_v56, %v5106_v44  ;;  %v1324_v62 = vrot.slane %v4155_v57, %v5106_v44  ;;  %v1332_v63 = vrot.slane %v1325_v58, %v5106_v44  ;;  %v1340_v0 = vrot.slane %v4156_v59, %v5106_v44 }
 0x42b   : > { %v1712_v1 = vsel %vm1377_vm2, %v4574_v60, 0.0 }
 0x42c   : > { %1713 = vadd.xlane.f32.xlu0 %v1712_v1  ;;  %v1341_v2 = vcombine.low %v1316_v61, %v1324_v62  ;;  %v1357_v3 = vcombine.low %v1332_v63, %v1340_v0  ;;  %v1342_v5 = vcombine.high %v1316_v61, %v1324_v62  ;;  %v1358_v6 = vcombine.high %v1332_v63, %v1340_v0  ;;  %v2171_v63 = vld [vmem:[%s5726_s16] sm:$0xff] }
 0x42d   : > { %v4576_v7 = vpop.eup %4575 }
 0x42e   : > { %v1715_v8 = vsel %vm1377_vm2, %v4576_v7, 0.0  ;;  %v1349_v10 = vrot.slane %v1341_v2, %v5116_v53  ;;  %v1365_v11 = vrot.slane %v1357_v3, %v5116_v53  ;;  %v1356_v12 = vrot.slane %v1342_v5, %v5116_v53 }
 0x42f   : > { %v1372_v13 = vrot.slane %v1358_v6, %v5116_v53 }
 0x430   : > { %1716 = vadd.xlane.f32.xlu0 %v1715_v8  ;;  %v1373_v15 = vcombine.low %v1349_v10, %v1365_v11  ;;  %v1374_v16 = vcombine.high %v1349_v10, %v1365_v11 }
 0x431   : > { %v1375_v17 = vcombine.low %v1356_v12, %v1372_v13  ;;  %v1376_v18 = vcombine.high %v1356_v12, %v1372_v13 }
 0x432   : > { %4318 = vmatpush3.msra.mxu0 %v1373_v15  ;;  %4323 = vmatpush3.msra.mxu1 %v1374_v16 }
 0x433   : > { %4320 = vmatmul.mubr.msk.f32.vlgmr.msra.gmra.mxu0 %vm1377_vm2, %v4570_v39  ;;  %4325 = vmatmul.mubr.msk.f32.vlgmr.msra.gmra.mxu1 %vm1377_vm2, %v4572_v49 }
 0x434   : > { %4327 = vmatprep.subr.mxu0 %v4773_v9  ;;  %4332 = vmatprep.subr.mxu1 %v4773_v9 }
 0x435   : > { %4328 = vmatpush3.msra.mxu0 %v1375_v17  ;;  %4333 = vmatpush3.msra.mxu1 %v1376_v18 }
 0x436   : > { %4329 = vmatprep.mubr.msk.f32.mxu0 %vm4774_vm1, %v4773_v9  ;;  %4334 = vmatprep.mubr.msk.f32.mxu1 %vm4774_vm1, %v4773_v9 }
 0x437   : > { %4330 = vmatmul.mubr.msk.f32.vlgmr.msra.gmra.mxu0 %vm1377_vm2, %v4574_v60  ;;  %4335 = vmatmul.mubr.msk.f32.vlgmr.msra.gmra.mxu1 %vm1377_vm2, %v4576_v7 }
 0x438   : > { %4337 = vmatprep.subr.mxu0 %v4773_v9  ;;  %4345 = vmatprep.mubr.msk.f32.mxu0 %vm4774_vm1, %v4773_v9 }
 0x439   : > { %4348 = vmatprep.subr.mxu1 %v4773_v9  ;;  %4356 = vmatprep.mubr.msk.f32.mxu1 %vm4774_vm1, %v4773_v9 }
 0x43a   : > { %4338 = vmatpush3.msra.mxu0 %v2174_v19 }
 0x43b   : > { %4339 = vmatprep.subr.mxu0 %v4773_v9 }
 0x43c   : > { %4340 = vmatpush3.msra.mxu0 %v2173_v52 }
 0x43d   : > { %4341 = vmatprep.subr.mxu0 %v4773_v9 }
 0x43e   : > { %4342 = vmatpush3.msra.mxu0 %v2172_v54 }
 0x43f   : > { %4343 = vmatprep.subr.mxu0 %v4773_v9 }
 0x440   : > { %4344 = vmatpush3.msra.mxu0 %v2171_v63 }
 0x441   : > { %4359 = vmatprep.subr.mxu0 %v4773_v9 }
 0x4ac   : > { %v1708_v20 = vpop.xlane.xlu0 %1707 }
 0x4ad   : > { %4577 = vrcp.f32 %v1708_v20 }
 0x4b1   : > { %v1711_v22 = vpop.xlane.xlu1 %1710 }
 0x4b2   : > { %4579 = vrcp.f32 %v1711_v22 }
 0x4b5   : > { %v1714_v21 = vpop.xlane.xlu0 %1713 }
 0x4b6   : > { %4581 = vrcp.f32 %v1714_v21 }
 0x4b9   : > { %v1717_v23 = vpop.xlane.xlu0 %1716 }
 0x4ba   : > { %4583 = vrcp.f32 %v1717_v23  ;;  %v4578_v26 = vpop.eup %4577 }
 0x4bf   : > { %v4580_v27 = vpop.eup %4579 }
 0x4c3   : > { %v4582_v30 = vpop.eup %4581 }
 0x4c7   : > { %v4584_v32 = vpop.eup %4583 }
 0x4f3   : > { %v1787_v24 = vpop.f32.mrf.mxu0  ;;  %v1860_v25 = vpop.f32.mrf.mxu1 }
 0x4f4   : > { %v2014_v31 = vmul.f32 %v4578_v26, %v1787_v24  ;;  %v2015_v35 = vmul.f32 %v4580_v27, %v1860_v25  ;;  %v4171_v25 = vld [vmem:[%s5647_s7] ss:$0 sm:$0xff] }
 0x4f5   : > { %v4321_v28 = vpop.f32.mrf.mxu0  ;;  %v4326_v29 = vpop.f32.mrf.mxu1 }
 0x4f7   : > { %v1933_v33 = vpop.f32.mrf.mxu0  ;;  %v2006_v34 = vpop.f32.mrf.mxu1 }
 0x4f8   : > { %v2016_v36 = vmul.f32 %v4582_v30, %v1933_v33  ;;  %v2017_v37 = vmul.f32 %v4584_v32, %v2006_v34  ;;  %v2292_v34 = vld [vmem:[%s5650_s10 + $0x18] sm:$0xff] }
 0x4f9   : > { %v4331_v38 = vpop.f32.mrf.mxu0  ;;  %v4336_v39 = vpop.f32.mrf.mxu1  ;;  %4349 = vmatpush3.msra.mxu1 %v2292_v34 }
 0x4fa   : > { %v2018_v40 = vcombine.low %v2014_v31, %v2016_v36  ;;  %v2019_v41 = vcombine.high %v2014_v31, %v2016_v36  ;;  %v2034_v42 = vcombine.low %v2015_v35, %v2017_v37  ;;  %v2035_v43 = vcombine.high %v2015_v35, %v2017_v37  ;;  %v2291_v31 = vld [vmem:[%s5650_s10 + $0x10] sm:$0xff]  ;;  %4350 = vmatprep.subr.mxu1 %v4773_v9  ;;  %v2289_v35 = vld [vmem:[%s5650_s10] sm:$0xff] }
 0x4fb   : > { %4351 = vmatpush3.msra.mxu1 %v2291_v31 }
 0x4fc   : > { %v2026_v45 = vrot.slane %v2018_v40, %v5106_v44  ;;  %v2033_v46 = vrot.slane %v2019_v41, %v5106_v44  ;;  %v2042_v47 = vrot.slane %v2034_v42, %v5106_v44  ;;  %v2049_v14 = vrot.slane %v2035_v43, %v5106_v44  ;;  %4352 = vmatprep.subr.mxu1 %v4773_v9 }
 0x4fe   : > { %v2050_v48 = vcombine.low %v2026_v45, %v2042_v47  ;;  %v2051_v49 = vcombine.high %v2026_v45, %v2042_v47  ;;  %v2066_v50 = vcombine.low %v2033_v46, %v2049_v14  ;;  %v2067_v51 = vcombine.high %v2033_v46, %v2049_v14  ;;  %v4173_v46 = vld [vmem:[%s5648_s8] ss:$0 sm:$0xff] }
 0x4ff   : > { %v4174_v14 = vld [vmem:[%s5649_s9] ss:$0 sm:$0xff] }
 0x500   : > { %v2058_v55 = vrot.slane %v2050_v48, %v5116_v53  ;;  %v2065_v56 = vrot.slane %v2051_v49, %v5116_v53  ;;  %v2074_v57 = vrot.slane %v2066_v50, %v5116_v53  ;;  %v2081_v58 = vrot.slane %v2067_v51, %v5116_v53  ;;  %v4175_v50 = vld [vmem:[%s5651_s11] ss:$0 sm:$0xff] }
 0x502   : > { %v2086_v59 = vcombine.low %v2058_v55, %v2065_v56  ;;  %v4169_v60 = vcombine.high %v2058_v55, %v2065_v56  ;;  %v2102_v61 = vcombine.low %v2074_v57, %v2081_v58  ;;  %v4170_v62 = vcombine.high %v2074_v57, %v2081_v58 }
 0x504   : > { %v2093_v0 = vrot.slane %v2086_v59, %v5106_v44  ;;  %v2101_v1 = vrot.slane %v4169_v60, %v5106_v44  ;;  %v2109_v2 = vrot.slane %v2102_v61, %v5106_v44  ;;  %v2117_v3 = vrot.slane %v4170_v62, %v5106_v44 }
 0x506   : > { %v2119_v5 = vcombine.high %v2093_v0, %v2101_v1  ;;  %v2135_v6 = vcombine.high %v2109_v2, %v2117_v3  ;;  %v2118_v7 = vcombine.low %v2093_v0, %v2101_v1  ;;  %v2134_v8 = vcombine.low %v2109_v2, %v2117_v3 }
 0x508   : > { %v2133_v10 = vrot.slane %v2119_v5, %v5116_v53  ;;  %v2149_v11 = vrot.slane %v2135_v6, %v5116_v53  ;;  %v2126_v12 = vrot.slane %v2118_v7, %v5116_v53  ;;  %v2142_v13 = vrot.slane %v2134_v8, %v5116_v53 }
 0x50a   : > { %v2152_v15 = vcombine.low %v2133_v10, %v2149_v11  ;;  %v2151_v16 = vcombine.high %v2126_v12, %v2142_v13  ;;  %v2150_v17 = vcombine.low %v2126_v12, %v2142_v13  ;;  %v2153_v18 = vcombine.high %v2133_v10, %v2149_v11 }
 0x50c   : > { %2159 = vrot.lane.b32.xlu0 %v2152_v15, %s4782_s0  ;;  %2155 = vrot.lane.b32.xlu1 %v2151_v16, %s5684_s5 }
 0x510   : > { %2163 = vrot.lane.b32.xlu1 %v2153_v18, %s5683_s17 }
 0x57e   : > { %v2156_v19 = vpop.permute.xlu1 %2155  ;;  %v2160_v20 = vpop.permute.xlu0 %2159 }
 0x57f   : > { %v2166_v21 = vsel %vm1377_vm2, %v2150_v17, %v2156_v19 }
 0x580   : > { %v2168_v23 = vsel %vm2167_vm3, %v2166_v21, %v2160_v20 }
 0x582   : > { %v2164_v22 = vpop.permute.xlu1 %2163 }
 0x583   : > { %v2170_v24 = vsel %vm2169_vm4, %v2168_v23, %v2164_v22 }
 0x584   : > { %4346 = vmatmul.mubr.msk.f32.vlgmr.msra.gmra.mxu0 %vm819_vm0, %v2170_v24 }
 0x585   : > { %4361 = vmatprep.mubr.msk.f32.mxu0 %vm4774_vm1, %v4773_v9 }
 0x644   : > { %v2251_v26 = vpop.f32.mrf.mxu0 }
 0x645   : > { %v2252_v27 = vadd.f32 %v4171_v25, %v2251_v26 }
 0x646   : > { %v4347_v28 = vpop.f32.mrf.mxu0 }
 0x647   : > { %v5268_v29 = vadd.f32 %v2252_v27, %v5042_v4  ;;  %v2290_v4 = vld [vmem:[%s5650_s10 + $0x8] sm:$0xff] }
 0x648   : > { %4353 = vmatpush3.msra.mxu1 %v2290_v4 }
 0x649   : > { %v2260_v30 = vsel %vm819_vm0, %v5268_v29, 0.0  ;;  %v2264_v32 = vmul.f32 %v5268_v29, %v5268_v29  ;;  %4354 = vmatprep.subr.mxu1 %v4773_v9 }
 0x64a   : > { %2261 = vadd.xlane.f32.xlu1 %v2260_v30  ;;  %4355 = vmatpush3.msra.mxu1 %v2289_v35 }
 0x64b   : > { %v2265_v33 = vsel %vm819_vm0, %v2264_v32, 0.0  ;;  %4364 = vmatprep.subr.mxu1 %v4773_v9 }
 0x64c   : > { %2266 = vadd.xlane.f32.xlu0 %v2265_v33 }
 0x6d3   : > { %v2262_v36 = vpop.xlane.xlu1 %2261 }
 0x6d4   : > { %v2263_v37 = vmul.f32 0.03125, %v2262_v36 }
 0x6d5   : > { %v2267_v38 = vpop.xlane.xlu0 %2266 }
 0x6d6   : > { %v2269_v39 = vmul.f32 %v2263_v37, %v2263_v37  ;;  %v2268_v40 = vmul.f32 0.03125, %v2267_v38  ;;  %v2271_v43 = vsub.f32 %v5268_v29, %v2263_v37 }
 0x6d8   : > { %v2270_v41 = vsub.f32 %v2268_v40, %v2269_v39 }
 0x6da   : > { %v2272_v42 = vadd.f32 1e-05, %v2270_v41 }
 0x6dc   : > { %4585 = vrsqrt.f32 %v2272_v42 }
 0x6e9   : > { %v4586_v45 = vpop.eup %4585 }
 0x6ea   : > { %v2274_v47 = vmul.f32 %v4586_v45, %v2271_v43 }
 0x6ec   : > { %v2281_v48 = vmul.f32 %v4173_v46, %v2274_v47 }
 0x6ee   : > { %v2288_v49 = vadd.f32 %v4174_v14, %v2281_v48 }
 0x6f0   : > { %4357 = vmatmul.mubr.msk.f32.vlgmr.msra.gmra.mxu1 %vm819_vm0, %v2288_v49 }
 0x6f1   : > { %4366 = vmatprep.mubr.msk.f32.mxu1 %vm4774_vm1, %v4773_v9 }
 0x7b0   : > { %v2369_v51 = vpop.f32.mrf.mxu1 }
 0x7b1   : > { %v2370_v52 = vadd.f32 %v4175_v50, %v2369_v51 }
 0x7b2   : > { %v4358_v54 = vpop.f32.mrf.mxu1 }
 0x7b3   : > { %2377 = vrot.lane.b32.xlu1 %v2370_v52, %s4777_s21  ;;  %2374 = vrot.lane.b32.xlu0 %v2370_v52, %s4776_s2 }
 0x7b7   : > { %2380 = vrot.lane.b32.xlu1 %v2370_v52, %s4775_s1  ;;  %2519 = vrot.lane.b32.xlu0 %v2370_v52, %s4778_s6  ;;  %s5729_s1 = sld [smem:[#allocation33_spill]] }
 0x825   : > { %v5308_v55 = vpop.permute.xlu1 %2377  ;;  %v5310_v56 = vpop.permute.xlu0 %2374 }
 0x826   : > { %2523 = vrot.lane.b32.xlu0 %v5308_v55, %s4778_s6  ;;  %2521 = vrot.lane.b32.xlu1 %v5310_v56, %s4778_s6  ;;  %v2383_v60 = vcombine.low %v2370_v52, %v5308_v55  ;;  %v2384_v61 = vcombine.high %v2370_v52, %v5308_v55 }
 0x828   : > { %v2391_v1 = vrot.slane %v2383_v60, %v5106_v44  ;;  %v2398_v2 = vrot.slane %v2384_v61, %v5106_v44 }
 0x829   : > { %v5316_v57 = vpop.permute.xlu1 %2380  ;;  %v2520_v0 = vpop.permute.xlu0 %2519 }
 0x82a   : > { %2525 = vrot.lane.b32.xlu1 %v5316_v57, %s4778_s6  ;;  %v2399_v58 = vcombine.low %v5310_v56, %v5316_v57  ;;  %v2400_v59 = vcombine.high %v5310_v56, %v5316_v57  ;;  %s5730_s6 = sld [smem:[#allocation31_spill]] }
 0x82c   : > { %v2407_v62 = vrot.slane %v2399_v58, %v5106_v44  ;;  %v2414_v63 = vrot.slane %v2400_v59, %v5106_v44 }
 0x82e   : > { %2667 = vrot.lane.b32.xlu1 %v2370_v52, %s4779_s30  ;;  %v2415_v3 = vcombine.low %v2391_v1, %v2407_v62  ;;  %v2416_v5 = vcombine.high %v2391_v1, %v2407_v62  ;;  %v2431_v6 = vcombine.low %v2398_v2, %v2414_v63  ;;  %v2432_v7 = vcombine.high %v2398_v2, %v2414_v63 }
 0x830   : > { %v2423_v13 = vrot.slane %v2415_v3, %v5116_v53  ;;  %v2430_v15 = vrot.slane %v2416_v5, %v5116_v53  ;;  %v2439_v16 = vrot.slane %v2431_v6, %v5116_v53  ;;  %v2446_v17 = vrot.slane %v2432_v7, %v5116_v53 }
 0x832   : > { %v2451_v25 = vcombine.low %v2423_v13, %v2430_v15  ;;  %v4177_v26 = vcombine.high %v2423_v13, %v2430_v15  ;;  %v2467_v27 = vcombine.low %v2439_v16, %v2446_v17  ;;  %v4178_v28 = vcombine.high %v2439_v16, %v2446_v17 }
 0x834   : > { %v2458_v37 = vrot.slane %v2451_v25, %v5106_v44  ;;  %v2466_v38 = vrot.slane %v4177_v26, %v5106_v44  ;;  %v2474_v39 = vrot.slane %v2467_v27, %v5106_v44  ;;  %v2482_v40 = vrot.slane %v4178_v28, %v5106_v44 }
 0x836   : > { %v2483_v49 = vcombine.low %v2458_v37, %v2466_v38  ;;  %v2499_v50 = vcombine.low %v2474_v39, %v2482_v40  ;;  %v2484_v61 = vcombine.high %v2458_v37, %v2466_v38 }
 0x838   : > { %v2491_v62 = vrot.slane %v2483_v49, %v5116_v53  ;;  %v2507_v63 = vrot.slane %v2499_v50, %v5116_v53  ;;  %v2498_v6 = vrot.slane %v2484_v61, %v5116_v53 }
 0x83a   : > { %v2515_v7 = vcombine.low %v2491_v62, %v2507_v63 }
 0x898   : > { %v2522_v8 = vpop.permute.xlu1 %2521  ;;  %v2524_v10 = vpop.permute.xlu0 %2523 }
 0x899   : > { %v2531_v11 = vcombine.low %v2520_v0, %v2524_v10  ;;  %v2532_v12 = vcombine.high %v2520_v0, %v2524_v10  ;;  %v2500_v0 = vcombine.high %v2474_v39, %v2482_v40 }
 0x89b   : > { %v2539_v21 = vrot.slane %v2531_v11, %v5106_v44  ;;  %v2546_v22 = vrot.slane %v2532_v12, %v5106_v44  ;;  %v2514_v10 = vrot.slane %v2500_v0, %v5116_v53 }
 0x89c   : > { %v2526_v18 = vpop.permute.xlu1 %2525 }
 0x89d   : > { %v2547_v19 = vcombine.low %v2522_v8, %v2526_v18  ;;  %v2548_v20 = vcombine.high %v2522_v8, %v2526_v18  ;;  %v2516_v8 = vcombine.high %v2491_v62, %v2507_v63  ;;  %v2517_v13 = vcombine.low %v2498_v6, %v2514_v10 }
 0x89e   : > { %v2518_v15 = vcombine.high %v2498_v6, %v2514_v10 }
 0x89f   : > { %v2555_v23 = vrot.slane %v2547_v19, %v5106_v44  ;;  %v2562_v24 = vrot.slane %v2548_v20, %v5106_v44 }
 0x8a0   : > { %v2668_v28 = vpop.permute.xlu1 %2667 }
 0x8a1   : > { %v2563_v30 = vcombine.low %v2539_v21, %v2555_v23  ;;  %v2564_v32 = vcombine.high %v2539_v21, %v2555_v23  ;;  %v2579_v33 = vcombine.low %v2546_v22, %v2562_v24  ;;  %v2580_v34 = vcombine.high %v2546_v22, %v2562_v24 }
 0x8a3   : > { %v2571_v31 = vrot.slane %v2563_v30, %v5116_v53  ;;  %v2578_v4 = vrot.slane %v2564_v32, %v5116_v53  ;;  %v2587_v35 = vrot.slane %v2579_v33, %v5116_v53  ;;  %v2594_v36 = vrot.slane %v2580_v34, %v5116_v53 }
 0x8a5   : > { %v2599_v41 = vcombine.low %v2571_v31, %v2578_v4  ;;  %v4179_v42 = vcombine.high %v2571_v31, %v2578_v4  ;;  %v2615_v43 = vcombine.low %v2587_v35, %v2594_v36  ;;  %v4180_v45 = vcombine.high %v2587_v35, %v2594_v36 }
 0x8a7   : > { %v2606_v46 = vrot.slane %v2599_v41, %v5106_v44  ;;  %v2614_v47 = vrot.slane %v4179_v42, %v5106_v44  ;;  %v2622_v14 = vrot.slane %v2615_v43, %v5106_v44  ;;  %v2630_v48 = vrot.slane %v4180_v45, %v5106_v44 }
 0x8a9   : > { %v2631_v51 = vcombine.low %v2606_v46, %v2614_v47  ;;  %v2632_v52 = vcombine.high %v2606_v46, %v2614_v47  ;;  %v2647_v54 = vcombine.low %v2622_v14, %v2630_v48  ;;  %v2648_v58 = vcombine.high %v2622_v14, %v2630_v48 }
 0x8ab   : > { %v2639_v59 = vrot.slane %v2631_v51, %v5116_v53  ;;  %v2655_v60 = vrot.slane %v2647_v54, %v5116_v53  ;;  %v2646_v3 = vrot.slane %v2632_v52, %v5116_v53  ;;  %v2662_v5 = vrot.slane %v2648_v58, %v5116_v53 }
 0x8ad   : > { %v2663_v1 = vcombine.low %v2639_v59, %v2655_v60  ;;  %v2664_v2 = vcombine.high %v2639_v59, %v2655_v60  ;;  %v2665_v11 = vcombine.low %v2646_v3, %v2662_v5  ;;  %v2666_v12 = vcombine.high %v2646_v3, %v2662_v5 }
 0x8af   : > { %4360 = vmatpush3.xpose.msk.msra.mxu0 %vm1377_vm2, %v2663_v1  ;;  %4365 = vmatpush3.xpose.msk.msra.mxu1 %vm1377_vm2, %v2664_v2 }
 0x8b0   : > { %4369 = vmatprep.subr.mxu0 %v4773_v9  ;;  %4374 = vmatprep.subr.mxu1 %v4773_v9 }
 0x8b2   : > { %4362 = vmatmul.mubr.msk.f32.vlgmr.msra.gmra.mxu0 %vm1377_vm2, %v2515_v7  ;;  %4367 = vmatmul.mubr.msk.f32.vlgmr.msra.gmra.mxu1 %vm1377_vm2, %v2516_v8 }
 0x8b3   : > { %4370 = vmatpush3.xpose.msk.msra.mxu0 %vm1377_vm2, %v2665_v11  ;;  %4375 = vmatpush3.xpose.msk.msra.mxu1 %vm1377_vm2, %v2666_v12 }
 0x8b4   : > { %4371 = vmatprep.mubr.msk.f32.mxu0 %vm4774_vm1, %v4773_v9  ;;  %4376 = vmatprep.mubr.msk.f32.mxu1 %vm4774_vm1, %v4773_v9 }
 0x8b5   : > { %4379 = vmatprep.subr.mxu0 %v4773_v9  ;;  %4384 = vmatprep.subr.mxu1 %v4773_v9 }
 0x8b6   : > { %4372 = vmatmul.mubr.msk.f32.vlgmr.msra.gmra.mxu0 %vm1377_vm2, %v2517_v13  ;;  %4377 = vmatmul.mubr.msk.f32.vlgmr.msra.gmra.mxu1 %vm1377_vm2, %v2518_v15 }
 0x8b7   : > { %4381 = vmatprep.mubr.msk.f32.mxu0 %vm4774_vm1, %v4773_v9  ;;  %4386 = vmatprep.mubr.msk.f32.mxu1 %vm4774_vm1, %v4773_v9 }
 0x972   : > { %v2887_v16 = vpop.f32.mrf.mxu0  ;;  %v2963_v17 = vpop.f32.mrf.mxu1 }
 0x973   : > { %v3122_v18 = vsel %vm1377_vm2, %v2963_v17, -inf  ;;  %v3119_v19 = vsel %vm1377_vm2, %v2887_v16, -inf }
 0x974   : > { %3123 = vmax.xlane.f32.xlu1 %v3122_v18  ;;  %v4368_v20 = vpop.f32.mrf.mxu1  ;;  %3120 = vmax.xlane.f32.xlu0 %v3119_v19  ;;  %v4363_v21 = vpop.f32.mrf.mxu0 }
 0x976   : > { %v3039_v22 = vpop.f32.mrf.mxu0  ;;  %v3115_v23 = vpop.f32.mrf.mxu1 }
 0x977   : > { %v3125_v24 = vsel %vm1377_vm2, %v3039_v22, -inf  ;;  %v3128_v27 = vsel %vm1377_vm2, %v3115_v23, -inf }
 0x978   : > { %v4378_v25 = vpop.f32.mrf.mxu1  ;;  %3126 = vmax.xlane.f32.xlu0 %v3125_v24  ;;  %v4373_v26 = vpop.f32.mrf.mxu0 }
 0x97c   : > { %3129 = vmax.xlane.f32.xlu0 %v3128_v27 }
 0x985   : > { %2671 = vrot.lane.b32.xlu1 %v5308_v55, %s4779_s30 }
 0x989   : > { %2673 = vrot.lane.b32.xlu1 %v5316_v57, %s4779_s30 }
 0x992   : > { %2669 = vrot.lane.b32.xlu0 %v5310_v56, %s4779_s30 }
 0x9fd   : > { %v3124_v30 = vpop.xlane.xlu1 %3123  ;;  %v3121_v32 = vpop.xlane.xlu0 %3120 }
 0x9fe   : > { %v3132_v33 = vsub.f32 %v2963_v17, %v3124_v30  ;;  %v3131_v34 = vsub.f32 %v2887_v16, %v3121_v32 }
 0xa00   : > { %v3137_v31 = vmul.f32 1.442695, %v3132_v33  ;;  %v3135_v4 = vmul.f32 1.442695, %v3131_v34 }
 0xa01   : > { %v3127_v35 = vpop.xlane.xlu0 %3126  ;;  %v2672_v37 = vpop.permute.xlu1 %2671 }
 0xa02   : > { %4587 = vpow2.f32 %v3137_v31  ;;  %v3133_v36 = vsub.f32 %v3039_v22, %v3127_v35  ;;  %v2679_v57 = vcombine.low %v2668_v28, %v2672_v37  ;;  %v2680_v40 = vcombine.high %v2668_v28, %v2672_v37  ;;  %v3609_v28 = vld [vmem:[%s5652_s12 + $0x18] sm:$0xff] }
 0xa03   : > { %4589 = vpow2.f32 %v3135_v4 }
 0xa04   : > { %v3139_v38 = vmul.f32 1.442695, %v3133_v36  ;;  %v2687_v46 = vrot.slane %v2679_v57, %v5106_v44  ;;  %v2694_v47 = vrot.slane %v2680_v40, %v5106_v44 }
 0xa05   : > { %v3130_v55 = vpop.xlane.xlu0 %3129  ;;  %v2674_v56 = vpop.permute.xlu1 %2673 }
 0xa06   : > { %4591 = vpow2.f32 %v3139_v38  ;;  %v3134_v39 = vsub.f32 %v3115_v23, %v3130_v55 }
 0xa08   : > { %v3141_v41 = vmul.f32 1.442695, %v3134_v39 }
 0xa09   : > { %v2670_v42 = vpop.permute.xlu0 %2669 }
 0xa0a   : > { %4593 = vpow2.f32 %v3141_v41  ;;  %v2695_v43 = vcombine.low %v2670_v42, %v2674_v56  ;;  %v2696_v45 = vcombine.high %v2670_v42, %v2674_v56 }
 0xa0c   : > { %v2703_v14 = vrot.slane %v2695_v43, %v5106_v44  ;;  %v2710_v48 = vrot.slane %v2696_v45, %v5106_v44 }
 0xa0e   : > { %v2711_v49 = vcombine.low %v2687_v46, %v2703_v14  ;;  %v2712_v50 = vcombine.high %v2687_v46, %v2703_v14  ;;  %v2727_v51 = vcombine.low %v2694_v47, %v2710_v48  ;;  %v2728_v52 = vcombine.high %v2694_v47, %v2710_v48 }
 0xa0f   : > { %v4588_v54 = vpop.eup %4587 }
 0xa10   : > { %v4590_v58 = vpop.eup %4589  ;;  %v2719_v59 = vrot.slane %v2711_v49, %v5116_v53  ;;  %v2726_v60 = vrot.slane %v2712_v50, %v5116_v53  ;;  %v2735_v61 = vrot.slane %v2727_v51, %v5116_v53  ;;  %v2742_v62 = vrot.slane %v2728_v52, %v5116_v53 }
 0xa11   : > { %v3146_v63 = vsel %vm1377_vm2, %v4588_v54, 0.0  ;;  %v3143_v0 = vsel %vm1377_vm2, %v4590_v58, 0.0 }
 0xa12   : > { %v2747_v1 = vcombine.low %v2719_v59, %v2726_v60  ;;  %v4181_v2 = vcombine.high %v2719_v59, %v2726_v60  ;;  %v2763_v3 = vcombine.low %v2735_v61, %v2742_v62  ;;  %v4182_v5 = vcombine.high %v2735_v61, %v2742_v62  ;;  %3147 = vadd.xlane.f32.xlu1 %v3146_v63  ;;  %v3608_v62 = vld [vmem:[%s5652_s12 + $0x10] sm:$0xff]  ;;  %v3607_v63 = vld [vmem:[%s5652_s12 + $0x8] sm:$0xff] }
 0xa13   : > { %v4592_v6 = vpop.eup %4591  ;;  %3144 = vadd.xlane.f32.xlu0 %v3143_v0 }
 0xa14   : > { %v2754_v7 = vrot.slane %v2747_v1, %v5106_v44  ;;  %v2762_v8 = vrot.slane %v4181_v2, %v5106_v44  ;;  %v2770_v10 = vrot.slane %v2763_v3, %v5106_v44  ;;  %v2778_v11 = vrot.slane %v4182_v5, %v5106_v44 }
 0xa15   : > { %v3149_v12 = vsel %vm1377_vm2, %v4592_v6, 0.0 }
 0xa16   : > { %v2779_v13 = vcombine.low %v2754_v7, %v2762_v8  ;;  %v2795_v15 = vcombine.low %v2770_v10, %v2778_v11  ;;  %v2780_v16 = vcombine.high %v2754_v7, %v2762_v8  ;;  %v2796_v17 = vcombine.high %v2770_v10, %v2778_v11  ;;  %v3606_v10 = vld [vmem:[%s5652_s12] sm:$0xff] }
 0xa17   : > { %v4594_v18 = vpop.eup %4593  ;;  %3150 = vadd.xlane.f32.xlu0 %v3149_v12 }
 0xa18   : > { %v3152_v19 = vsel %vm1377_vm2, %v4594_v18, 0.0  ;;  %v2787_v20 = vrot.slane %v2779_v13, %v5116_v53  ;;  %v2803_v21 = vrot.slane %v2795_v15, %v5116_v53  ;;  %v2794_v22 = vrot.slane %v2780_v16, %v5116_v53 }
 0xa19   : > { %v2810_v23 = vrot.slane %v2796_v17, %v5116_v53 }
 0xa1a   : > { %v2811_v24 = vcombine.low %v2787_v20, %v2803_v21  ;;  %v2812_v25 = vcombine.high %v2787_v20, %v2803_v21 }
 0xa1b   : > { %3153 = vadd.xlane.f32.xlu0 %v3152_v19  ;;  %v2813_v26 = vcombine.low %v2794_v22, %v2810_v23  ;;  %v2814_v27 = vcombine.high %v2794_v22, %v2810_v23 }
 0xa1c   : > { %4380 = vmatpush3.msra.mxu0 %v2811_v24  ;;  %4385 = vmatpush3.msra.mxu1 %v2812_v25 }
 0xa1d   : > { %4382 = vmatmul.mubr.msk.f32.vlgmr.msra.gmra.mxu0 %vm1377_vm2, %v4590_v58  ;;  %4387 = vmatmul.mubr.msk.f32.vlgmr.msra.gmra.mxu1 %vm1377_vm2, %v4588_v54 }
 0xa1e   : > { %4389 = vmatprep.subr.mxu0 %v4773_v9  ;;  %4394 = vmatprep.subr.mxu1 %v4773_v9 }
 0xa1f   : > { %4390 = vmatpush3.msra.mxu0 %v2813_v26  ;;  %4395 = vmatpush3.msra.mxu1 %v2814_v27 }
 0xa20   : > { %4391 = vmatprep.mubr.msk.f32.mxu0 %vm4774_vm1, %v4773_v9  ;;  %4396 = vmatprep.mubr.msk.f32.mxu1 %vm4774_vm1, %v4773_v9 }
 0xa21   : > { %4392 = vmatmul.mubr.msk.f32.vlgmr.msra.gmra.mxu0 %vm1377_vm2, %v4592_v6  ;;  %4397 = vmatmul.mubr.msk.f32.vlgmr.msra.gmra.mxu1 %vm1377_vm2, %v4594_v18 }
 0xa22   : > { %4399 = vmatprep.subr.mxu0 %v4773_v9  ;;  %4407 = vmatprep.mubr.msk.f32.mxu0 %vm4774_vm1, %v4773_v9 }
 0xa23   : > { %4400 = vmatpush3.msra.mxu0 %v3609_v28 }
 0xa24   : > { %4401 = vmatprep.subr.mxu0 %v4773_v9 }
 0xa25   : > { %4402 = vmatpush3.msra.mxu0 %v3608_v62 }
 0xa26   : > { %4403 = vmatprep.subr.mxu0 %v4773_v9 }
 0xa27   : > { %4404 = vmatpush3.msra.mxu0 %v3607_v63 }
 0xa28   : > { %4405 = vmatprep.subr.mxu0 %v4773_v9 }
 0xa29   : > { %4406 = vmatpush3.msra.mxu0 %v3606_v10 }
 0xa9b   : > { %v3148_v33 = vpop.xlane.xlu1 %3147 }
 0xa9c   : > { %v3145_v30 = vpop.xlane.xlu0 %3144  ;;  %4595 = vrcp.f32 %v3148_v33  ;;  %v4197_v33 = vld [vmem:[%s5653_s13] ss:$0 sm:$0xff] }
 0xa9d   : > { %4597 = vrcp.f32 %v3145_v30 }
 0xaa0   : > { %v3151_v32 = vpop.xlane.xlu0 %3150 }
 0xaa1   : > { %4599 = vrcp.f32 %v3151_v32 }
 0xaa4   : > { %v3154_v34 = vpop.xlane.xlu0 %3153 }
 0xaa5   : > { %4601 = vrcp.f32 %v3154_v34 }
 0xaa9   : > { %v4596_v35 = vpop.eup %4595 }
 0xaaa   : > { %v4598_v36 = vpop.eup %4597 }
 0xaae   : > { %v4600_v55 = vpop.eup %4599 }
 0xab2   : > { %v4602_v39 = vpop.eup %4601 }
 0xadd   : > { %v3224_v31 = vpop.f32.mrf.mxu0  ;;  %v3297_v4 = vpop.f32.mrf.mxu1 }
 0xade   : > { %v3451_v41 = vmul.f32 %v4598_v36, %v3224_v31  ;;  %v3452_v56 = vmul.f32 %v4596_v35, %v3297_v4  ;;  %v4199_v4 = vld [vmem:[%s5729_s1] ss:$0 sm:$0xff] }
 0xadf   : > { %v4383_v37 = vpop.f32.mrf.mxu0  ;;  %v4388_v38 = vpop.f32.mrf.mxu1 }
 0xae1   : > { %v3370_v57 = vpop.f32.mrf.mxu0  ;;  %v3443_v40 = vpop.f32.mrf.mxu1 }
 0xae2   : > { %v3453_v42 = vmul.f32 %v4600_v55, %v3370_v57  ;;  %v3454_v43 = vmul.f32 %v4602_v39, %v3443_v40 }
 0xae3   : > { %v4393_v45 = vpop.f32.mrf.mxu0  ;;  %v4398_v46 = vpop.f32.mrf.mxu1 }
 0xae4   : > { %v3455_v47 = vcombine.low %v3451_v41, %v3453_v42  ;;  %v3456_v14 = vcombine.high %v3451_v41, %v3453_v42  ;;  %v3471_v48 = vcombine.low %v3452_v56, %v3454_v43  ;;  %v3472_v49 = vcombine.high %v3452_v56, %v3454_v43 }
 0xae6   : > { %v3463_v50 = vrot.slane %v3455_v47, %v5106_v44  ;;  %v3470_v51 = vrot.slane %v3456_v14, %v5106_v44  ;;  %v3479_v52 = vrot.slane %v3471_v48, %v5106_v44  ;;  %v3486_v54 = vrot.slane %v3472_v49, %v5106_v44  ;;  %v4200_v47 = vld [vmem:[%s5730_s6] ss:$0 sm:$0xff] }
 0xae7   : > { %v4201_v48 = vld [vmem:[%s5731_s22] ss:$0 sm:$0xff] }
 0xae8   : > { %v3487_v58 = vcombine.low %v3463_v50, %v3479_v52  ;;  %v3488_v59 = vcombine.high %v3463_v50, %v3479_v52  ;;  %v3503_v60 = vcombine.low %v3470_v51, %v3486_v54  ;;  %v3504_v61 = vcombine.high %v3470_v51, %v3486_v54 }
 0xaea   : > { %v3495_v0 = vrot.slane %v3487_v58, %v5116_v53  ;;  %v3502_v1 = vrot.slane %v3488_v59, %v5116_v53  ;;  %v3511_v2 = vrot.slane %v3503_v60, %v5116_v53  ;;  %v3518_v3 = vrot.slane %v3504_v61, %v5116_v53 }
 0xaec   : > { %v3523_v5 = vcombine.low %v3495_v0, %v3502_v1  ;;  %v4195_v6 = vcombine.high %v3495_v0, %v3502_v1  ;;  %v3539_v7 = vcombine.low %v3511_v2, %v3518_v3  ;;  %v4196_v8 = vcombine.high %v3511_v2, %v3518_v3 }
 0xaee   : > { %v3530_v11 = vrot.slane %v3523_v5, %v5106_v44  ;;  %v3538_v12 = vrot.slane %v4195_v6, %v5106_v44  ;;  %v3546_v13 = vrot.slane %v3539_v7, %v5106_v44  ;;  %v3554_v15 = vrot.slane %v4196_v8, %v5106_v44 }
 0xaf0   : > { %v3556_v16 = vcombine.high %v3530_v11, %v3538_v12  ;;  %v3572_v17 = vcombine.high %v3546_v13, %v3554_v15  ;;  %v3555_v18 = vcombine.low %v3530_v11, %v3538_v12  ;;  %v3571_v19 = vcombine.low %v3546_v13, %v3554_v15 }
 0xaf2   : > { %v3570_v20 = vrot.slane %v3556_v16, %v5116_v53  ;;  %v3586_v9 = vrot.slane %v3572_v17, %v5116_v53  ;;  %v3563_v21 = vrot.slane %v3555_v18, %v5116_v53  ;;  %v3579_v22 = vrot.slane %v3571_v19, %v5116_v53 }
 0xaf4   : > { %v3589_v23 = vcombine.low %v3570_v20, %v3586_v9  ;;  %v3588_v24 = vcombine.high %v3563_v21, %v3579_v22  ;;  %v3587_v25 = vcombine.low %v3563_v21, %v3579_v22  ;;  %v3590_v44 = vcombine.high %v3570_v20, %v3586_v9 }
 0xaf6   : > { %3596 = vrot.lane.b32.xlu0 %v3589_v23, %s4782_s0  ;;  %3592 = vrot.lane.b32.xlu1 %v3588_v24, %s5727_s25 }
 0xafa   : > { %3600 = vrot.lane.b32.xlu1 %v3590_v44, %s5728_s27 }
 0xb68   : > { %v3593_v26 = vpop.permute.xlu1 %3592  ;;  %v3597_v27 = vpop.permute.xlu0 %3596 }
 0xb69   : > { %v3603_v28 = vsel %vm1377_vm2, %v3587_v25, %v3593_v26 }
 0xb6a   : > { %v3604_v32 = vsel %vm2167_vm3, %v3603_v28, %v3597_v27 }
 0xb6c   : > { %v3601_v30 = vpop.permute.xlu1 %3600 }
 0xb6d   : > { %v3605_v53 = vsel %vm2169_vm4, %v3604_v32, %v3601_v30 }
 0xb6e   : > { %4408 = vmatmul.mubr.msk.f32.vlgmr.msra.gmra.mxu0 %vm819_vm0, %v3605_v53 }
 0xc2e   : > { %v3686_v34 = vpop.f32.mrf.mxu0 }
 0xc2f   : > { %v3687_v31 = vadd.f32 %v4197_v33, %v3686_v34 }
 0xc30   : > { %v4409_v35 = vpop.f32.mrf.mxu0 }
 0xc31   : > { %v3690_v36 = vadd.f32 %v3687_v31, %v5268_v29 }
 0xc33   : > { %v3698_v37 = vadd.f32 %v4199_v4, %v3690_v36  ;;  %v3702_v38 = vsel %vm819_vm0, %v3690_v36, 0.0  ;;  %v3706_v55 = vmul.f32 %v3690_v36, %v3690_v36 }
 0xc34   : > { %3703 = vadd.xlane.f32.xlu1 %v3702_v38 }
 0xc35   : > { %3699 = vst.msk [vmem:[%s5037_s26] sm:$0xff] %vm819_vm0, %v3698_v37  ;;  %v3707_v39 = vsel %vm819_vm0, %v3706_v55, 0.0 }
 0xc36   : > { %3708 = vadd.xlane.f32.xlu0 %v3707_v39 }
 0xcbd   : > { %v3704_v57 = vpop.xlane.xlu1 %3703 }
 0xcbe   : > { %v3705_v40 = vmul.f32 0.03125, %v3704_v57 }
 0xcbf   : > { %v3709_v41 = vpop.xlane.xlu0 %3708 }
 0xcc0   : > { %v3711_v56 = vmul.f32 %v3705_v40, %v3705_v40  ;;  %v3710_v42 = vmul.f32 0.03125, %v3709_v41  ;;  %v3713_v46 = vsub.f32 %v3690_v36, %v3705_v40 }
 0xcc2   : > { %v3712_v43 = vsub.f32 %v3710_v42, %v3711_v56 }
 0xcc4   : > { %v3714_v45 = vadd.f32 1e-05, %v3712_v43 }
 0xcc6   : > { %4603 = vrsqrt.f32 %v3714_v45 }
 0xcd3   : > { %v4604_v29 = vpop.eup %4603 }
 0xcd4   : > { %v3716_v14 = vmul.f32 %v4604_v29, %v3713_v46 }
 0xcd6   : > { %v3723_v49 = vmul.f32 %v4200_v47, %v3716_v14 }
 0xcd8   : > { %v3730_v50 = vadd.f32 %v4201_v48, %v3723_v49 }
 0xcda   : > { %3731 = vst.msk [vmem:[#allocation2] sm:$0xff] %vm819_vm0, %v3730_v50 }
 0xcdb PF: > { %v3736_v51 = vld [vmem:[%s5034_s28 + $0x18] sm:$0xff]  ;;  %v4785_v52 = vmov 0.0   ;;  %v3735_v54 = vld [vmem:[%s5034_s28 + $0x10] sm:$0xff]  ;;  %vm4786_vm5 = vmmov 0   ;;  %v3838_v59 = vld [vmem:[%s5032_s3 + $0x70] sm:$0xff]  ;;  %vm3744_vm6 = vcmask 261120   ;;  %s5733_s27 = scalar_lea.vmem %s5658_s18, %s5020_s14 }
 0xcdc   : > { %4410 = vmatprep.subr.mxu0 %v4785_v52  ;;  %4418 = vmatprep.mubr.msk.f32.mxu0 %vm4786_vm5, %v4785_v52  ;;  %v3839_v58 = vld [vmem:[%s5032_s3 + $0x78] sm:$0xff]  ;;  %v3734_v60 = vld [vmem:[%s5034_s28 + $0x8] sm:$0xff]  ;;  %v3837_v61 = vld [vmem:[%s5032_s3 + $0x68] sm:$0xff]  ;;  %s5736_s1 = sld [smem:[#allocation36_spill]]  ;;  %s5738_s6 = scalar_lea.vmem [#allocation6], %s5013_s15 }
 0xcdd   : > { %4411 = vmatpush3.msra.mxu0 %v3736_v51  ;;  %4421 = vmatprep.subr.mxu1 %v4785_v52  ;;  %v3733_v62 = vld [vmem:[%s5034_s28] sm:$0xff]  ;;  %v3836_v0 = vld [vmem:[%s5032_s3 + $0x60] sm:$0xff]  ;;  %v3835_v1 = vld [vmem:[%s5032_s3 + $0x58] sm:$0xff]  ;;  %s5732_s28 = sld [smem:[#allocation15_spill]]  ;;  %s3949_s30 = sshll.u32 %s5738_s6, 4  ;;  %s3950_s30 = int_to_ptr.vmem [resolvable:$true] %s3949_s30 }
 0xcde   : > { %4412 = vmatprep.subr.mxu0 %v4785_v52  ;;  %4422 = vmatpush3.msra.mxu1 %v3839_v58  ;;  %v3834_v2 = vld [vmem:[%s5032_s3 + $0x50] sm:$0xff]  ;;  %v3833_v3 = vld [vmem:[%s5032_s3 + $0x48] sm:$0xff]  ;;  %v3832_v5 = vld [vmem:[%s5032_s3 + $0x40] sm:$0xff]  ;;  %s4607_s22 = scalar_lea.vmem %s3950_s30, 128  ;;  %s4787_s23 = smov [#allocation6]  }
 0xcdf   : > { %4413 = vmatpush3.msra.mxu0 %v3735_v54  ;;  %4423 = vmatprep.subr.mxu1 %v4785_v52  ;;  %v3831_v6 = vld [vmem:[%s5032_s3 + $0x38] sm:$0xff]  ;;  %v3830_v7 = vld [vmem:[%s5032_s3 + $0x30] sm:$0xff]  ;;  %v3829_v8 = vld [vmem:[%s5032_s3 + $0x28] sm:$0xff]  ;;  %p4608_p7 = scmp.ne.s32.totalorder %s3950_s30, %s4607_s22  ;;  %s4611_s25 = sshll.u32 %s4787_s23, 4  ;;  %s4612_s25 = int_to_ptr.vmem [resolvable:$false] %s4611_s25 }
 0xce0   : > { %4414 = vmatprep.subr.mxu0 %v4785_v52  ;;  %4424 = vmatpush3.msra.mxu1 %v3838_v59  ;;  %v3828_v10 = vld [vmem:[%s5032_s3 + $0x20] sm:$0xff]  ;;  %v3827_v11 = vld [vmem:[%s5032_s3 + $0x18] sm:$0xff]  ;;  %v3826_v12 = vld [vmem:[%s5032_s3 + $0x10] sm:$0xff]  ;;  %p4614_p11 = scmp.lt.s32.totalorder %s3950_s30, %s4612_s25 }
 0xce1   : > { %4415 = vmatpush3.msra.mxu0 %v3734_v60  ;;  %v3732_v63 = vld [vmem:[#allocation2] sm:$0xff]  ;;  %4425 = vmatprep.subr.mxu1 %v4785_v52  ;;  %v3825_v13 = vld [vmem:[%s5032_s3 + $0x8] sm:$0xff]  ;;  %p4609_p8 = pnand %p4608_p7, %p4986_p10 }
 0xce2   : > { %4416 = vmatprep.subr.mxu0 %v4785_v52  ;;  %4426 = vmatpush3.msra.mxu1 %v3837_v61  ;;  %v3824_v15 = vld [vmem:[%s5032_s3] sm:$0xff]  ;;  %s5735_s3 = sadd.s32 4294967295, %s4771_s24   ;;  %s5737_s2 = smov %s5736_s1 }
 0xce3   : > { %4417 = vmatpush3.msra.mxu0 %v3733_v62  ;;  %4427 = vmatprep.subr.mxu1 %v4785_v52  ;;  %v4202_v16 = vld [vmem:[%s5733_s27] ss:$0 sm:$0xff]  ;;  %s5530_s17 = sand.u32 1, %s5735_s3   ;;  %s5533_s0 = sshll.u32 %s5732_s28, 7 }
 0xce4   : > { %4419 = vmatmul.mubr.msk.f32.vlgmr.msra.gmra.mxu0 %vm3744_vm6, %v3732_v63  ;;  %4428 = vmatpush3.msra.mxu1 %v3836_v0  ;;  %s3947_s21 = scalar_lea.hbm %s5736_s1, %s5533_s0  ;;  %s3918_s29 = scalar_lea.sflag [#allocation7], %s5530_s17 }
 0xce5   : > { %4429 = vmatprep.subr.mxu1 %v4785_v52  ;;  %4453 = vmatprep.mubr.msk.f32.mxu1 %vm4786_vm5, %v4785_v52  ;;  %p4610_p9 = pneg %p4609_p8  ;;  %s4613_s27 = scalar_lea.vmem %s4612_s25, 256 }
 0xce6   : > { %4430 = vmatpush3.msra.mxu1 %v3835_v1  ;;  %p4615_p13 = scmp.lt.s32.totalorder %s4613_s27, %s4607_s22 }
 0xce7   : > { %4431 = vmatprep.subr.mxu1 %v4785_v52 }
 0xce8   : > { %4432 = vmatpush3.msra.mxu1 %v3834_v2  ;;  %p4616_p0 = por %p4615_p13, %p4614_p11 }
 0xce9   : > { %4433 = vmatprep.subr.mxu1 %v4785_v52 }
 0xcea   : > { %4434 = vmatpush3.msra.mxu1 %v3833_v3  ;;  %p4617_p1 = pnand %p4616_p0, %p4610_p9 }
 0xceb   : > { %4435 = vmatprep.subr.mxu1 %v4785_v52 }
 0xcec   : > { %4436 = vmatpush3.msra.mxu1 %v3832_v5 }
 0xced   : > { %4437 = vmatprep.subr.mxu1 %v4785_v52 }
 0xcee   : > { %4438 = vmatpush3.msra.mxu1 %v3831_v6 }
 0xcef   : > { %4439 = vmatprep.subr.mxu1 %v4785_v52 }
 0xcf0   : > { %4440 = vmatpush3.msra.mxu1 %v3830_v7 }
 0xcf1   : > { %4441 = vmatprep.subr.mxu1 %v4785_v52 }
 0xcf2   : > { %4442 = vmatpush3.msra.mxu1 %v3829_v8 }
 0xcf3   : > { %4443 = vmatprep.subr.mxu1 %v4785_v52 }
 0xcf4   : > { %4444 = vmatpush3.msra.mxu1 %v3828_v10 }
 0xcf5   : > { %4445 = vmatprep.subr.mxu1 %v4785_v52 }
 0xcf6   : > { %4446 = vmatpush3.msra.mxu1 %v3827_v11 }
 0xcf7   : > { %4447 = vmatprep.subr.mxu1 %v4785_v52 }
 0xcf8   : > { %4448 = vmatpush3.msra.mxu1 %v3826_v12 }
 0xcf9   : > { %4449 = vmatprep.subr.mxu1 %v4785_v52 }
 0xcfa   : > { %4450 = vmatpush3.msra.mxu1 %v3825_v13 }
 0xcfb   : > { %4451 = vmatprep.subr.mxu1 %v4785_v52 }
 0xcfc   : > { %4452 = vmatpush3.msra.mxu1 %v3824_v15 }
 0xda4   : > { %v3814_v17 = vpop.f32.mrf.mxu0 }
 0xda5   : > { %v3815_v18 = vadd.f32 %v4202_v16, %v3814_v17 }
 0xda6   : > { %v4420_v19 = vpop.f32.mrf.mxu0 }
 0xda7   : > { %v3819_v20 = vmul.f32 0.70710677, %v3815_v18  ;;  %v3818_v21 = vmul.f32 0.5, %v3815_v18 }
 0xda9   : > { %4605 = verf.f32 %v3819_v20 }
 0xdb6   : > { %v4606_v9 = vpop.eup %4605 }
 0xdb7   : > { %v3821_v22 = vadd.f32 1.0, %v4606_v9 }
 0xdb9   : > { %v3822_v23 = vmul.f32 %v3821_v22, %v3818_v21 }
 0xdbb   : > { %4454 = vmatmul.mubr.f32.vlgmr.msra.gmra.mxu1 %v3822_v23 }
 0xdbc   : > { %4620 = shalt.err (!%p4617_p1)
}
 0xdbd   : > { %s4621_s28 = scalar_lea.hbm %s3947_s21, 128  ;;  %s4625_s4 = scalar_lea.hbm %s5737_s2, 256 }
 0xdbe   : > { %p4622_p2 = scmp.ne.s32.totalorder %s3947_s21, %s4621_s28  ;;  %p4626_p5 = scmp.lt.s32.totalorder %s3947_s21, %s5737_s2 }
 0xdbf   : > { %p4627_p6 = scmp.lt.s32.totalorder %s4625_s4, %s4621_s28 }
 0xdc0   : > { %p4623_p3 = pnand %p4622_p2, %p4986_p10 }
 0xdc1   : > { %p4628_p7 = por %p4627_p6, %p4626_p5 }
 0xdc2   : > { %p4624_p4 = pneg %p4623_p3 }
 0xdc4   : > { %p4629_p8 = pnand %p4628_p7, %p4624_p4 }
 0xdc6   : > { %4632 = shalt.err (!%p4629_p8)
}
 0xdc7   : > { %4457 = dma.vmem_to_hbm [thread:$0]  (%p4986_p10), %s3950_s30, 128, %s3947_s21, %s3918_s29  }
 0xdc8   : > { %s5739_s25 = sld [smem:[#allocation37_spill]]  ;;  %s5740_s3 = scalar_lea.vmem [#allocation8], %s5013_s15 }
 0xdc9   : > { %s3962_s14 = sshll.u32 %s5740_s3, 4  ;;  %s4788_s28 = smov [#allocation8]   ;;  %s3963_s14 = int_to_ptr.vmem [resolvable:$true] %s3962_s14 }
 0xdca   : > { %s4633_s1 = scalar_lea.vmem %s3963_s14, 128  ;;  %s4637_s4 = sshll.u32 %s4788_s28, 4  ;;  %s4638_s4 = int_to_ptr.vmem [resolvable:$false] %s4637_s4 }
 0xdcb   : > { %p4634_p9 = scmp.ne.s32.totalorder %s3963_s14, %s4633_s1  ;;  %s4639_s6 = scalar_lea.vmem %s4638_s4, 256 }
 0xdcc   : > { %p4640_p0 = scmp.lt.s32.totalorder %s3963_s14, %s4638_s4  ;;  %p4641_p1 = scmp.lt.s32.totalorder %s4639_s6, %s4633_s1 }
 0xdcd   : > { %p4635_p11 = pnand %p4634_p9, %p4986_p10 }
 0xdce   : > { %s3960_s27 = scalar_lea.hbm %s5739_s25, %s5533_s0  ;;  %p4642_p2 = por %p4641_p1, %p4640_p0 }
 0xdcf   : > { %p4636_p13 = pneg %p4635_p11 }
 0xdd1   : > { %p4643_p3 = pnand %p4642_p2, %p4636_p13 }
 0xdd3   : > { %4646 = shalt.err (!%p4643_p3)
}
 0xdd4   : > { %s4647_s21 = scalar_lea.hbm %s3960_s27, 128  ;;  %s4651_s22 = scalar_lea.hbm %s5739_s25, 256 }
 0xdd5   : > { %p4648_p4 = scmp.ne.s32.totalorder %s3960_s27, %s4647_s21  ;;  %p4652_p7 = scmp.lt.s32.totalorder %s3960_s27, %s5739_s25 }
 0xdd6   : > { %p4653_p8 = scmp.lt.s32.totalorder %s4651_s22, %s4647_s21 }
 0xdd7   : > { %p4649_p5 = pnand %p4648_p4, %p4986_p10 }
 0xdd8   : > { %p4654_p9 = por %p4653_p8, %p4652_p7 }
 0xdd9   : > { %p4650_p6 = pneg %p4649_p5 }
 0xddb   : > { %p4655_p11 = pnand %p4654_p9, %p4650_p6 }
 0xddd   : > { %4658 = shalt.err (!%p4655_p11)
}
 0xdde   : > { %s5741_s1 = sld [smem:[#allocation12_spill]]  ;;  %v3823_v24 = vld [vmem:[%s5037_s26] sm:$0xff]  ;;  %s3936_s28 = sshll.u32 %s5037_s26, 4  ;;  %s3937_s28 = int_to_ptr.vmem [resolvable:$true] %s3936_s28 }
 0xddf   : > { %4458 = dma.vmem_to_hbm [thread:$0]  (%p4986_p10), %s3963_s14, 128, %s3960_s27, %s3918_s29  }
 0xde0   : > { %s5742_s21 = sld [smem:[#allocation35_spill]]  ;;  %s4659_s22 = scalar_lea.vmem %s3937_s28, 128 }
 0xde1   : > { %p4660_p13 = scmp.ne.s32.totalorder %s3937_s28, %s4659_s22  ;;  %s4789_s29 = smov [#allocation4]  }
 0xde2   : > { %s4663_s27 = sshll.u32 %s4789_s29, 4  ;;  %s4664_s27 = int_to_ptr.vmem [resolvable:$false] %s4663_s27 }
 0xde3   : > { %p4661_p0 = pnand %p4660_p13, %p4986_p10  ;;  %s4665_s14 = scalar_lea.vmem %s4664_s27, 256 }
 0xde4   : > { %s5743_s17 = sand.u32 1, %s5741_s1   ;;  %p4666_p2 = scmp.lt.s32.totalorder %s3937_s28, %s4664_s27 }
 0xde5   : > { %s3913_s30 = scalar_lea.sflag [#allocation5], %s5743_s17  ;;  %p4662_p1 = pneg %p4661_p0 }
 0xde6   : > { %s5582_s15 = scalar_lea.hbm %s5742_s21, %s5533_s0  ;;  %p4667_p3 = scmp.lt.s32.totalorder %s4665_s14, %s4659_s22 }
 0xde8   : > { %p4668_p4 = por %p4667_p3, %p4666_p2 }
 0xdea   : > { %p4669_p5 = pnand %p4668_p4, %p4662_p1 }
 0xe7b   : > { %v3906_v25 = vpop.f32.mrf.mxu1 }
 0xe7c   : > { %v3910_v44 = vadd.f32 %v3906_v25, %v3823_v24 }
 0xe7d   : > { %v4455_v26 = vpop.f32.mrf.mxu1 }
 0xe7e   : > { %3911 = vst.msk [vmem:[%s5037_s26] sm:$0xff] %vm3744_vm6, %v3910_v44 }
 0xe7f   : > { %4672 = shalt.err (!%p4669_p5)
}
 0xe80   : > { %s4673_s26 = scalar_lea.hbm %s5582_s15, 128  ;;  %s4677_s3 = scalar_lea.hbm %s5742_s21, 256 }
 0xe81   : > { %p4674_p6 = scmp.ne.s32.totalorder %s5582_s15, %s4673_s26  ;;  %p4678_p9 = scmp.lt.s32.totalorder %s5582_s15, %s5742_s21 }
 0xe82   : > { %p4679_p11 = scmp.lt.s32.totalorder %s4677_s3, %s4673_s26 }
 0xe83   : > { %p4675_p7 = pnand %p4674_p6, %p4986_p10 }
 0xe84   : > { %p4680_p13 = por %p4679_p11, %p4678_p9 }
 0xe85   : > { %p4676_p8 = pneg %p4675_p7 }
 0xe87   : > { %p4681_p0 = pnand %p4680_p13, %p4676_p8 }
 0xe89   : > { %4684 = shalt.err (!%p4681_p0)
}
 0xe8a   : > { %4456 = dma.vmem_to_hbm [thread:$0]  (%p4986_p10), %s3937_s28, 128, %s5582_s15, %s3913_s30  }
 0xe8b PF: > { %s5744_s6 = sld [smem:[#allocation11_spill]]  ;;  %p4472_p1 = scmp.ge.s32.totalorder %s4771_s24, 2 }
 0xe8d   : > { %p4463_p2 = pnand %p4472_p1, %p4995_p12 }
 0xe8f   : > { %p4464_p3 = pneg %p4463_p2 }
 0xe91   : > { %s3974_s22 = sand.u32 1, %s5744_s6  }
 0xe92   : > { %s3975_s29 = scalar_lea.sflag [#allocation5], %s3974_s22 }
 0xe93   : > { %4726 = dma.done.wait (%p4464_p3), %s3975_s29, 128  }
 0xe94   : > { %4728 = vsyncadd (%p4464_p3), %s3975_s29, 4294967168  ;;  %s5746_s27 = sadd.s32 4294967294, %s4771_s24  }
 0xe95   : > { %s3983_s14 = sand.u32 1, %s5746_s27  }
 0xe96   : > { %s3984_s26 = scalar_lea.sflag [#allocation7], %s3983_s14 }
 0xe97   : > { %4730 = dma.done.wait (%p4464_p3), %s3984_s26, 256  }
 0xe98   : > { %4732 = vsyncadd (%p4464_p3), %s3984_s26, 4294967040  ;;  %s39_s24 = sadd.s32 1, %s4771_s24   ;;  %s5747_s3 = sld [smem:[#allocation12_spill]] }
 0xe99   : > { %p36_p10 = scmp.ge.s32.totalorder %s39_s24, 6   ;;  %s5748_s28 = sld [smem:[#allocation13_spill]] }
 0xe9a   : > { %s5749_s29 = sld [smem:[#allocation22_spill]] }
 0xe9b   : > { %s5750_s30 = sld [smem:[#allocation14_spill]] }
 0xe9c   : > { %s5751_s4 = sld [smem:[#allocation20_spill]]  ;;  %38 = sbr.rel (!%p36_p10) target bundleno = 23 (0x17), region = 223 }
 0xe9d   : > { %s5752_s0 = sld [smem:[#allocation16_spill]] }
 0xe9e   : > { %s5753_s23 = sld [smem:[#allocation17_spill]] }
 0xe9f   : > { %s5754_s1 = sld [smem:[#allocation18_spill]] }
 0xea0   : > { %s5755_s5 = sld [smem:[#allocation19_spill]] }
 0xea1   :  { %3998 = vsyncpa [#allocation5], 1 }
 0xea2   :  { %4000 = vsyncpa [#allocation5 + $0x1], 1 }
 0xea3   :  { %4001 = vsyncpa [#allocation7], 1 }
 0xea4   :  { %4003 = vsyncpa [#allocation7 + $0x1], 1 }

// kernel: tpu_custom_call.1
= control target key start
LH: loop header
LB: loop body
LE: loop exit
PB: predicated region body
PF: predicated region fallthrough
CT: control target
= control target key end

     0   :  { %s5640_s0 = inlined_call_operand.vmem [shape: f32[2,8,32], index: 0, kind: input, shape index: {}]   ;;  %s5641_s1 = inlined_call_operand.vmem [shape: f32[1,1,8,8], index: 1, kind: input, shape index: {}]   ;;  %s5642_s2 = inlined_call_operand.vmem [shape: f32[1,32], index: 2, kind: input, shape index: {}]   ;;  %s5643_s3 = inlined_call_operand.vmem [shape: f32[1,32], index: 3, kind: input, shape index: {}]   ;;  %s5644_s4 = inlined_call_operand.vmem [shape: f32[32,96], index: 4, kind: input, shape index: {}]   ;;  %s5645_s5 = inlined_call_operand.vmem [shape: f32[1,96], index: 5, kind: input, shape index: {}]   ;;  %s5646_s6 = inlined_call_operand.vmem [shape: f32[32,32], index: 6, kind: input, shape index: {}]   ;;  %s5647_s7 = inlined_call_operand.vmem [shape: f32[1,32], index: 7, kind: input, shape index: {}]   ;;  %s5648_s8 = inlined_call_operand.vmem [shape: f32[1,32], index: 8, kind: input, shape index: {}]   ;;  %s5649_s9 = inlined_call_operand.vmem [shape: f32[1,32], index: 9, kind: input, shape index: {}]   ;;  %s5650_s10 = inlined_call_operand.vmem [shape: f32[32,96], index: 10, kind: input, shape index: {}]   ;;  %s5651_s11 = inlined_call_operand.vmem [shape: f32[1,96], index: 11, kind: input, shape index: {}]   ;;  %s5652_s12 = inlined_call_operand.vmem [shape: f32[32,32], index: 12, kind: input, shape index: {}]   ;;  %s5653_s13 = inlined_call_operand.vmem [shape: f32[1,32], index: 13, kind: input, shape index: {}]   ;;  %s5654_s14 = inlined_call_operand.vmem [shape: f32[1,32], index: 14, kind: input, shape index: {}]   ;;  %s5655_s15 = inlined_call_operand.vmem [shape: f32[1,32], index: 15, kind: input, shape index: {}]   ;;  %s5656_s16 = inlined_call_operand.vmem [shape: f32[1,32], index: 16, kind: input, shape index: {}]   ;;  %s5657_s17 = inlined_call_operand.vmem [shape: f32[32,256], index: 17, kind: input, shape index: {}]   ;;  %s5658_s18 = inlined_call_operand.vmem [shape: f32[1,256], index: 18, kind: input, shape index: {}]   ;;  %s5659_s19 = inlined_call_operand.vmem [shape: f32[256,32], index: 19, kind: input, shape index: {}]   ;;  %s5660_s20 = inlined_call_operand.hbm [shape: f32[2,8,32], index: 20, kind: output, shape index: {0}]   ;;  %s5661_s21 = inlined_call_operand.hbm [shape: f32[2,8,32], index: 21, kind: output, shape index: {1}]   ;;  %s5662_s22 = inlined_call_operand.hbm [shape: f32[2,8,32], index: 22, kind: output, shape index: {2}]  }
   0x1   :  { %5685 = sst [smem:[#allocation24_spill]] %s5640_s0 }
   0x2   :  { %5686 = sst [smem:[#allocation25_spill]] %s5641_s1 }
   0x3   :  { %5687 = sst [smem:[#allocation26_spill]] %s5642_s2 }
   0x4   :  { %5688 = sst [smem:[#allocation27_spill]] %s5643_s3 }
   0x5   :  { %5689 = sst [smem:[#allocation28_spill]] %s5644_s4 }
   0x6   :  { %5690 = sst [smem:[#allocation29_spill]] %s5645_s5 }
   0x7   :  { %5691 = sst [smem:[#allocation30_spill]] %s5646_s6 }
   0x8   :  { %5692 = sst [smem:[#allocation31_spill]] %s5654_s14 }
   0x9   :  { %5693 = sst [smem:[#allocation32_spill]] %s5655_s15 }
   0xa   :  { %5694 = sst [smem:[#allocation33_spill]] %s5656_s16 }
   0xb   :  { %5695 = sst [smem:[#allocation34_spill]] %s5657_s17 }
   0xc   :  { %5696 = sst [smem:[#allocation35_spill]] %s5660_s20 }
   0xd   :  { %5697 = sst [smem:[#allocation36_spill]] %s5661_s21 }
   0xe   :  { %5698 = sst [smem:[#allocation37_spill]] %s5662_s22 }
   0xf   :  { %28 = vsyncpa [#allocation5], 0 }
  0x10   :  { %30 = vsyncpa [#allocation5 + $0x1], 0 }
  0x11   :  { %31 = vsyncpa [#allocation7], 0 }
  0x12   :  { %33 = vsyncpa [#allocation7 + $0x1], 0  ;;  %s4905_s3 = smov 0   ;;  %s4907_s28 = smov 0  }
  0x13   :  { %s4909_s29 = smov 0   ;;  %s4911_s30 = smov 0  }
  0x14   :  { %s4913_s4 = smov 0   ;;  %s4915_s0 = smov 0  }
  0x15   :  { %s4917_s23 = smov 0   ;;  %s4919_s1 = smov 0  }
  0x16   :  { %s4921_s5 = smov 0   ;;  %s4923_s24 = smov 0  }
  0x17 LB: > { %5699 = sst [smem:[#allocation11_spill]] %s4735_s3  ;;  %s48_s26 = sadd.s32 1, %s4763_s1  ;;  %s4771_s24 = sphi %s4923_s24, %s39_s24   ;;  %s4767_s5 = sphi %s4921_s5, %s5755_s5   ;;  %s4763_s1 = sphi %s4919_s1, %s5754_s1   ;;  %s4759_s23 = sphi %s4917_s23, %s5753_s23   ;;  %s4755_s0 = sphi %s4915_s0, %s5752_s0   ;;  %s4751_s4 = sphi %s4913_s4, %s5751_s4   ;;  %s4747_s30 = sphi %s4911_s30, %s5750_s30   ;;  %s4743_s29 = sphi %s4909_s29, %s5749_s29   ;;  %s4739_s28 = sphi %s4907_s28, %s5748_s28   ;;  %s4735_s3 = sphi %s4905_s3, %s5747_s3  }
  0x18   : > { %5700 = sst [smem:[#allocation12_spill]] %s4739_s28  ;;  %s51_s2 = sadd.s32 1, %s4767_s5 }
  0x19   : > { %5701 = sst [smem:[#allocation13_spill]] %s4743_s29  ;;  %p49_p0 = scmp.ge.s32.totalorder %s48_s26, 2 }
  0x1a   : > { %5702 = sst [smem:[#allocation14_spill]] %s4751_s4  ;;  %s420_s27 = sadd.s32 1, %s4751_s4 }
  0x1b   : > { %5703 = sst [smem:[#allocation15_spill]] %s4759_s23  ;;  %p427_p1 = scmp.ne.s32.totalorder %s4751_s4, %s4747_s30 }
  0x1c   : > { %5704 = sst [smem:[#allocation16_spill]] %s4763_s1  ;;  %p428_p2 = scmp.eq.s32.totalorder %s4771_s24, 0 }
  0x1d   : > { %5705 = sst [smem:[#allocation17_spill]] %s4767_s5  ;;  %s5757_s26 = smov (%p49_p0, %s48_s26), 0 }
  0x1e   : > { %5706 = sst [smem:[#allocation18_spill]] %s5757_s26  ;;  %s5759_s2 = smov (!%p49_p0, %s51_s2), %s4767_s5 }
  0x1f   : > { %s417_s20 = ssub.s32 %s4763_s1, %s5757_s26  ;;  %p4968_p3 = por %p428_p2, %p427_p1 }
  0x20   : > { %p53_p4 = scmp.ge.s32.totalorder %s5759_s2, 2  ;;  %p418_p5 = scmp.eq.s32.totalorder %s417_s20, 0 }
  0x21   : > { %s498_s6 = sadd.s32 1, %s4743_s29  ;;  %p508_p6 = scmp.ne.s32.totalorder %s4743_s29, %s4739_s28 }
  0x22   : > { %s5761_s2 = smov (%p53_p4, %s5759_s2), 0  ;;  %s5710_s15 = sadd.s32 4294967295, %s4771_s24  }
  0x23   : > { %5708 = sst [smem:[#allocation19_spill]] %s5761_s2  ;;  %s495_s21 = ssub.s32 %s4767_s5, %s5761_s2 }
  0x24   : > { %s4978_s22 = scalar_select %p418_p5, %s4751_s4, %s420_s27  }
  0x25   : > { %p509_p7 = scmp.eq.s32.totalorder %s5710_s15, 3  ;;  %p496_p8 = scmp.eq.s32.totalorder %s495_s21, 0 }
  0x26   : > { %5709 = sst [smem:[#allocation20_spill]] %s4978_s22  ;;  %p514_p9 = scmp.ne.s32.totalorder %s4739_s28, %s4735_s3 }
  0x27   : > { %p4986_p10 = por %p509_p7, %p508_p6  ;;  %s5713_s14 = sadd.s32 4294967294, %s4771_s24  }
  0x28   : > { %p515_p11 = scmp.eq.s32.totalorder %s5713_s14, 3  ;;  %p4135_p13 = scmp.ge.s32.totalorder %s4771_s24, 4 }
  0x29   : > { %s5711_s26 = scalar_select %p4986_p10, 1, 0 }
  0x2a   : > { %s4993_s16 = scalar_select %p496_p8, %s4743_s29, %s498_s6  }
  0x2b   : > { %5712 = sst [smem:[#allocation21_spill]] %s5711_s26  ;;  %p4995_p12 = por %p515_p11, %p514_p9 }
  0x2c   : > { %5714 = sst [smem:[#allocation22_spill]] %s4993_s16  ;;  %631 = sbr.rel (%p4135_p13) target bundleno = 61 (0x3d), region = 80 }
  0x2d   : > { %s5715_s20 = scalar_select %p4995_p12, 1, 0 }
  0x2f   : > { %5716 = sst [smem:[#allocation23_spill]] %s5715_s20 }
  0x31   : > { %641 = sbr.rel (!%p4968_p3) target bundleno = 61 (0x3d), region = 88  ;;  %s643_s15 = sand.u32 (%p4968_p3), 1, %s4751_s4  }
  0x32   : > { %s4137_s21 = sshll.u32 (%p4968_p3), %s4763_s1, 3  ;;  %s4136_s27 = sshll.u32 (%p4968_p3), %s643_s15, 5 }
  0x33   : > { %s5717_s17 = sld [smem:[#allocation34_spill]] (%p4968_p3)  ;;  %s645_s6 = scalar_lea.vmem (%p4968_p3), [#allocation3], %s4136_s27 }
  0x39   : > { %s647_s14 = scalar_lea.vmem %s5717_s17, %s4137_s21 }
  0x3a   : > { %v682_v0 = vld [vmem:[%s647_s14] sm:$0xff]  ;;  %v684_v1 = vld [vmem:[%s647_s14 + $0x10] sm:$0xff] }
  0x3b   : > { %v686_v2 = vld [vmem:[%s647_s14 + $0x20] sm:$0xff]  ;;  %683 = vst [vmem:[%s645_s6] sm:$0xff] %v682_v0  ;;  %685 = vst [vmem:[%s645_s6 + $0x8] sm:$0xff] %v684_v1  ;;  %v688_v3 = vld [vmem:[%s647_s14 + $0x30] sm:$0xff] }
  0x3c   : > { %687 = vst [vmem:[%s645_s6 + $0x10] sm:$0xff] %v686_v2  ;;  %689 = vst [vmem:[%s645_s6 + $0x18] sm:$0xff] %v688_v3 }
  0x3d PF: > { %p4138_p0 = scmp.ge.s32.totalorder %s4771_s24, 1  ;;  %p709_p1 = scmp.lt.s32.totalorder %s4771_s24, 5 }
  0x3f   : > { %p710_p2 = pnand %p4138_p0, %p709_p1 }
  0x40   : > { %s716_s5 = sand.u32 (!%p710_p2), 1, %s4747_s30   ;;  %s5673_s25 = sand.u32 (!%p710_p2), 1, %s4739_s28  }
  0x41   : > { %713 = sbr.rel (%p710_p2) target bundleno = 3723 (0xe8b), region = 134  ;;  %s4139_s2 = sshll.u32 (!%p710_p2), %s716_s5, 5 }
  0x42   : > { %s5013_s15 = sshll.u32 (!%p710_p2), %s5673_s25, 3  ;;  %p799_p3 = scmp.lt.s32.totalorder (!%p710_p2), %s4759_s23, 1 }
  0x43   : > { %p803_p4 = scmp.lt.s32.totalorder (!%p710_p2), %s4755_s0, 1  ;;  %s4144_s21 = sshll.u32 (!%p710_p2), %s4755_s0, 4 }
  0x44   : > { %p807_p5 = scmp.lt.s32.totalorder (!%p710_p2), %s4144_s21, 31  ;;  %s5718_s30 = sld [smem:[#allocation24_spill]] (!%p710_p2) }
  0x45   : > { %s5034_s28 = scalar_lea.vmem (!%p710_p2), [#allocation3], %s4139_s2  ;;  %s5037_s26 = scalar_lea.vmem (!%p710_p2), [#allocation4], %s5013_s15 }
  0x46   : > { %s800_s27 = scalar_select %p799_p3, %s4759_s23, 1 }
  0x47   : > { %s5020_s14 = scalar_select %p803_p4, %s4755_s0, 1 }
  0x48   : > { %s4143_s6 = sshll.u32 %s800_s27, 3  ;;  %s5763_s21 = smov (!%p807_p5, %s4144_s21), 31 }
  0x49   : > { %s4145_s16 = sshll.u32 %s5763_s21, 3  ;;  %s5682_s27 = scalar_lea.vmem [#allocation6], %s5013_s15 }
  0x4a   : > { %s802_s22 = scalar_lea.vmem %s5718_s30, %s4143_s6  ;;  %s5032_s3 = scalar_lea.vmem %s5659_s19, %s4145_s16 }
  0x4b   : > { %s5681_s23 = scalar_lea.vmem [#allocation8], %s5013_s15  ;;  %p4146_p6 = scmp.ne.s32.totalorder %s4755_s0, 0 }
  0x4c   : > { %s5719_s29 = sld [smem:[#allocation28_spill]] (!%p4146_p6)  ;;  %s4775_s1 = smov (!%p4146_p6), 104  }
  0x4d   : > { %815 = sbr.rel (%p4146_p6) target bundleno = 3291 (0xcdb), region = 142  ;;  %s5721_s5 = sld [smem:[#allocation26_spill]] (!%p4146_p6) }
  0x4e   : > { %s5723_s0 = sld [smem:[#allocation29_spill]] (!%p4146_p6)  ;;  %s4776_s2 = smov (!%p4146_p6), 120  }
  0x4f   : > { %s4777_s21 = smov (!%p4146_p6), 112   ;;  %s4778_s6 = smov (!%p4146_p6), 96  }
  0x50   : > { %s4779_s30 = smov (!%p4146_p6), 64   ;;  %s5724_s17 = sld [smem:[#allocation25_spill]] (!%p4146_p6) }
  0x51   : > { %s5725_s4 = sld [smem:[#allocation30_spill]] (!%p4146_p6)  ;;  %s5727_s25 = smov (!%p4146_p6), 8  }
  0x52   : > { %v5042_v4 = vld [vmem:[%s802_s22] sm:$0xff]  ;;  %vm819_vm0 = vcmask 261120   ;;  %s5720_s20 = smov %s5719_s29  ;;  %v854_v8 = vld [vmem:[%s5719_s29 + $0x18] sm:$0xff]  ;;  %v4773_v9 = vmov 0.0   ;;  %vm4774_vm1 = vmmov 0   ;;  %s5722_s29 = sld [smem:[#allocation27_spill]]  ;;  %v950_v37 = vlaneseq }
  0x53   : > { %v820_v5 = vsel %vm819_vm0, %v5042_v4, 0.0  ;;  %v825_v6 = vmul.f32 %v5042_v4, %v5042_v4  ;;  %4286 = vmatprep.subr.mxu0 %v4773_v9  ;;  %v853_v10 = vld [vmem:[%s5720_s20 + $0x10] sm:$0xff]  ;;  %4294 = vmatprep.mubr.msk.f32.mxu0 %vm4774_vm1, %v4773_v9  ;;  %v852_v11 = vld [vmem:[%s5720_s20 + $0x8] sm:$0xff]  ;;  %v851_v12 = vld [vmem:[%s5720_s20] sm:$0xff]  ;;  %v4780_v35 = vmov 1983009808  }
  0x54   : > { %821 = vadd.xlane.f32.xlu0 %v820_v5  ;;  %4287 = vmatpush3.msra.mxu0 %v854_v8  ;;  %v4147_v22 = vld [vmem:[%s5721_s5] ss:$0 sm:$0xff]  ;;  %v948_v36 = vunpack.c.l.s4 %v4780_v35  ;;  %v951_v39 = vshrl.u32 %v950_v37, 7  ;;  %v4781_v40 = vmov 1934713408   ;;  %vm1377_vm2 = vcmask 64512  }
  0x55   : > { %v826_v7 = vsel %vm819_vm0, %v825_v6, 0.0  ;;  %4297 = vmatprep.subr.mxu1 %v4773_v9  ;;  %4288 = vmatprep.subr.mxu0 %v4773_v9  ;;  %v4149_v27 = vld [vmem:[%s5723_s0] ss:$0 sm:$0xff]  ;;  %v980_v41 = vunpack.c.l.s4 %v4781_v40  ;;  %s4782_s0 = smov 16   ;;  %s5684_s5 = smov 8   ;;  %vm2167_vm3 = vcmask 130048  }
  0x56   : > { %4299 = vmatprep.mubr.msk.f32.mxu1 %vm4774_vm1, %v4773_v9  ;;  %4289 = vmatpush3.msra.mxu0 %v853_v10  ;;  %v949_v38 = vunpack.c.0.s8 %v948_v36  ;;  %vm2169_vm4 = vcmask 195584   ;;  %s5731_s22 = sld [smem:[#allocation32_spill]] }
  0x57   : > { %4290 = vmatprep.subr.mxu0 %v4773_v9  ;;  %v981_v47 = vunpack.c.0.s8 %v980_v41  ;;  %s5726_s16 = smov %s5725_s4 }
  0x58   : > { %827 = vadd.xlane.f32.xlu0 %v826_v7  ;;  %4291 = vmatpush3.msra.mxu0 %v852_v11  ;;  %v4148_v24 = vld [vmem:[%s5722_s29] ss:$0 sm:$0xff]  ;;  %v5106_v44 = vsub.s32 %v949_v38, %v951_v39 }
  0x59   : > { %4292 = vmatprep.subr.mxu0 %v4773_v9  ;;  %v5116_v53 = vsub.s32 %v981_v47, %v951_v39 }
  0x5a   : > { %4293 = vmatpush3.msra.mxu0 %v851_v12 }
  0x5b   : > { %4317 = vmatprep.subr.mxu0 %v4773_v9 }
  0xdd   : > { %v822_v13 = vpop.xlane.xlu0 %821 }
  0xde   : > { %v824_v14 = vmul.f32 0.03125, %v822_v13 }
  0xe0   : > { %v830_v16 = vmul.f32 %v824_v14, %v824_v14  ;;  %v832_v20 = vsub.f32 %v5042_v4, %v824_v14 }
  0xe1   : > { %v828_v15 = vpop.xlane.xlu0 %827 }
  0xe2   : > { %v829_v17 = vmul.f32 0.03125, %v828_v15 }
  0xe4   : > { %v831_v18 = vsub.f32 %v829_v17, %v830_v16 }
  0xe6   : > { %v833_v19 = vadd.f32 1e-05, %v831_v18 }
  0xe8   : > { %4567 = vrsqrt.f32 %v833_v19 }
  0xf5   : > { %v4568_v21 = vpop.eup %4567 }
  0xf6   : > { %v835_v23 = vmul.f32 %v4568_v21, %v832_v20 }
  0xf8   : > { %v842_v25 = vmul.f32 %v4147_v22, %v835_v23 }
  0xfa   : > { %v849_v26 = vadd.f32 %v4148_v24, %v842_v25 }
  0xfc   : > { %4295 = vmatmul.mubr.msk.f32.vlgmr.msra.gmra.mxu0 %vm819_vm0, %v849_v26 }
  0xfd   : > { %4319 = vmatprep.mubr.msk.f32.mxu0 %vm4774_vm1, %v4773_v9 }
 0x1bc   : > { %v931_v28 = vpop.f32.mrf.mxu0 }
 0x1bd   : > { %v932_v29 = vadd.f32 %v4149_v27, %v931_v28 }
 0x1be   : > { %v4296_v30 = vpop.f32.mrf.mxu0 }
 0x1bf   : > { %942 = vrot.lane.b32.xlu0 %v932_v29, %s4775_s1  ;;  %936 = vrot.lane.b32.xlu1 %v932_v29, %s4776_s2 }
 0x1c3   : > { %939 = vrot.lane.b32.xlu1 %v932_v29, %s4777_s21 }
 0x1c7   : > { %1081 = vrot.lane.b32.xlu1 %v932_v29, %s4778_s6 }
 0x231   : > { %v5088_v31 = vpop.permute.xlu1 %936  ;;  %v5096_v33 = vpop.permute.xlu0 %942 }
 0x232   : > { %1083 = vrot.lane.b32.xlu1 %v5088_v31, %s4778_s6  ;;  %v961_v45 = vcombine.low %v5088_v31, %v5096_v33  ;;  %v962_v46 = vcombine.high %v5088_v31, %v5096_v33 }
 0x234   : > { %v969_v51 = vrot.slane %v961_v45, %v5106_v44  ;;  %v976_v52 = vrot.slane %v962_v46, %v5106_v44 }
 0x235   : > { %v5092_v32 = vpop.permute.xlu1 %939 }
 0x236   : > { %1085 = vrot.lane.b32.xlu1 %v5092_v32, %s4778_s6  ;;  %v945_v42 = vcombine.low %v932_v29, %v5092_v32  ;;  %v946_v43 = vcombine.high %v932_v29, %v5092_v32 }
 0x238   : > { %v953_v48 = vrot.slane %v945_v42, %v5106_v44  ;;  %v960_v49 = vrot.slane %v946_v43, %v5106_v44 }
 0x239   : > { %v1082_v34 = vpop.permute.xlu1 %1081 }
 0x23a   : > { %2255 = vst.msk [vmem:[%s5682_s27] sm:$0xff] %vm819_vm0, %v1082_v34  ;;  %1087 = vrot.lane.b32.xlu1 %v5096_v33, %s4778_s6  ;;  %v977_v54 = vcombine.low %v953_v48, %v969_v51  ;;  %v978_v55 = vcombine.high %v953_v48, %v969_v51  ;;  %v993_v56 = vcombine.low %v960_v49, %v976_v52  ;;  %s5728_s27 = smov 24  }
 0x23b   : > { %v994_v57 = vcombine.high %v960_v49, %v976_v52 }
 0x23c   : > { %v985_v61 = vrot.slane %v977_v54, %v5116_v53  ;;  %v992_v62 = vrot.slane %v978_v55, %v5116_v53  ;;  %v1001_v63 = vrot.slane %v993_v56, %v5116_v53 }
 0x23d   : > { %v1008_v0 = vrot.slane %v994_v57, %v5116_v53 }
 0x23e   : > { %1229 = vrot.lane.b32.xlu1 %v932_v29, %s4779_s30  ;;  %v1013_v10 = vcombine.low %v985_v61, %v992_v62  ;;  %v4151_v11 = vcombine.high %v985_v61, %v992_v62 }
 0x23f   : > { %v1029_v12 = vcombine.low %v1001_v63, %v1008_v0  ;;  %v4152_v13 = vcombine.high %v1001_v63, %v1008_v0  ;;  %v850_v0 = vld [vmem:[%s5724_s17] sm:$0xff]  ;;  %s5683_s17 = smov 24  }
 0x240   : > { %v1020_v23 = vrot.slane %v1013_v10, %v5106_v44  ;;  %v1028_v24 = vrot.slane %v4151_v11, %v5106_v44 }
 0x241   : > { %v1036_v25 = vrot.slane %v1029_v12, %v5106_v44  ;;  %v1044_v26 = vrot.slane %v4152_v13, %v5106_v44 }
 0x242   : > { %v1045_v38 = vcombine.low %v1020_v23, %v1028_v24 }
 0x243   : > { %v1061_v39 = vcombine.low %v1036_v25, %v1044_v26  ;;  %v1062_v51 = vcombine.high %v1036_v25, %v1044_v26 }
 0x244   : > { %v1053_v45 = vrot.slane %v1045_v38, %v5116_v53 }
 0x245   : > { %v1069_v46 = vrot.slane %v1061_v39, %v5116_v53 }
 0x247   : > { %v1077_v52 = vcombine.low %v1053_v45, %v1069_v46  ;;  %v1078_v57 = vcombine.high %v1053_v45, %v1069_v46 }
 0x2a4   : > { %v1084_v50 = vpop.permute.xlu1 %1083 }
 0x2a8   : > { %v1086_v58 = vpop.permute.xlu1 %1085 }
 0x2a9   : > { %v1093_v59 = vcombine.low %v1082_v34, %v1086_v58  ;;  %v1094_v60 = vcombine.high %v1082_v34, %v1086_v58 }
 0x2ab   : > { %v1101_v5 = vrot.slane %v1093_v59, %v5106_v44  ;;  %v1108_v6 = vrot.slane %v1094_v60, %v5106_v44  ;;  %v1076_v59 = vrot.slane %v1062_v51, %v5116_v53 }
 0x2ac   : > { %v1088_v1 = vpop.permute.xlu1 %1087 }
 0x2ad   : > { %v1109_v2 = vcombine.low %v1084_v50, %v1088_v1  ;;  %v1110_v3 = vcombine.high %v1084_v50, %v1088_v1  ;;  %v1046_v50 = vcombine.high %v1020_v23, %v1028_v24 }
 0x2af   : > { %v1117_v7 = vrot.slane %v1109_v2, %v5106_v44  ;;  %v1124_v8 = vrot.slane %v1110_v3, %v5106_v44  ;;  %v1060_v58 = vrot.slane %v1046_v50, %v5116_v53 }
 0x2b0   : > { %v5126_v14 = vpop.permute.xlu1 %1229 }
 0x2b1   : > { %v1125_v15 = vcombine.low %v1101_v5, %v1117_v7  ;;  %v1126_v16 = vcombine.high %v1101_v5, %v1117_v7  ;;  %v1141_v17 = vcombine.low %v1108_v6, %v1124_v8  ;;  %v1142_v18 = vcombine.high %v1108_v6, %v1124_v8  ;;  %2256 = vst.msk [vmem:[%s5681_s23] sm:$0xff] %vm819_vm0, %v5126_v14 }
 0x2b2   : > { %v1079_v61 = vcombine.low %v1060_v58, %v1076_v59  ;;  %v1080_v63 = vcombine.high %v1060_v58, %v1076_v59 }
 0x2b3   : > { %v1133_v19 = vrot.slane %v1125_v15, %v5116_v53  ;;  %v1140_v20 = vrot.slane %v1126_v16, %v5116_v53  ;;  %v1149_v21 = vrot.slane %v1141_v17, %v5116_v53  ;;  %v1156_v22 = vrot.slane %v1142_v18, %v5116_v53 }
 0x2b5   : > { %v1161_v27 = vcombine.low %v1133_v19, %v1140_v20  ;;  %v4153_v28 = vcombine.high %v1133_v19, %v1140_v20  ;;  %v1177_v29 = vcombine.low %v1149_v21, %v1156_v22  ;;  %v4154_v30 = vcombine.high %v1149_v21, %v1156_v22 }
 0x2b7   : > { %v1168_v34 = vrot.slane %v1161_v27, %v5106_v44  ;;  %v1176_v35 = vrot.slane %v4153_v28, %v5106_v44  ;;  %v1184_v36 = vrot.slane %v1177_v29, %v5106_v44  ;;  %v1192_v37 = vrot.slane %v4154_v30, %v5106_v44 }
 0x2b9   : > { %v1193_v40 = vcombine.low %v1168_v34, %v1176_v35  ;;  %v1209_v41 = vcombine.low %v1184_v36, %v1192_v37  ;;  %v1194_v47 = vcombine.high %v1168_v34, %v1176_v35  ;;  %v1210_v48 = vcombine.high %v1184_v36, %v1192_v37 }
 0x2bb   : > { %v1201_v42 = vrot.slane %v1193_v40, %v5116_v53  ;;  %v1217_v43 = vrot.slane %v1209_v41, %v5116_v53  ;;  %v1208_v55 = vrot.slane %v1194_v47, %v5116_v53  ;;  %v1224_v56 = vrot.slane %v1210_v48, %v5116_v53 }
 0x2bd   : > { %v1225_v49 = vcombine.low %v1201_v42, %v1217_v43  ;;  %v1226_v54 = vcombine.high %v1201_v42, %v1217_v43  ;;  %v1227_v60 = vcombine.low %v1208_v55, %v1224_v56  ;;  %v1228_v62 = vcombine.high %v1208_v55, %v1224_v56 }
 0x2bf   : > { %4298 = vmatpush3.xpose.msk.msra.mxu1 %vm1377_vm2, %v1225_v49 }
 0x2c0   : > { %4302 = vmatprep.subr.mxu1 %v4773_v9 }
 0x2c2   : > { %4300 = vmatmul.mubr.msk.f32.vlgmr.msra.gmra.mxu1 %vm1377_vm2, %v1077_v52 }
 0x2c3   : > { %4303 = vmatpush3.xpose.msk.msra.mxu1 %vm1377_vm2, %v1226_v54  ;;  %4304 = vmatprep.mubr.msk.f32.mxu1 %vm4774_vm1, %v4773_v9 }
 0x2c4   : > { %4307 = vmatprep.subr.mxu1 %v4773_v9 }
 0x2c6   : > { %4305 = vmatmul.mubr.msk.f32.vlgmr.msra.gmra.mxu1 %vm1377_vm2, %v1078_v57 }
 0x2c7   : > { %4308 = vmatpush3.xpose.msk.msra.mxu1 %vm1377_vm2, %v1227_v60  ;;  %4309 = vmatprep.mubr.msk.f32.mxu1 %vm4774_vm1, %v4773_v9 }
 0x2c8   : > { %4312 = vmatprep.subr.mxu1 %v4773_v9 }
 0x2ca   : > { %4310 = vmatmul.mubr.msk.f32.vlgmr.msra.gmra.mxu1 %vm1377_vm2, %v1079_v61 }
 0x2cb   : > { %4313 = vmatpush3.xpose.msk.msra.mxu1 %vm1377_vm2, %v1228_v62  ;;  %4314 = vmatprep.mubr.msk.f32.mxu1 %vm4774_vm1, %v4773_v9 }
 0x2cc   : > { %4322 = vmatprep.subr.mxu1 %v4773_v9 }
 0x2ce   : > { %4315 = vmatmul.mubr.msk.f32.vlgmr.msra.gmra.mxu1 %vm1377_vm2, %v1080_v63 }
 0x2cf   : > { %4324 = vmatprep.mubr.msk.f32.mxu1 %vm4774_vm1, %v4773_v9 }
 0x382   : > { %v1450_v1 = vpop.f32.mrf.mxu1 }
 0x383   : > { %v1451_v2 = vadd.f32 %v1450_v1, %v850_v0 }
 0x384   : > { %v4301_v3 = vpop.f32.mrf.mxu1 }
 0x385   : > { %v1682_v5 = vsel %vm1377_vm2, %v1451_v2, -inf }
 0x386   : > { %1683 = vmax.xlane.f32.xlu1 %v1682_v5  ;;  %v1526_v6 = vpop.f32.mrf.mxu1 }
 0x387   : > { %v1527_v7 = vadd.f32 %v1526_v6, %v850_v0 }
 0x388   : > { %v4306_v8 = vpop.f32.mrf.mxu1 }
 0x389   : > { %v1685_v10 = vsel %vm1377_vm2, %v1527_v7, -inf }
 0x38a   : > { %1686 = vmax.xlane.f32.xlu0 %v1685_v10  ;;  %v1602_v11 = vpop.f32.mrf.mxu1 }
 0x38b   : > { %v1603_v12 = vadd.f32 %v1602_v11, %v850_v0 }
 0x38c   : > { %v4311_v13 = vpop.f32.mrf.mxu1 }
 0x38d   : > { %v1688_v15 = vsel %vm1377_vm2, %v1603_v12, -inf }
 0x38e   : > { %1689 = vmax.xlane.f32.xlu1 %v1688_v15  ;;  %v1678_v16 = vpop.f32.mrf.mxu1 }
 0x38f   : > { %v1679_v17 = vadd.f32 %v1678_v16, %v850_v0 }
 0x390   : > { %v4316_v18 = vpop.f32.mrf.mxu1 }
 0x391   : > { %v1691_v19 = vsel %vm1377_vm2, %v1679_v17, -inf }
 0x392   : > { %1692 = vmax.xlane.f32.xlu0 %v1691_v19  ;;  %v2174_v19 = vld [vmem:[%s5725_s4 + $0x18] sm:$0xff] }
 0x39f   : > { %1233 = vrot.lane.b32.xlu1 %v5092_v32, %s4779_s30 }
 0x3a3   : > { %1235 = vrot.lane.b32.xlu1 %v5096_v33, %s4779_s30 }
 0x3a8   : > { %1231 = vrot.lane.b32.xlu0 %v5088_v31, %s4779_s30 }
 0x40f   : > { %v1684_v20 = vpop.xlane.xlu1 %1683 }
 0x410   : > { %v1694_v21 = vsub.f32 %v1451_v2, %v1684_v20 }
 0x412   : > { %v1698_v22 = vmul.f32 1.442695, %v1694_v21 }
 0x413   : > { %v1687_v23 = vpop.xlane.xlu0 %1686 }
 0x414   : > { %4569 = vpow2.f32 %v1698_v22  ;;  %v1695_v24 = vsub.f32 %v1527_v7, %v1687_v23 }
 0x416   : > { %v1700_v25 = vmul.f32 1.442695, %v1695_v24 }
 0x417   : > { %v1690_v26 = vpop.xlane.xlu1 %1689 }
 0x418   : > { %4571 = vpow2.f32 %v1700_v25  ;;  %v1696_v27 = vsub.f32 %v1603_v12, %v1690_v26 }
 0x41a   : > { %v1702_v28 = vmul.f32 1.442695, %v1696_v27 }
 0x41b   : > { %v1693_v29 = vpop.xlane.xlu0 %1692  ;;  %v1234_v30 = vpop.permute.xlu1 %1233 }
 0x41c   : > { %4573 = vpow2.f32 %v1702_v28  ;;  %v1697_v32 = vsub.f32 %v1679_v17, %v1693_v29  ;;  %v1241_v33 = vcombine.low %v5126_v14, %v1234_v30  ;;  %v1242_v31 = vcombine.high %v5126_v14, %v1234_v30 }
 0x41e   : > { %v1704_v34 = vmul.f32 1.442695, %v1697_v32  ;;  %v1249_v40 = vrot.slane %v1241_v33, %v5106_v44  ;;  %v1256_v41 = vrot.slane %v1242_v31, %v5106_v44 }
 0x41f   : > { %v1232_v35 = vpop.permute.xlu0 %1231  ;;  %v1236_v36 = vpop.permute.xlu1 %1235 }
 0x420   : > { %4575 = vpow2.f32 %v1704_v34  ;;  %v1257_v37 = vcombine.low %v1232_v35, %v1236_v36  ;;  %v1258_v38 = vcombine.high %v1232_v35, %v1236_v36 }
 0x421   : > { %v4570_v39 = vpop.eup %4569 }
 0x422   : > { %v1265_v42 = vrot.slane %v1257_v37, %v5106_v44  ;;  %v1272_v43 = vrot.slane %v1258_v38, %v5106_v44  ;;  %v1706_v45 = vsel %vm1377_vm2, %v4570_v39, 0.0 }
 0x423   : > { %1707 = vadd.xlane.f32.xlu0 %v1706_v45 }
 0x424   : > { %v1273_v46 = vcombine.low %v1249_v40, %v1265_v42  ;;  %v1274_v47 = vcombine.high %v1249_v40, %v1265_v42  ;;  %v1289_v14 = vcombine.low %v1256_v41, %v1272_v43  ;;  %v1290_v48 = vcombine.high %v1256_v41, %v1272_v43 }
 0x425   : > { %v4572_v49 = vpop.eup %4571 }
 0x426   : > { %v1281_v50 = vrot.slane %v1273_v46, %v5116_v53  ;;  %v1288_v51 = vrot.slane %v1274_v47, %v5116_v53  ;;  %v1297_v52 = vrot.slane %v1289_v14, %v5116_v53  ;;  %v1304_v54 = vrot.slane %v1290_v48, %v5116_v53 }
 0x427   : > { %v1709_v55 = vsel %vm1377_vm2, %v4572_v49, 0.0 }
 0x428   : > { %v1309_v56 = vcombine.low %v1281_v50, %v1288_v51  ;;  %v4155_v57 = vcombine.high %v1281_v50, %v1288_v51  ;;  %v1325_v58 = vcombine.low %v1297_v52, %v1304_v54  ;;  %v4156_v59 = vcombine.high %v1297_v52, %v1304_v54  ;;  %1710 = vadd.xlane.f32.xlu1 %v1709_v55  ;;  %v2173_v52 = vld [vmem:[%s5726_s16 + $0x10] sm:$0xff]  ;;  %v2172_v54 = vld [vmem:[%s5726_s16 + $0x8] sm:$0xff] }
 0x429   : > { %v4574_v60 = vpop.eup %4573 }
 0x42a   : > { %v1316_v61 = vrot.slane %v1309_v56, %v5106_v44  ;;  %v1324_v62 = vrot.slane %v4155_v57, %v5106_v44  ;;  %v1332_v63 = vrot.slane %v1325_v58, %v5106_v44  ;;  %v1340_v0 = vrot.slane %v4156_v59, %v5106_v44 }
 0x42b   : > { %v1712_v1 = vsel %vm1377_vm2, %v4574_v60, 0.0 }
 0x42c   : > { %1713 = vadd.xlane.f32.xlu0 %v1712_v1  ;;  %v1341_v2 = vcombine.low %v1316_v61, %v1324_v62  ;;  %v1357_v3 = vcombine.low %v1332_v63, %v1340_v0  ;;  %v1342_v5 = vcombine.high %v1316_v61, %v1324_v62  ;;  %v1358_v6 = vcombine.high %v1332_v63, %v1340_v0  ;;  %v2171_v63 = vld [vmem:[%s5726_s16] sm:$0xff] }
 0x42d   : > { %v4576_v7 = vpop.eup %4575 }
 0x42e   : > { %v1715_v8 = vsel %vm1377_vm2, %v4576_v7, 0.0  ;;  %v1349_v10 = vrot.slane %v1341_v2, %v5116_v53  ;;  %v1365_v11 = vrot.slane %v1357_v3, %v5116_v53  ;;  %v1356_v12 = vrot.slane %v1342_v5, %v5116_v53 }
 0x42f   : > { %v1372_v13 = vrot.slane %v1358_v6, %v5116_v53 }
 0x430   : > { %1716 = vadd.xlane.f32.xlu0 %v1715_v8  ;;  %v1373_v15 = vcombine.low %v1349_v10, %v1365_v11  ;;  %v1374_v16 = vcombine.high %v1349_v10, %v1365_v11 }
 0x431   : > { %v1375_v17 = vcombine.low %v1356_v12, %v1372_v13  ;;  %v1376_v18 = vcombine.high %v1356_v12, %v1372_v13 }
 0x432   : > { %4318 = vmatpush3.msra.mxu0 %v1373_v15  ;;  %4323 = vmatpush3.msra.mxu1 %v1374_v16 }
 0x433   : > { %4320 = vmatmul.mubr.msk.f32.vlgmr.msra.gmra.mxu0 %vm1377_vm2, %v4570_v39  ;;  %4325 = vmatmul.mubr.msk.f32.vlgmr.msra.gmra.mxu1 %vm1377_vm2, %v4572_v49 }
 0x434   : > { %4327 = vmatprep.subr.mxu0 %v4773_v9  ;;  %4332 = vmatprep.subr.mxu1 %v4773_v9 }
 0x435   : > { %4328 = vmatpush3.msra.mxu0 %v1375_v17  ;;  %4333 = vmatpush3.msra.mxu1 %v1376_v18 }
 0x436   : > { %4329 = vmatprep.mubr.msk.f32.mxu0 %vm4774_vm1, %v4773_v9  ;;  %4334 = vmatprep.mubr.msk.f32.mxu1 %vm4774_vm1, %v4773_v9 }
 0x437   : > { %4330 = vmatmul.mubr.msk.f32.vlgmr.msra.gmra.mxu0 %vm1377_vm2, %v4574_v60  ;;  %4335 = vmatmul.mubr.msk.f32.vlgmr.msra.gmra.mxu1 %vm1377_vm2, %v4576_v7 }
 0x438   : > { %4337 = vmatprep.subr.mxu0 %v4773_v9  ;;  %4345 = vmatprep.mubr.msk.f32.mxu0 %vm4774_vm1, %v4773_v9 }
 0x439   : > { %4348 = vmatprep.subr.mxu1 %v4773_v9  ;;  %4356 = vmatprep.mubr.msk.f32.mxu1 %vm4774_vm1, %v4773_v9 }
 0x43a   : > { %4338 = vmatpush3.msra.mxu0 %v2174_v19 }
 0x43b   : > { %4339 = vmatprep.subr.mxu0 %v4773_v9 }
 0x43c   : > { %4340 = vmatpush3.msra.mxu0 %v2173_v52 }
 0x43d   : > { %4341 = vmatprep.subr.mxu0 %v4773_v9 }
 0x43e   : > { %4342 = vmatpush3.msra.mxu0 %v2172_v54 }
 0x43f   : > { %4343 = vmatprep.subr.mxu0 %v4773_v9 }
 0x440   : > { %4344 = vmatpush3.msra.mxu0 %v2171_v63 }
 0x441   : > { %4359 = vmatprep.subr.mxu0 %v4773_v9 }
 0x4ac   : > { %v1708_v20 = vpop.xlane.xlu0 %1707 }
 0x4ad   : > { %4577 = vrcp.f32 %v1708_v20 }
 0x4b1   : > { %v1711_v22 = vpop.xlane.xlu1 %1710 }
 0x4b2   : > { %4579 = vrcp.f32 %v1711_v22 }
 0x4b5   : > { %v1714_v21 = vpop.xlane.xlu0 %1713 }
 0x4b6   : > { %4581 = vrcp.f32 %v1714_v21 }
 0x4b9   : > { %v1717_v23 = vpop.xlane.xlu0 %1716 }
 0x4ba   : > { %4583 = vrcp.f32 %v1717_v23  ;;  %v4578_v26 = vpop.eup %4577 }
 0x4bf   : > { %v4580_v27 = vpop.eup %4579 }
 0x4c3   : > { %v4582_v30 = vpop.eup %4581 }
 0x4c7   : > { %v4584_v32 = vpop.eup %4583 }
 0x4f3   : > { %v1787_v24 = vpop.f32.mrf.mxu0  ;;  %v1860_v25 = vpop.f32.mrf.mxu1 }
 0x4f4   : > { %v2014_v31 = vmul.f32 %v4578_v26, %v1787_v24  ;;  %v2015_v35 = vmul.f32 %v4580_v27, %v1860_v25  ;;  %v4171_v25 = vld [vmem:[%s5647_s7] ss:$0 sm:$0xff] }
 0x4f5   : > { %v4321_v28 = vpop.f32.mrf.mxu0  ;;  %v4326_v29 = vpop.f32.mrf.mxu1 }
 0x4f7   : > { %v1933_v33 = vpop.f32.mrf.mxu0  ;;  %v2006_v34 = vpop.f32.mrf.mxu1 }
 0x4f8   : > { %v2016_v36 = vmul.f32 %v4582_v30, %v1933_v33  ;;  %v2017_v37 = vmul.f32 %v4584_v32, %v2006_v34  ;;  %v2292_v34 = vld [vmem:[%s5650_s10 + $0x18] sm:$0xff] }
 0x4f9   : > { %v4331_v38 = vpop.f32.mrf.mxu0  ;;  %v4336_v39 = vpop.f32.mrf.mxu1  ;;  %4349 = vmatpush3.msra.mxu1 %v2292_v34 }
 0x4fa   : > { %v2018_v40 = vcombine.low %v2014_v31, %v2016_v36  ;;  %v2019_v41 = vcombine.high %v2014_v31, %v2016_v36  ;;  %v2034_v42 = vcombine.low %v2015_v35, %v2017_v37  ;;  %v2035_v43 = vcombine.high %v2015_v35, %v2017_v37  ;;  %v2291_v31 = vld [vmem:[%s5650_s10 + $0x10] sm:$0xff]  ;;  %4350 = vmatprep.subr.mxu1 %v4773_v9  ;;  %v2289_v35 = vld [vmem:[%s5650_s10] sm:$0xff] }
 0x4fb   : > { %4351 = vmatpush3.msra.mxu1 %v2291_v31 }
 0x4fc   : > { %v2026_v45 = vrot.slane %v2018_v40, %v5106_v44  ;;  %v2033_v46 = vrot.slane %v2019_v41, %v5106_v44  ;;  %v2042_v47 = vrot.slane %v2034_v42, %v5106_v44  ;;  %v2049_v14 = vrot.slane %v2035_v43, %v5106_v44  ;;  %4352 = vmatprep.subr.mxu1 %v4773_v9 }
 0x4fe   : > { %v2050_v48 = vcombine.low %v2026_v45, %v2042_v47  ;;  %v2051_v49 = vcombine.high %v2026_v45, %v2042_v47  ;;  %v2066_v50 = vcombine.low %v2033_v46, %v2049_v14  ;;  %v2067_v51 = vcombine.high %v2033_v46, %v2049_v14  ;;  %v4173_v46 = vld [vmem:[%s5648_s8] ss:$0 sm:$0xff] }
 0x4ff   : > { %v4174_v14 = vld [vmem:[%s5649_s9] ss:$0 sm:$0xff] }
 0x500   : > { %v2058_v55 = vrot.slane %v2050_v48, %v5116_v53  ;;  %v2065_v56 = vrot.slane %v2051_v49, %v5116_v53  ;;  %v2074_v57 = vrot.slane %v2066_v50, %v5116_v53  ;;  %v2081_v58 = vrot.slane %v2067_v51, %v5116_v53  ;;  %v4175_v50 = vld [vmem:[%s5651_s11] ss:$0 sm:$0xff] }
 0x502   : > { %v2086_v59 = vcombine.low %v2058_v55, %v2065_v56  ;;  %v4169_v60 = vcombine.high %v2058_v55, %v2065_v56  ;;  %v2102_v61 = vcombine.low %v2074_v57, %v2081_v58  ;;  %v4170_v62 = vcombine.high %v2074_v57, %v2081_v58 }
 0x504   : > { %v2093_v0 = vrot.slane %v2086_v59, %v5106_v44  ;;  %v2101_v1 = vrot.slane %v4169_v60, %v5106_v44  ;;  %v2109_v2 = vrot.slane %v2102_v61, %v5106_v44  ;;  %v2117_v3 = vrot.slane %v4170_v62, %v5106_v44 }
 0x506   : > { %v2119_v5 = vcombine.high %v2093_v0, %v2101_v1  ;;  %v2135_v6 = vcombine.high %v2109_v2, %v2117_v3  ;;  %v2118_v7 = vcombine.low %v2093_v0, %v2101_v1  ;;  %v2134_v8 = vcombine.low %v2109_v2, %v2117_v3 }
 0x508   : > { %v2133_v10 = vrot.slane %v2119_v5, %v5116_v53  ;;  %v2149_v11 = vrot.slane %v2135_v6, %v5116_v53  ;;  %v2126_v12 = vrot.slane %v2118_v7, %v5116_v53  ;;  %v2142_v13 = vrot.slane %v2134_v8, %v5116_v53 }
 0x50a   : > { %v2152_v15 = vcombine.low %v2133_v10, %v2149_v11  ;;  %v2151_v16 = vcombine.high %v2126_v12, %v2142_v13  ;;  %v2150_v17 = vcombine.low %v2126_v12, %v2142_v13  ;;  %v2153_v18 = vcombine.high %v2133_v10, %v2149_v11 }
 0x50c   : > { %2159 = vrot.lane.b32.xlu0 %v2152_v15, %s4782_s0  ;;  %2155 = vrot.lane.b32.xlu1 %v2151_v16, %s5684_s5 }
 0x510   : > { %2163 = vrot.lane.b32.xlu1 %v2153_v18, %s5683_s17 }
 0x57e   : > { %v2156_v19 = vpop.permute.xlu1 %2155  ;;  %v2160_v20 = vpop.permute.xlu0 %2159 }
 0x57f   : > { %v2166_v21 = vsel %vm1377_vm2, %v2150_v17, %v2156_v19 }
 0x580   : > { %v2168_v23 = vsel %vm2167_vm3, %v2166_v21, %v2160_v20 }
 0x582   : > { %v2164_v22 = vpop.permute.xlu1 %2163 }
 0x583   : > { %v2170_v24 = vsel %vm2169_vm4, %v2168_v23, %v2164_v22 }
 0x584   : > { %4346 = vmatmul.mubr.msk.f32.vlgmr.msra.gmra.mxu0 %vm819_vm0, %v2170_v24 }
 0x585   : > { %4361 = vmatprep.mubr.msk.f32.mxu0 %vm4774_vm1, %v4773_v9 }
 0x644   : > { %v2251_v26 = vpop.f32.mrf.mxu0 }
 0x645   : > { %v2252_v27 = vadd.f32 %v4171_v25, %v2251_v26 }
 0x646   : > { %v4347_v28 = vpop.f32.mrf.mxu0 }
 0x647   : > { %v5268_v29 = vadd.f32 %v2252_v27, %v5042_v4  ;;  %v2290_v4 = vld [vmem:[%s5650_s10 + $0x8] sm:$0xff] }
 0x648   : > { %4353 = vmatpush3.msra.mxu1 %v2290_v4 }
 0x649   : > { %v2260_v30 = vsel %vm819_vm0, %v5268_v29, 0.0  ;;  %v2264_v32 = vmul.f32 %v5268_v29, %v5268_v29  ;;  %4354 = vmatprep.subr.mxu1 %v4773_v9 }
 0x64a   : > { %2261 = vadd.xlane.f32.xlu1 %v2260_v30  ;;  %4355 = vmatpush3.msra.mxu1 %v2289_v35 }
 0x64b   : > { %v2265_v33 = vsel %vm819_vm0, %v2264_v32, 0.0  ;;  %4364 = vmatprep.subr.mxu1 %v4773_v9 }
 0x64c   : > { %2266 = vadd.xlane.f32.xlu0 %v2265_v33 }
 0x6d3   : > { %v2262_v36 = vpop.xlane.xlu1 %2261 }
 0x6d4   : > { %v2263_v37 = vmul.f32 0.03125, %v2262_v36 }
 0x6d5   : > { %v2267_v38 = vpop.xlane.xlu0 %2266 }
 0x6d6   : > { %v2269_v39 = vmul.f32 %v2263_v37, %v2263_v37  ;;  %v2268_v40 = vmul.f32 0.03125, %v2267_v38  ;;  %v2271_v43 = vsub.f32 %v5268_v29, %v2263_v37 }
 0x6d8   : > { %v2270_v41 = vsub.f32 %v2268_v40, %v2269_v39 }
 0x6da   : > { %v2272_v42 = vadd.f32 1e-05, %v2270_v41 }
 0x6dc   : > { %4585 = vrsqrt.f32 %v2272_v42 }
 0x6e9   : > { %v4586_v45 = vpop.eup %4585 }
 0x6ea   : > { %v2274_v47 = vmul.f32 %v4586_v45, %v2271_v43 }
 0x6ec   : > { %v2281_v48 = vmul.f32 %v4173_v46, %v2274_v47 }
 0x6ee   : > { %v2288_v49 = vadd.f32 %v4174_v14, %v2281_v48 }
 0x6f0   : > { %4357 = vmatmul.mubr.msk.f32.vlgmr.msra.gmra.mxu1 %vm819_vm0, %v2288_v49 }
 0x6f1   : > { %4366 = vmatprep.mubr.msk.f32.mxu1 %vm4774_vm1, %v4773_v9 }
 0x7b0   : > { %v2369_v51 = vpop.f32.mrf.mxu1 }
 0x7b1   : > { %v2370_v52 = vadd.f32 %v4175_v50, %v2369_v51 }
 0x7b2   : > { %v4358_v54 = vpop.f32.mrf.mxu1 }
 0x7b3   : > { %2377 = vrot.lane.b32.xlu1 %v2370_v52, %s4777_s21  ;;  %2374 = vrot.lane.b32.xlu0 %v2370_v52, %s4776_s2 }
 0x7b7   : > { %2380 = vrot.lane.b32.xlu1 %v2370_v52, %s4775_s1  ;;  %2519 = vrot.lane.b32.xlu0 %v2370_v52, %s4778_s6  ;;  %s5729_s1 = sld [smem:[#allocation33_spill]] }
 0x825   : > { %v5308_v55 = vpop.permute.xlu1 %2377  ;;  %v5310_v56 = vpop.permute.xlu0 %2374 }
 0x826   : > { %2523 = vrot.lane.b32.xlu0 %v5308_v55, %s4778_s6  ;;  %2521 = vrot.lane.b32.xlu1 %v5310_v56, %s4778_s6  ;;  %v2383_v60 = vcombine.low %v2370_v52, %v5308_v55  ;;  %v2384_v61 = vcombine.high %v2370_v52, %v5308_v55 }
 0x828   : > { %v2391_v1 = vrot.slane %v2383_v60, %v5106_v44  ;;  %v2398_v2 = vrot.slane %v2384_v61, %v5106_v44 }
 0x829   : > { %v5316_v57 = vpop.permute.xlu1 %2380  ;;  %v2520_v0 = vpop.permute.xlu0 %2519 }
 0x82a   : > { %2525 = vrot.lane.b32.xlu1 %v5316_v57, %s4778_s6  ;;  %v2399_v58 = vcombine.low %v5310_v56, %v5316_v57  ;;  %v2400_v59 = vcombine.high %v5310_v56, %v5316_v57  ;;  %s5730_s6 = sld [smem:[#allocation31_spill]] }
 0x82c   : > { %v2407_v62 = vrot.slane %v2399_v58, %v5106_v44  ;;  %v2414_v63 = vrot.slane %v2400_v59, %v5106_v44 }
 0x82e   : > { %2667 = vrot.lane.b32.xlu1 %v2370_v52, %s4779_s30  ;;  %v2415_v3 = vcombine.low %v2391_v1, %v2407_v62  ;;  %v2416_v5 = vcombine.high %v2391_v1, %v2407_v62  ;;  %v2431_v6 = vcombine.low %v2398_v2, %v2414_v63  ;;  %v2432_v7 = vcombine.high %v2398_v2, %v2414_v63 }
 0x830   : > { %v2423_v13 = vrot.slane %v2415_v3, %v5116_v53  ;;  %v2430_v15 = vrot.slane %v2416_v5, %v5116_v53  ;;  %v2439_v16 = vrot.slane %v2431_v6, %v5116_v53  ;;  %v2446_v17 = vrot.slane %v2432_v7, %v5116_v53 }
 0x832   : > { %v2451_v25 = vcombine.low %v2423_v13, %v2430_v15  ;;  %v4177_v26 = vcombine.high %v2423_v13, %v2430_v15  ;;  %v2467_v27 = vcombine.low %v2439_v16, %v2446_v17  ;;  %v4178_v28 = vcombine.high %v2439_v16, %v2446_v17 }
 0x834   : > { %v2458_v37 = vrot.slane %v2451_v25, %v5106_v44  ;;  %v2466_v38 = vrot.slane %v4177_v26, %v5106_v44  ;;  %v2474_v39 = vrot.slane %v2467_v27, %v5106_v44  ;;  %v2482_v40 = vrot.slane %v4178_v28, %v5106_v44 }
 0x836   : > { %v2483_v49 = vcombine.low %v2458_v37, %v2466_v38  ;;  %v2499_v50 = vcombine.low %v2474_v39, %v2482_v40  ;;  %v2484_v61 = vcombine.high %v2458_v37, %v2466_v38 }
 0x838   : > { %v2491_v62 = vrot.slane %v2483_v49, %v5116_v53  ;;  %v2507_v63 = vrot.slane %v2499_v50, %v5116_v53  ;;  %v2498_v6 = vrot.slane %v2484_v61, %v5116_v53 }
 0x83a   : > { %v2515_v7 = vcombine.low %v2491_v62, %v2507_v63 }
 0x898   : > { %v2522_v8 = vpop.permute.xlu1 %2521  ;;  %v2524_v10 = vpop.permute.xlu0 %2523 }
 0x899   : > { %v2531_v11 = vcombine.low %v2520_v0, %v2524_v10  ;;  %v2532_v12 = vcombine.high %v2520_v0, %v2524_v10  ;;  %v2500_v0 = vcombine.high %v2474_v39, %v2482_v40 }
 0x89b   : > { %v2539_v21 = vrot.slane %v2531_v11, %v5106_v44  ;;  %v2546_v22 = vrot.slane %v2532_v12, %v5106_v44  ;;  %v2514_v10 = vrot.slane %v2500_v0, %v5116_v53 }
 0x89c   : > { %v2526_v18 = vpop.permute.xlu1 %2525 }
 0x89d   : > { %v2547_v19 = vcombine.low %v2522_v8, %v2526_v18  ;;  %v2548_v20 = vcombine.high %v2522_v8, %v2526_v18  ;;  %v2516_v8 = vcombine.high %v2491_v62, %v2507_v63  ;;  %v2517_v13 = vcombine.low %v2498_v6, %v2514_v10 }
 0x89e   : > { %v2518_v15 = vcombine.high %v2498_v6, %v2514_v10 }
 0x89f   : > { %v2555_v23 = vrot.slane %v2547_v19, %v5106_v44  ;;  %v2562_v24 = vrot.slane %v2548_v20, %v5106_v44 }
 0x8a0   : > { %v2668_v28 = vpop.permute.xlu1 %2667 }
 0x8a1   : > { %v2563_v30 = vcombine.low %v2539_v21, %v2555_v23  ;;  %v2564_v32 = vcombine.high %v2539_v21, %v2555_v23  ;;  %v2579_v33 = vcombine.low %v2546_v22, %v2562_v24  ;;  %v2580_v34 = vcombine.high %v2546_v22, %v2562_v24 }
 0x8a3   : > { %v2571_v31 = vrot.slane %v2563_v30, %v5116_v53  ;;  %v2578_v4 = vrot.slane %v2564_v32, %v5116_v53  ;;  %v2587_v35 = vrot.slane %v2579_v33, %v5116_v53  ;;  %v2594_v36 = vrot.slane %v2580_v34, %v5116_v53 }
 0x8a5   : > { %v2599_v41 = vcombine.low %v2571_v31, %v2578_v4  ;;  %v4179_v42 = vcombine.high %v2571_v31, %v2578_v4  ;;  %v2615_v43 = vcombine.low %v2587_v35, %v2594_v36  ;;  %v4180_v45 = vcombine.high %v2587_v35, %v2594_v36 }
 0x8a7   : > { %v2606_v46 = vrot.slane %v2599_v41, %v5106_v44  ;;  %v2614_v47 = vrot.slane %v4179_v42, %v5106_v44  ;;  %v2622_v14 = vrot.slane %v2615_v43, %v5106_v44  ;;  %v2630_v48 = vrot.slane %v4180_v45, %v5106_v44 }
 0x8a9   : > { %v2631_v51 = vcombine.low %v2606_v46, %v2614_v47  ;;  %v2632_v52 = vcombine.high %v2606_v46, %v2614_v47  ;;  %v2647_v54 = vcombine.low %v2622_v14, %v2630_v48  ;;  %v2648_v58 = vcombine.high %v2622_v14, %v2630_v48 }
 0x8ab   : > { %v2639_v59 = vrot.slane %v2631_v51, %v5116_v53  ;;  %v2655_v60 = vrot.slane %v2647_v54, %v5116_v53  ;;  %v2646_v3 = vrot.slane %v2632_v52, %v5116_v53  ;;  %v2662_v5 = vrot.slane %v2648_v58, %v5116_v53 }
 0x8ad   : > { %v2663_v1 = vcombine.low %v2639_v59, %v2655_v60  ;;  %v2664_v2 = vcombine.high %v2639_v59, %v2655_v60  ;;  %v2665_v11 = vcombine.low %v2646_v3, %v2662_v5  ;;  %v2666_v12 = vcombine.high %v2646_v3, %v2662_v5 }
 0x8af   : > { %4360 = vmatpush3.xpose.msk.msra.mxu0 %vm1377_vm2, %v2663_v1  ;;  %4365 = vmatpush3.xpose.msk.msra.mxu1 %vm1377_vm2, %v2664_v2 }
 0x8b0   : > { %4369 = vmatprep.subr.mxu0 %v4773_v9  ;;  %4374 = vmatprep.subr.mxu1 %v4773_v9 }
 0x8b2   : > { %4362 = vmatmul.mubr.msk.f32.vlgmr.msra.gmra.mxu0 %vm1377_vm2, %v2515_v7  ;;  %4367 = vmatmul.mubr.msk.f32.vlgmr.msra.gmra.mxu1 %vm1377_vm2, %v2516_v8 }
 0x8b3   : > { %4370 = vmatpush3.xpose.msk.msra.mxu0 %vm1377_vm2, %v2665_v11  ;;  %4375 = vmatpush3.xpose.msk.msra.mxu1 %vm1377_vm2, %v2666_v12 }
 0x8b4   : > { %4371 = vmatprep.mubr.msk.f32.mxu0 %vm4774_vm1, %v4773_v9  ;;  %4376 = vmatprep.mubr.msk.f32.mxu1 %vm4774_vm1, %v4773_v9 }
 0x8b5   : > { %4379 = vmatprep.subr.mxu0 %v4773_v9  ;;  %4384 = vmatprep.subr.mxu1 %v4773_v9 }
 0x8b6   : > { %4372 = vmatmul.mubr.msk.f32.vlgmr.msra.gmra.mxu0 %vm1377_vm2, %v2517_v13  ;;  %4377 = vmatmul.mubr.msk.f32.vlgmr.msra.gmra.mxu1 %vm1377_vm2, %v2518_v15 }
 0x8b7   : > { %4381 = vmatprep.mubr.msk.f32.mxu0 %vm4774_vm1, %v4773_v9  ;;  %4386 = vmatprep.mubr.msk.f32.mxu1 %vm4774_vm1, %v4773_v9 }
 0x972   : > { %v2887_v16 = vpop.f32.mrf.mxu0  ;;  %v2963_v17 = vpop.f32.mrf.mxu1 }
 0x973   : > { %v3122_v18 = vsel %vm1377_vm2, %v2963_v17, -inf  ;;  %v3119_v19 = vsel %vm1377_vm2, %v2887_v16, -inf }
 0x974   : > { %3123 = vmax.xlane.f32.xlu1 %v3122_v18  ;;  %v4368_v20 = vpop.f32.mrf.mxu1  ;;  %3120 = vmax.xlane.f32.xlu0 %v3119_v19  ;;  %v4363_v21 = vpop.f32.mrf.mxu0 }
 0x976   : > { %v3039_v22 = vpop.f32.mrf.mxu0  ;;  %v3115_v23 = vpop.f32.mrf.mxu1 }
 0x977   : > { %v3125_v24 = vsel %vm1377_vm2, %v3039_v22, -inf  ;;  %v3128_v27 = vsel %vm1377_vm2, %v3115_v23, -inf }
 0x978   : > { %v4378_v25 = vpop.f32.mrf.mxu1  ;;  %3126 = vmax.xlane.f32.xlu0 %v3125_v24  ;;  %v4373_v26 = vpop.f32.mrf.mxu0 }
 0x97c   : > { %3129 = vmax.xlane.f32.xlu0 %v3128_v27 }
 0x985   : > { %2671 = vrot.lane.b32.xlu1 %v5308_v55, %s4779_s30 }
 0x989   : > { %2673 = vrot.lane.b32.xlu1 %v5316_v57, %s4779_s30 }
 0x992   : > { %2669 = vrot.lane.b32.xlu0 %v5310_v56, %s4779_s30 }
 0x9fd   : > { %v3124_v30 = vpop.xlane.xlu1 %3123  ;;  %v3121_v32 = vpop.xlane.xlu0 %3120 }
 0x9fe   : > { %v3132_v33 = vsub.f32 %v2963_v17, %v3124_v30  ;;  %v3131_v34 = vsub.f32 %v2887_v16, %v3121_v32 }
 0xa00   : > { %v3137_v31 = vmul.f32 1.442695, %v3132_v33  ;;  %v3135_v4 = vmul.f32 1.442695, %v3131_v34 }
 0xa01   : > { %v3127_v35 = vpop.xlane.xlu0 %3126  ;;  %v2672_v37 = vpop.permute.xlu1 %2671 }
 0xa02   : > { %4587 = vpow2.f32 %v3137_v31  ;;  %v3133_v36 = vsub.f32 %v3039_v22, %v3127_v35  ;;  %v2679_v57 = vcombine.low %v2668_v28, %v2672_v37  ;;  %v2680_v40 = vcombine.high %v2668_v28, %v2672_v37  ;;  %v3609_v28 = vld [vmem:[%s5652_s12 + $0x18] sm:$0xff] }
 0xa03   : > { %4589 = vpow2.f32 %v3135_v4 }
 0xa04   : > { %v3139_v38 = vmul.f32 1.442695, %v3133_v36  ;;  %v2687_v46 = vrot.slane %v2679_v57, %v5106_v44  ;;  %v2694_v47 = vrot.slane %v2680_v40, %v5106_v44 }
 0xa05   : > { %v3130_v55 = vpop.xlane.xlu0 %3129  ;;  %v2674_v56 = vpop.permute.xlu1 %2673 }
 0xa06   : > { %4591 = vpow2.f32 %v3139_v38  ;;  %v3134_v39 = vsub.f32 %v3115_v23, %v3130_v55 }
 0xa08   : > { %v3141_v41 = vmul.f32 1.442695, %v3134_v39 }
 0xa09   : > { %v2670_v42 = vpop.permute.xlu0 %2669 }
 0xa0a   : > { %4593 = vpow2.f32 %v3141_v41  ;;  %v2695_v43 = vcombine.low %v2670_v42, %v2674_v56  ;;  %v2696_v45 = vcombine.high %v2670_v42, %v2674_v56 }
 0xa0c   : > { %v2703_v14 = vrot.slane %v2695_v43, %v5106_v44  ;;  %v2710_v48 = vrot.slane %v2696_v45, %v5106_v44 }
 0xa0e   : > { %v2711_v49 = vcombine.low %v2687_v46, %v2703_v14  ;;  %v2712_v50 = vcombine.high %v2687_v46, %v2703_v14  ;;  %v2727_v51 = vcombine.low %v2694_v47, %v2710_v48  ;;  %v2728_v52 = vcombine.high %v2694_v47, %v2710_v48 }
 0xa0f   : > { %v4588_v54 = vpop.eup %4587 }
 0xa10   : > { %v4590_v58 = vpop.eup %4589  ;;  %v2719_v59 = vrot.slane %v2711_v49, %v5116_v53  ;;  %v2726_v60 = vrot.slane %v2712_v50, %v5116_v53  ;;  %v2735_v61 = vrot.slane %v2727_v51, %v5116_v53  ;;  %v2742_v62 = vrot.slane %v2728_v52, %v5116_v53 }
 0xa11   : > { %v3146_v63 = vsel %vm1377_vm2, %v4588_v54, 0.0  ;;  %v3143_v0 = vsel %vm1377_vm2, %v4590_v58, 0.0 }
 0xa12   : > { %v2747_v1 = vcombine.low %v2719_v59, %v2726_v60  ;;  %v4181_v2 = vcombine.high %v2719_v59, %v2726_v60  ;;  %v2763_v3 = vcombine.low %v2735_v61, %v2742_v62  ;;  %v4182_v5 = vcombine.high %v2735_v61, %v2742_v62  ;;  %3147 = vadd.xlane.f32.xlu1 %v3146_v63  ;;  %v3608_v62 = vld [vmem:[%s5652_s12 + $0x10] sm:$0xff]  ;;  %v3607_v63 = vld [vmem:[%s5652_s12 + $0x8] sm:$0xff] }
 0xa13   : > { %v4592_v6 = vpop.eup %4591  ;;  %3144 = vadd.xlane.f32.xlu0 %v3143_v0 }
 0xa14   : > { %v2754_v7 = vrot.slane %v2747_v1, %v5106_v44  ;;  %v2762_v8 = vrot.slane %v4181_v2, %v5106_v44  ;;  %v2770_v10 = vrot.slane %v2763_v3, %v5106_v44  ;;  %v2778_v11 = vrot.slane %v4182_v5, %v5106_v44 }
 0xa15   : > { %v3149_v12 = vsel %vm1377_vm2, %v4592_v6, 0.0 }
 0xa16   : > { %v2779_v13 = vcombine.low %v2754_v7, %v2762_v8  ;;  %v2795_v15 = vcombine.low %v2770_v10, %v2778_v11  ;;  %v2780_v16 = vcombine.high %v2754_v7, %v2762_v8  ;;  %v2796_v17 = vcombine.high %v2770_v10, %v2778_v11  ;;  %v3606_v10 = vld [vmem:[%s5652_s12] sm:$0xff] }
 0xa17   : > { %v4594_v18 = vpop.eup %4593  ;;  %3150 = vadd.xlane.f32.xlu0 %v3149_v12 }
 0xa18   : > { %v3152_v19 = vsel %vm1377_vm2, %v4594_v18, 0.0  ;;  %v2787_v20 = vrot.slane %v2779_v13, %v5116_v53  ;;  %v2803_v21 = vrot.slane %v2795_v15, %v5116_v53  ;;  %v2794_v22 = vrot.slane %v2780_v16, %v5116_v53 }
 0xa19   : > { %v2810_v23 = vrot.slane %v2796_v17, %v5116_v53 }
 0xa1a   : > { %v2811_v24 = vcombine.low %v2787_v20, %v2803_v21  ;;  %v2812_v25 = vcombine.high %v2787_v20, %v2803_v21 }
 0xa1b   : > { %3153 = vadd.xlane.f32.xlu0 %v3152_v19  ;;  %v2813_v26 = vcombine.low %v2794_v22, %v2810_v23  ;;  %v2814_v27 = vcombine.high %v2794_v22, %v2810_v23 }
 0xa1c   : > { %4380 = vmatpush3.msra.mxu0 %v2811_v24  ;;  %4385 = vmatpush3.msra.mxu1 %v2812_v25 }
 0xa1d   : > { %4382 = vmatmul.mubr.msk.f32.vlgmr.msra.gmra.mxu0 %vm1377_vm2, %v4590_v58  ;;  %4387 = vmatmul.mubr.msk.f32.vlgmr.msra.gmra.mxu1 %vm1377_vm2, %v4588_v54 }
 0xa1e   : > { %4389 = vmatprep.subr.mxu0 %v4773_v9  ;;  %4394 = vmatprep.subr.mxu1 %v4773_v9 }
 0xa1f   : > { %4390 = vmatpush3.msra.mxu0 %v2813_v26  ;;  %4395 = vmatpush3.msra.mxu1 %v2814_v27 }
 0xa20   : > { %4391 = vmatprep.mubr.msk.f32.mxu0 %vm4774_vm1, %v4773_v9  ;;  %4396 = vmatprep.mubr.msk.f32.mxu1 %vm4774_vm1, %v4773_v9 }
 0xa21   : > { %4392 = vmatmul.mubr.msk.f32.vlgmr.msra.gmra.mxu0 %vm1377_vm2, %v4592_v6  ;;  %4397 = vmatmul.mubr.msk.f32.vlgmr.msra.gmra.mxu1 %vm1377_vm2, %v4594_v18 }
 0xa22   : > { %4399 = vmatprep.subr.mxu0 %v4773_v9  ;;  %4407 = vmatprep.mubr.msk.f32.mxu0 %vm4774_vm1, %v4773_v9 }
 0xa23   : > { %4400 = vmatpush3.msra.mxu0 %v3609_v28 }
 0xa24   : > { %4401 = vmatprep.subr.mxu0 %v4773_v9 }
 0xa25   : > { %4402 = vmatpush3.msra.mxu0 %v3608_v62 }
 0xa26   : > { %4403 = vmatprep.subr.mxu0 %v4773_v9 }
 0xa27   : > { %4404 = vmatpush3.msra.mxu0 %v3607_v63 }
 0xa28   : > { %4405 = vmatprep.subr.mxu0 %v4773_v9 }
 0xa29   : > { %4406 = vmatpush3.msra.mxu0 %v3606_v10 }
 0xa9b   : > { %v3148_v33 = vpop.xlane.xlu1 %3147 }
 0xa9c   : > { %v3145_v30 = vpop.xlane.xlu0 %3144  ;;  %4595 = vrcp.f32 %v3148_v33  ;;  %v4197_v33 = vld [vmem:[%s5653_s13] ss:$0 sm:$0xff] }
 0xa9d   : > { %4597 = vrcp.f32 %v3145_v30 }
 0xaa0   : > { %v3151_v32 = vpop.xlane.xlu0 %3150 }
 0xaa1   : > { %4599 = vrcp.f32 %v3151_v32 }
 0xaa4   : > { %v3154_v34 = vpop.xlane.xlu0 %3153 }
 0xaa5   : > { %4601 = vrcp.f32 %v3154_v34 }
 0xaa9   : > { %v4596_v35 = vpop.eup %4595 }
 0xaaa   : > { %v4598_v36 = vpop.eup %4597 }
 0xaae   : > { %v4600_v55 = vpop.eup %4599 }
 0xab2   : > { %v4602_v39 = vpop.eup %4601 }
 0xadd   : > { %v3224_v31 = vpop.f32.mrf.mxu0  ;;  %v3297_v4 = vpop.f32.mrf.mxu1 }
 0xade   : > { %v3451_v41 = vmul.f32 %v4598_v36, %v3224_v31  ;;  %v3452_v56 = vmul.f32 %v4596_v35, %v3297_v4  ;;  %v4199_v4 = vld [vmem:[%s5729_s1] ss:$0 sm:$0xff] }
 0xadf   : > { %v4383_v37 = vpop.f32.mrf.mxu0  ;;  %v4388_v38 = vpop.f32.mrf.mxu1 }
 0xae1   : > { %v3370_v57 = vpop.f32.mrf.mxu0  ;;  %v3443_v40 = vpop.f32.mrf.mxu1 }
 0xae2   : > { %v3453_v42 = vmul.f32 %v4600_v55, %v3370_v57  ;;  %v3454_v43 = vmul.f32 %v4602_v39, %v3443_v40 }
 0xae3   : > { %v4393_v45 = vpop.f32.mrf.mxu0  ;;  %v4398_v46 = vpop.f32.mrf.mxu1 }
 0xae4   : > { %v3455_v47 = vcombine.low %v3451_v41, %v3453_v42  ;;  %v3456_v14 = vcombine.high %v3451_v41, %v3453_v42  ;;  %v3471_v48 = vcombine.low %v3452_v56, %v3454_v43  ;;  %v3472_v49 = vcombine.high %v3452_v56, %v3454_v43 }
 0xae6   : > { %v3463_v50 = vrot.slane %v3455_v47, %v5106_v44  ;;  %v3470_v51 = vrot.slane %v3456_v14, %v5106_v44  ;;  %v3479_v52 = vrot.slane %v3471_v48, %v5106_v44  ;;  %v3486_v54 = vrot.slane %v3472_v49, %v5106_v44  ;;  %v4200_v47 = vld [vmem:[%s5730_s6] ss:$0 sm:$0xff] }
 0xae7   : > { %v4201_v48 = vld [vmem:[%s5731_s22] ss:$0 sm:$0xff] }
 0xae8   : > { %v3487_v58 = vcombine.low %v3463_v50, %v3479_v52  ;;  %v3488_v59 = vcombine.high %v3463_v50, %v3479_v52  ;;  %v3503_v60 = vcombine.low %v3470_v51, %v3486_v54  ;;  %v3504_v61 = vcombine.high %v3470_v51, %v3486_v54 }
 0xaea   : > { %v3495_v0 = vrot.slane %v3487_v58, %v5116_v53  ;;  %v3502_v1 = vrot.slane %v3488_v59, %v5116_v53  ;;  %v3511_v2 = vrot.slane %v3503_v60, %v5116_v53  ;;  %v3518_v3 = vrot.slane %v3504_v61, %v5116_v53 }
 0xaec   : > { %v3523_v5 = vcombine.low %v3495_v0, %v3502_v1  ;;  %v4195_v6 = vcombine.high %v3495_v0, %v3502_v1  ;;  %v3539_v7 = vcombine.low %v3511_v2, %v3518_v3  ;;  %v4196_v8 = vcombine.high %v3511_v2, %v3518_v3 }
 0xaee   : > { %v3530_v11 = vrot.slane %v3523_v5, %v5106_v44  ;;  %v3538_v12 = vrot.slane %v4195_v6, %v5106_v44  ;;  %v3546_v13 = vrot.slane %v3539_v7, %v5106_v44  ;;  %v3554_v15 = vrot.slane %v4196_v8, %v5106_v44 }
 0xaf0   : > { %v3556_v16 = vcombine.high %v3530_v11, %v3538_v12  ;;  %v3572_v17 = vcombine.high %v3546_v13, %v3554_v15  ;;  %v3555_v18 = vcombine.low %v3530_v11, %v3538_v12  ;;  %v3571_v19 = vcombine.low %v3546_v13, %v3554_v15 }
 0xaf2   : > { %v3570_v20 = vrot.slane %v3556_v16, %v5116_v53  ;;  %v3586_v9 = vrot.slane %v3572_v17, %v5116_v53  ;;  %v3563_v21 = vrot.slane %v3555_v18, %v5116_v53  ;;  %v3579_v22 = vrot.slane %v3571_v19, %v5116_v53 }
 0xaf4   : > { %v3589_v23 = vcombine.low %v3570_v20, %v3586_v9  ;;  %v3588_v24 = vcombine.high %v3563_v21, %v3579_v22  ;;  %v3587_v25 = vcombine.low %v3563_v21, %v3579_v22  ;;  %v3590_v44 = vcombine.high %v3570_v20, %v3586_v9 }
 0xaf6   : > { %3596 = vrot.lane.b32.xlu0 %v3589_v23, %s4782_s0  ;;  %3592 = vrot.lane.b32.xlu1 %v3588_v24, %s5727_s25 }
 0xafa   : > { %3600 = vrot.lane.b32.xlu1 %v3590_v44, %s5728_s27 }
 0xb68   : > { %v3593_v26 = vpop.permute.xlu1 %3592  ;;  %v3597_v27 = vpop.permute.xlu0 %3596 }
 0xb69   : > { %v3603_v28 = vsel %vm1377_vm2, %v3587_v25, %v3593_v26 }
 0xb6a   : > { %v3604_v32 = vsel %vm2167_vm3, %v3603_v28, %v3597_v27 }
 0xb6c   : > { %v3601_v30 = vpop.permute.xlu1 %3600 }
 0xb6d   : > { %v3605_v53 = vsel %vm2169_vm4, %v3604_v32, %v3601_v30 }
 0xb6e   : > { %4408 = vmatmul.mubr.msk.f32.vlgmr.msra.gmra.mxu0 %vm819_vm0, %v3605_v53 }
 0xc2e   : > { %v3686_v34 = vpop.f32.mrf.mxu0 }
 0xc2f   : > { %v3687_v31 = vadd.f32 %v4197_v33, %v3686_v34 }
 0xc30   : > { %v4409_v35 = vpop.f32.mrf.mxu0 }
 0xc31   : > { %v3690_v36 = vadd.f32 %v3687_v31, %v5268_v29 }
 0xc33   : > { %v3698_v37 = vadd.f32 %v4199_v4, %v3690_v36  ;;  %v3702_v38 = vsel %vm819_vm0, %v3690_v36, 0.0  ;;  %v3706_v55 = vmul.f32 %v3690_v36, %v3690_v36 }
 0xc34   : > { %3703 = vadd.xlane.f32.xlu1 %v3702_v38 }
 0xc35   : > { %3699 = vst.msk [vmem:[%s5037_s26] sm:$0xff] %vm819_vm0, %v3698_v37  ;;  %v3707_v39 = vsel %vm819_vm0, %v3706_v55, 0.0 }
 0xc36   : > { %3708 = vadd.xlane.f32.xlu0 %v3707_v39 }
 0xcbd   : > { %v3704_v57 = vpop.xlane.xlu1 %3703 }
 0xcbe   : > { %v3705_v40 = vmul.f32 0.03125, %v3704_v57 }
 0xcbf   : > { %v3709_v41 = vpop.xlane.xlu0 %3708 }
 0xcc0   : > { %v3711_v56 = vmul.f32 %v3705_v40, %v3705_v40  ;;  %v3710_v42 = vmul.f32 0.03125, %v3709_v41  ;;  %v3713_v46 = vsub.f32 %v3690_v36, %v3705_v40 }
 0xcc2   : > { %v3712_v43 = vsub.f32 %v3710_v42, %v3711_v56 }
 0xcc4   : > { %v3714_v45 = vadd.f32 1e-05, %v3712_v43 }
 0xcc6   : > { %4603 = vrsqrt.f32 %v3714_v45 }
 0xcd3   : > { %v4604_v29 = vpop.eup %4603 }
 0xcd4   : > { %v3716_v14 = vmul.f32 %v4604_v29, %v3713_v46 }
 0xcd6   : > { %v3723_v49 = vmul.f32 %v4200_v47, %v3716_v14 }
 0xcd8   : > { %v3730_v50 = vadd.f32 %v4201_v48, %v3723_v49 }
 0xcda   : > { %3731 = vst.msk [vmem:[#allocation2] sm:$0xff] %vm819_vm0, %v3730_v50 }
 0xcdb PF: > { %v3736_v51 = vld [vmem:[%s5034_s28 + $0x18] sm:$0xff]  ;;  %v4785_v52 = vmov 0.0   ;;  %v3735_v54 = vld [vmem:[%s5034_s28 + $0x10] sm:$0xff]  ;;  %vm4786_vm5 = vmmov 0   ;;  %v3838_v59 = vld [vmem:[%s5032_s3 + $0x70] sm:$0xff]  ;;  %vm3744_vm6 = vcmask 261120   ;;  %s5733_s27 = scalar_lea.vmem %s5658_s18, %s5020_s14 }
 0xcdc   : > { %4410 = vmatprep.subr.mxu0 %v4785_v52  ;;  %4418 = vmatprep.mubr.msk.f32.mxu0 %vm4786_vm5, %v4785_v52  ;;  %v3839_v58 = vld [vmem:[%s5032_s3 + $0x78] sm:$0xff]  ;;  %v3734_v60 = vld [vmem:[%s5034_s28 + $0x8] sm:$0xff]  ;;  %v3837_v61 = vld [vmem:[%s5032_s3 + $0x68] sm:$0xff]  ;;  %s5736_s1 = sld [smem:[#allocation36_spill]]  ;;  %s5738_s6 = scalar_lea.vmem [#allocation6], %s5013_s15 }
 0xcdd   : > { %4411 = vmatpush3.msra.mxu0 %v3736_v51  ;;  %4421 = vmatprep.subr.mxu1 %v4785_v52  ;;  %v3733_v62 = vld [vmem:[%s5034_s28] sm:$0xff]  ;;  %v3836_v0 = vld [vmem:[%s5032_s3 + $0x60] sm:$0xff]  ;;  %v3835_v1 = vld [vmem:[%s5032_s3 + $0x58] sm:$0xff]  ;;  %s5732_s28 = sld [smem:[#allocation15_spill]]  ;;  %s3949_s30 = sshll.u32 %s5738_s6, 4  ;;  %s3950_s30 = int_to_ptr.vmem [resolvable:$true] %s3949_s30 }
 0xcde   : > { %4412 = vmatprep.subr.mxu0 %v4785_v52  ;;  %4422 = vmatpush3.msra.mxu1 %v3839_v58  ;;  %v3834_v2 = vld [vmem:[%s5032_s3 + $0x50] sm:$0xff]  ;;  %v3833_v3 = vld [vmem:[%s5032_s3 + $0x48] sm:$0xff]  ;;  %v3832_v5 = vld [vmem:[%s5032_s3 + $0x40] sm:$0xff]  ;;  %s4607_s22 = scalar_lea.vmem %s3950_s30, 128  ;;  %s4787_s23 = smov [#allocation6]  }
 0xcdf   : > { %4413 = vmatpush3.msra.mxu0 %v3735_v54  ;;  %4423 = vmatprep.subr.mxu1 %v4785_v52  ;;  %v3831_v6 = vld [vmem:[%s5032_s3 + $0x38] sm:$0xff]  ;;  %v3830_v7 = vld [vmem:[%s5032_s3 + $0x30] sm:$0xff]  ;;  %v3829_v8 = vld [vmem:[%s5032_s3 + $0x28] sm:$0xff]  ;;  %p4608_p7 = scmp.ne.s32.totalorder %s3950_s30, %s4607_s22  ;;  %s4611_s25 = sshll.u32 %s4787_s23, 4  ;;  %s4612_s25 = int_to_ptr.vmem [resolvable:$false] %s4611_s25 }
 0xce0   : > { %4414 = vmatprep.subr.mxu0 %v4785_v52  ;;  %4424 = vmatpush3.msra.mxu1 %v3838_v59  ;;  %v3828_v10 = vld [vmem:[%s5032_s3 + $0x20] sm:$0xff]  ;;  %v3827_v11 = vld [vmem:[%s5032_s3 + $0x18] sm:$0xff]  ;;  %v3826_v12 = vld [vmem:[%s5032_s3 + $0x10] sm:$0xff]  ;;  %p4614_p11 = scmp.lt.s32.totalorder %s3950_s30, %s4612_s25 }
 0xce1   : > { %4415 = vmatpush3.msra.mxu0 %v3734_v60  ;;  %v3732_v63 = vld [vmem:[#allocation2] sm:$0xff]  ;;  %4425 = vmatprep.subr.mxu1 %v4785_v52  ;;  %v3825_v13 = vld [vmem:[%s5032_s3 + $0x8] sm:$0xff]  ;;  %p4609_p8 = pnand %p4608_p7, %p4986_p10 }
 0xce2   : > { %4416 = vmatprep.subr.mxu0 %v4785_v52  ;;  %4426 = vmatpush3.msra.mxu1 %v3837_v61  ;;  %v3824_v15 = vld [vmem:[%s5032_s3] sm:$0xff]  ;;  %s5735_s3 = sadd.s32 4294967295, %s4771_s24   ;;  %s5737_s2 = smov %s5736_s1 }
 0xce3   : > { %4417 = vmatpush3.msra.mxu0 %v3733_v62  ;;  %4427 = vmatprep.subr.mxu1 %v4785_v52  ;;  %v4202_v16 = vld [vmem:[%s5733_s27] ss:$0 sm:$0xff]  ;;  %s5530_s17 = sand.u32 1, %s5735_s3   ;;  %s5533_s0 = sshll.u32 %s5732_s28, 7 }
 0xce4   : > { %4419 = vmatmul.mubr.msk.f32.vlgmr.msra.gmra.mxu0 %vm3744_vm6, %v3732_v63  ;;  %4428 = vmatpush3.msra.mxu1 %v3836_v0  ;;  %s3947_s21 = scalar_lea.hbm %s5736_s1, %s5533_s0  ;;  %s3918_s29 = scalar_lea.sflag [#allocation7], %s5530_s17 }
 0xce5   : > { %4429 = vmatprep.subr.mxu1 %v4785_v52  ;;  %4453 = vmatprep.mubr.msk.f32.mxu1 %vm4786_vm5, %v4785_v52  ;;  %p4610_p9 = pneg %p4609_p8  ;;  %s4613_s27 = scalar_lea.vmem %s4612_s25, 256 }
 0xce6   : > { %4430 = vmatpush3.msra.mxu1 %v3835_v1  ;;  %p4615_p13 = scmp.lt.s32.totalorder %s4613_s27, %s4607_s22 }
 0xce7   : > { %4431 = vmatprep.subr.mxu1 %v4785_v52 }
 0xce8   : > { %4432 = vmatpush3.msra.mxu1 %v3834_v2  ;;  %p4616_p0 = por %p4615_p13, %p4614_p11 }
 0xce9   : > { %4433 = vmatprep.subr.mxu1 %v4785_v52 }
 0xcea   : > { %4434 = vmatpush3.msra.mxu1 %v3833_v3  ;;  %p4617_p1 = pnand %p4616_p0, %p4610_p9 }
 0xceb   : > { %4435 = vmatprep.subr.mxu1 %v4785_v52 }
 0xcec   : > { %4436 = vmatpush3.msra.mxu1 %v3832_v5 }
 0xced   : > { %4437 = vmatprep.subr.mxu1 %v4785_v52 }
 0xcee   : > { %4438 = vmatpush3.msra.mxu1 %v3831_v6 }
 0xcef   : > { %4439 = vmatprep.subr.mxu1 %v4785_v52 }
 0xcf0   : > { %4440 = vmatpush3.msra.mxu1 %v3830_v7 }
 0xcf1   : > { %4441 = vmatprep.subr.mxu1 %v4785_v52 }
 0xcf2   : > { %4442 = vmatpush3.msra.mxu1 %v3829_v8 }
 0xcf3   : > { %4443 = vmatprep.subr.mxu1 %v4785_v52 }
 0xcf4   : > { %4444 = vmatpush3.msra.mxu1 %v3828_v10 }
 0xcf5   : > { %4445 = vmatprep.subr.mxu1 %v4785_v52 }
 0xcf6   : > { %4446 = vmatpush3.msra.mxu1 %v3827_v11 }
 0xcf7   : > { %4447 = vmatprep.subr.mxu1 %v4785_v52 }
 0xcf8   : > { %4448 = vmatpush3.msra.mxu1 %v3826_v12 }
 0xcf9   : > { %4449 = vmatprep.subr.mxu1 %v4785_v52 }
 0xcfa   : > { %4450 = vmatpush3.msra.mxu1 %v3825_v13 }
 0xcfb   : > { %4451 = vmatprep.subr.mxu1 %v4785_v52 }
 0xcfc   : > { %4452 = vmatpush3.msra.mxu1 %v3824_v15 }
 0xda4   : > { %v3814_v17 = vpop.f32.mrf.mxu0 }
 0xda5   : > { %v3815_v18 = vadd.f32 %v4202_v16, %v3814_v17 }
 0xda6   : > { %v4420_v19 = vpop.f32.mrf.mxu0 }
 0xda7   : > { %v3819_v20 = vmul.f32 0.70710677, %v3815_v18  ;;  %v3818_v21 = vmul.f32 0.5, %v3815_v18 }
 0xda9   : > { %4605 = verf.f32 %v3819_v20 }
 0xdb6   : > { %v4606_v9 = vpop.eup %4605 }
 0xdb7   : > { %v3821_v22 = vadd.f32 1.0, %v4606_v9 }
 0xdb9   : > { %v3822_v23 = vmul.f32 %v3821_v22, %v3818_v21 }
 0xdbb   : > { %4454 = vmatmul.mubr.f32.vlgmr.msra.gmra.mxu1 %v3822_v23 }
 0xdbc   : > { %4620 = shalt.err (!%p4617_p1)
}
 0xdbd   : > { %s4621_s28 = scalar_lea.hbm %s3947_s21, 128  ;;  %s4625_s4 = scalar_lea.hbm %s5737_s2, 256 }
 0xdbe   : > { %p4622_p2 = scmp.ne.s32.totalorder %s3947_s21, %s4621_s28  ;;  %p4626_p5 = scmp.lt.s32.totalorder %s3947_s21, %s5737_s2 }
 0xdbf   : > { %p4627_p6 = scmp.lt.s32.totalorder %s4625_s4, %s4621_s28 }
 0xdc0   : > { %p4623_p3 = pnand %p4622_p2, %p4986_p10 }
 0xdc1   : > { %p4628_p7 = por %p4627_p6, %p4626_p5 }
 0xdc2   : > { %p4624_p4 = pneg %p4623_p3 }
 0xdc4   : > { %p4629_p8 = pnand %p4628_p7, %p4624_p4 }
 0xdc6   : > { %4632 = shalt.err (!%p4629_p8)
}
 0xdc7   : > { %4457 = dma.vmem_to_hbm [thread:$0]  (%p4986_p10), %s3950_s30, 128, %s3947_s21, %s3918_s29  }
 0xdc8   : > { %s5739_s25 = sld [smem:[#allocation37_spill]]  ;;  %s5740_s3 = scalar_lea.vmem [#allocation8], %s5013_s15 }
 0xdc9   : > { %s3962_s14 = sshll.u32 %s5740_s3, 4  ;;  %s4788_s28 = smov [#allocation8]   ;;  %s3963_s14 = int_to_ptr.vmem [resolvable:$true] %s3962_s14 }
 0xdca   : > { %s4633_s1 = scalar_lea.vmem %s3963_s14, 128  ;;  %s4637_s4 = sshll.u32 %s4788_s28, 4  ;;  %s4638_s4 = int_to_ptr.vmem [resolvable:$false] %s4637_s4 }
 0xdcb   : > { %p4634_p9 = scmp.ne.s32.totalorder %s3963_s14, %s4633_s1  ;;  %s4639_s6 = scalar_lea.vmem %s4638_s4, 256 }
 0xdcc   : > { %p4640_p0 = scmp.lt.s32.totalorder %s3963_s14, %s4638_s4  ;;  %p4641_p1 = scmp.lt.s32.totalorder %s4639_s6, %s4633_s1 }
 0xdcd   : > { %p4635_p11 = pnand %p4634_p9, %p4986_p10 }
 0xdce   : > { %s3960_s27 = scalar_lea.hbm %s5739_s25, %s5533_s0  ;;  %p4642_p2 = por %p4641_p1, %p4640_p0 }
 0xdcf   : > { %p4636_p13 = pneg %p4635_p11 }
 0xdd1   : > { %p4643_p3 = pnand %p4642_p2, %p4636_p13 }
 0xdd3   : > { %4646 = shalt.err (!%p4643_p3)
}
 0xdd4   : > { %s4647_s21 = scalar_lea.hbm %s3960_s27, 128  ;;  %s4651_s22 = scalar_lea.hbm %s5739_s25, 256 }
 0xdd5   : > { %p4648_p4 = scmp.ne.s32.totalorder %s3960_s27, %s4647_s21  ;;  %p4652_p7 = scmp.lt.s32.totalorder %s3960_s27, %s5739_s25 }
 0xdd6   : > { %p4653_p8 = scmp.lt.s32.totalorder %s4651_s22, %s4647_s21 }
 0xdd7   : > { %p4649_p5 = pnand %p4648_p4, %p4986_p10 }
 0xdd8   : > { %p4654_p9 = por %p4653_p8, %p4652_p7 }
 0xdd9   : > { %p4650_p6 = pneg %p4649_p5 }
 0xddb   : > { %p4655_p11 = pnand %p4654_p9, %p4650_p6 }
 0xddd   : > { %4658 = shalt.err (!%p4655_p11)
}
 0xdde   : > { %s5741_s1 = sld [smem:[#allocation12_spill]]  ;;  %v3823_v24 = vld [vmem:[%s5037_s26] sm:$0xff]  ;;  %s3936_s28 = sshll.u32 %s5037_s26, 4  ;;  %s3937_s28 = int_to_ptr.vmem [resolvable:$true] %s3936_s28 }
 0xddf   : > { %4458 = dma.vmem_to_hbm [thread:$0]  (%p4986_p10), %s3963_s14, 128, %s3960_s27, %s3918_s29  }
 0xde0   : > { %s5742_s21 = sld [smem:[#allocation35_spill]]  ;;  %s4659_s22 = scalar_lea.vmem %s3937_s28, 128 }
 0xde1   : > { %p4660_p13 = scmp.ne.s32.totalorder %s3937_s28, %s4659_s22  ;;  %s4789_s29 = smov [#allocation4]  }
 0xde2   : > { %s4663_s27 = sshll.u32 %s4789_s29, 4  ;;  %s4664_s27 = int_to_ptr.vmem [resolvable:$false] %s4663_s27 }
 0xde3   : > { %p4661_p0 = pnand %p4660_p13, %p4986_p10  ;;  %s4665_s14 = scalar_lea.vmem %s4664_s27, 256 }
 0xde4   : > { %s5743_s17 = sand.u32 1, %s5741_s1   ;;  %p4666_p2 = scmp.lt.s32.totalorder %s3937_s28, %s4664_s27 }
 0xde5   : > { %s3913_s30 = scalar_lea.sflag [#allocation5], %s5743_s17  ;;  %p4662_p1 = pneg %p4661_p0 }
 0xde6   : > { %s5582_s15 = scalar_lea.hbm %s5742_s21, %s5533_s0  ;;  %p4667_p3 = scmp.lt.s32.totalorder %s4665_s14, %s4659_s22 }
 0xde8   : > { %p4668_p4 = por %p4667_p3, %p4666_p2 }
 0xdea   : > { %p4669_p5 = pnand %p4668_p4, %p4662_p1 }
 0xe7b   : > { %v3906_v25 = vpop.f32.mrf.mxu1 }
 0xe7c   : > { %v3910_v44 = vadd.f32 %v3906_v25, %v3823_v24 }
 0xe7d   : > { %v4455_v26 = vpop.f32.mrf.mxu1 }
 0xe7e   : > { %3911 = vst.msk [vmem:[%s5037_s26] sm:$0xff] %vm3744_vm6, %v3910_v44 }
 0xe7f   : > { %4672 = shalt.err (!%p4669_p5)
}
 0xe80   : > { %s4673_s26 = scalar_lea.hbm %s5582_s15, 128  ;;  %s4677_s3 = scalar_lea.hbm %s5742_s21, 256 }
 0xe81   : > { %p4674_p6 = scmp.ne.s32.totalorder %s5582_s15, %s4673_s26  ;;  %p4678_p9 = scmp.lt.s32.totalorder %s5582_s15, %s5742_s21 }
 0xe82   : > { %p4679_p11 = scmp.lt.s32.totalorder %s4677_s3, %s4673_s26 }
 0xe83   : > { %p4675_p7 = pnand %p4674_p6, %p4986_p10 }
 0xe84   : > { %p4680_p13 = por %p4679_p11, %p4678_p9 }
 0xe85   : > { %p4676_p8 = pneg %p4675_p7 }
 0xe87   : > { %p4681_p0 = pnand %p4680_p13, %p4676_p8 }
 0xe89   : > { %4684 = shalt.err (!%p4681_p0)
}
 0xe8a   : > { %4456 = dma.vmem_to_hbm [thread:$0]  (%p4986_p10), %s3937_s28, 128, %s5582_s15, %s3913_s30  }
 0xe8b PF: > { %s5744_s6 = sld [smem:[#allocation11_spill]]  ;;  %p4472_p1 = scmp.ge.s32.totalorder %s4771_s24, 2 }
 0xe8d   : > { %p4463_p2 = pnand %p4472_p1, %p4995_p12 }
 0xe8f   : > { %p4464_p3 = pneg %p4463_p2 }
 0xe91   : > { %s3974_s22 = sand.u32 1, %s5744_s6  }
 0xe92   : > { %s3975_s29 = scalar_lea.sflag [#allocation5], %s3974_s22 }
 0xe93   : > { %4726 = dma.done.wait (%p4464_p3), %s3975_s29, 128  }
 0xe94   : > { %4728 = vsyncadd (%p4464_p3), %s3975_s29, 4294967168  ;;  %s5746_s27 = sadd.s32 4294967294, %s4771_s24  }
 0xe95   : > { %s3983_s14 = sand.u32 1, %s5746_s27  }
 0xe96   : > { %s3984_s26 = scalar_lea.sflag [#allocation7], %s3983_s14 }
 0xe97   : > { %4730 = dma.done.wait (%p4464_p3), %s3984_s26, 256  }
 0xe98   : > { %4732 = vsyncadd (%p4464_p3), %s3984_s26, 4294967040  ;;  %s39_s24 = sadd.s32 1, %s4771_s24   ;;  %s5747_s3 = sld [smem:[#allocation12_spill]] }
 0xe99   : > { %p36_p10 = scmp.ge.s32.totalorder %s39_s24, 6   ;;  %s5748_s28 = sld [smem:[#allocation13_spill]] }
 0xe9a   : > { %s5749_s29 = sld [smem:[#allocation22_spill]] }
 0xe9b   : > { %s5750_s30 = sld [smem:[#allocation14_spill]] }
 0xe9c   : > { %s5751_s4 = sld [smem:[#allocation20_spill]]  ;;  %38 = sbr.rel (!%p36_p10) target bundleno = 23 (0x17), region = 223 }
 0xe9d   : > { %s5752_s0 = sld [smem:[#allocation16_spill]] }
 0xe9e   : > { %s5753_s23 = sld [smem:[#allocation17_spill]] }
 0xe9f   : > { %s5754_s1 = sld [smem:[#allocation18_spill]] }
 0xea0   : > { %s5755_s5 = sld [smem:[#allocation19_spill]] }
 0xea1   :  { %3998 = vsyncpa [#allocation5], 1 }
 0xea2   :  { %4000 = vsyncpa [#allocation5 + $0x1], 1 }
 0xea3   :  { %4001 = vsyncpa [#allocation7], 1 }
 0xea4   :  { %4003 = vsyncpa [#allocation7 + $0x1], 1 }

</bundles_post_ra>
